<compile_context>
chip_gen: v7x
topology: tpu7x:2x2x1
jax: 0.10.0
libtpu: 0.0.40
codegen_flags: <defaults>
</compile_context>

<pallas_src>
import jax
import jax.numpy as jnp
from jax.experimental import pallas as pl
from jax.experimental.pallas import tpu as pltpu


_N_CLASSES = 675
_N_PAD = 768            # 675 padded to a lane-dense multiple of 128

# (H, W, Cin, Cout) of the three conv stages.  Input spatial is 8x8 so three
# 2x2 pools reduce it to 1x1, matching fc1 = Linear(128 * 1 * 1, 256).
_CONV_LAYERS = ((8, 8, 6, 32), (4, 4, 32, 64), (2, 2, 64, 128))


# ---------------------------------------------------------------------------
# The fused kernel
# ---------------------------------------------------------------------------
def _make_net_kernel(B):
    (H1, W1, _C1, _O1), (H2, W2, _C2, _O2), (_H3, _W3, _C3, _O3) = _CONV_LAYERS
    Ho1, Wo1 = H1 // 2, W1 // 2                 # 4, 4
    Ho2, Wo2 = H2 // 2, W2 // 2                 # 2, 2

    def im2col_padded(p_ref, Hd, Wd):
        # p_ref: zero-padded row-flattened (B*Hd*Wd, C) activations.
        # Row t of the result is the 3x3 window centred on padded flat index
        # t + (Wd + 1); real output (b, r, c) lands at t = b*Hd*Wd + r*Wd + c.
        # Rows whose centre sits in the padding are junk but never read later.
        r0 = Wd + 1
        L = B * Hd * Wd - 2 * r0
        taps = [p_ref[pl.ds(r0 + (kh - 1) * Wd + (kw - 1), L), :]
                for kh in range(3) for kw in range(3)]
        return jnp.concatenate(taps, axis=-1)            # (L, 9*C)

    def pool_to_padded(c_ref, dst_ref, off_b, row_stride, Ho, Wo):
        # MaxPool 2x2 stride 2, read with static stride-2 row slices from the
        # conv-output scratch and scattered into the NEXT stage's zero-padded
        # layout (only interior rows written; the zero-init is the conv pad).
        Hd, Wd = Ho + 2, Wo + 2
        dst_ref[...] = jnp.zeros_like(dst_ref)
        for b in range(B):
            for i in range(Ho):
                base = b * off_b + 2 * i * row_stride
                r00 = c_ref[pl.ds(base, Wo, stride=2), :]
                r01 = c_ref[pl.ds(base + 1, Wo, stride=2), :]
                r10 = c_ref[pl.ds(base + row_stride, Wo, stride=2), :]
                r11 = c_ref[pl.ds(base + row_stride + 1, Wo, stride=2), :]
                pooled = jnp.maximum(jnp.maximum(r00, r01),
                                     jnp.maximum(r10, r11))
                dst_ref[pl.ds(b * Hd * Wd + (i + 1) * Wd + 1, Wo), :] = pooled

    def kernel(im1_ref, w1_ref, b1_ref, w2_ref, b2_ref, b3_ref,
               fb1_ref, fb2_ref,
               w3_hbm, fw1_hbm, fw2_hbm,
               out_ref,
               c1_ref, p2_ref, c2_ref, p3_ref, c3_ref, feat_ref,
               w3_vmem, fw1_vmem, fw2_vmem, sems):

        # ---- Stream the big bf16 weights behind the conv stages (#1).  They
        # enter via memory_space=pl.ANY so they do NOT block kernel start the
        # way auto-DMA'd full-tile inputs would.
        cp_w3 = pltpu.make_async_copy(w3_hbm, w3_vmem, sems.at[0])
        cp_fw1 = pltpu.make_async_copy(fw1_hbm, fw1_vmem, sems.at[1])
        cp_fw2 = pltpu.make_async_copy(fw2_hbm, fw2_vmem, sems.at[2])
        cp_w3.start()
        cp_fw1.start()
        cp_fw2.start()

        # ---- conv1 + ReLU: one matmul on the wrapper-built im2col (#2).
        c1 = jnp.dot(im1_ref[...], w1_ref[...],
                     preferred_element_type=jnp.float32)          # (B*64, 32)
        c1_ref[...] = jnp.maximum(c1 + b1_ref[...], 0.0)

        # ---- pool1 -> zero-padded (B*6*6, 32) layout for conv2 (#3).
        pool_to_padded(c1_ref, p2_ref, off_b=H1 * W1, row_stride=W1,
                       Ho=Ho1, Wo=Wo1)

        # ---- conv2 + ReLU: in-kernel im2col (58, 288), single matmul.
        im2 = im2col_padded(p2_ref, Ho1 + 2, Wo1 + 2)
        c2 = jnp.dot(im2, w2_ref[...], preferred_element_type=jnp.float32)
        c2_ref[...] = jnp.maximum(c2 + b2_ref[...], 0.0)          # (58, 64)

        # ---- pool2 -> zero-padded (B*4*4, 64) layout for conv3.
        pool_to_padded(c2_ref, p3_ref, off_b=(Ho1 + 2) * (Wo1 + 2),
                       row_stride=Wo1 + 2, Ho=Ho2, Wo=Wo2)

        # ---- conv3 + ReLU (bf16 weight; wait for its DMA only now).
        cp_w3.wait()
        im3 = im2col_padded(p3_ref, Ho2 + 2, Wo2 + 2).astype(jnp.bfloat16)
        c3 = jnp.dot(im3, w3_vmem[...], preferred_element_type=jnp.float32)
        c3_ref[...] = jnp.maximum(c3 + b3_ref[...], 0.0)          # (22, 128)

        # ---- pool3 -> (B, 128) feature rows (1x1 output => 4 plain rows).
        off_b3 = (Ho2 + 2) * (Wo2 + 2)
        row3 = Wo2 + 2
        for b in range(B):
            base = b * off_b3
            m = jnp.maximum(
                jnp.maximum(c3_ref[pl.ds(base, 1), :],
                            c3_ref[pl.ds(base + 1, 1), :]),
                jnp.maximum(c3_ref[pl.ds(base + row3, 1), :],
                            c3_ref[pl.ds(base + row3 + 1, 1), :]))
            feat_ref[pl.ds(b, 1), :] = m

        # ---- fc1 + ReLU (bf16 weight).
        cp_fw1.wait()
        h = jnp.dot(feat_ref[...].astype(jnp.bfloat16), fw1_vmem[...],
                    preferred_element_type=jnp.float32)
        h = jnp.maximum(h + fb1_ref[...], 0.0)                    # (B, 256)

        # ---- fc2 (675 padded to 768 lanes) + softmax.
        cp_fw2.wait()
        logits = jnp.dot(h.astype(jnp.bfloat16), fw2_vmem[...],
                         preferred_element_type=jnp.float32) + fb2_ref[...]
        logits = logits - jnp.max(logits, axis=-1, keepdims=True)
        e = jnp.exp(logits)
        out_ref[...] = e * pl.reciprocal(jnp.sum(e, axis=-1, keepdims=True),
                                         approx=False)

    return kernel


def _full_spec(shape):
    zeros = (0,) * len(shape)
    return pl.BlockSpec(shape, lambda: zeros)


# ---------------------------------------------------------------------------
# Wrapper: one pallas_call for the whole forward pass
# ---------------------------------------------------------------------------
@jax.jit
def net_forward(params, x_nchw):
    B = x_nchw.shape[0]
    (H1, W1, C1, O1), (H2, W2, C2, O2), (H3, W3, C3, O3) = _CONV_LAYERS

    # NCHW -> NHWC once at the XLA boundary; conv1's im2col is also built here
    # (the network input is tiny), so conv1 is a single in-kernel matmul.
    x = jnp.transpose(x_nchw, (0, 2, 3, 1)).astype(jnp.float32)      # (B,8,8,6)
    xp = jnp.pad(x, ((0, 0), (1, 1), (1, 1), (0, 0)))                # (B,10,10,6)
    im1 = jnp.concatenate(
        [xp[:, kh:kh + H1, kw:kw + W1, :]
         for kh in range(3) for kw in range(3)],
        axis=-1).reshape(B * H1 * W1, 9 * C1)                        # (B*64, 54)

    # Conv weights are expected in HWIO (3,3,Cin,Cout); a real PyTorch OIHW
    # checkpoint needs .transpose(2, 3, 1, 0) first.  Merged-tap layout.
    w1 = params["conv1_w"].reshape(9 * C1, O1)                       # (54, 32)
    w2 = params["conv2_w"].reshape(9 * C2, O2)                       # (288, 64)
    w3 = params["conv3_w"].reshape(9 * C3, O3).astype(jnp.bfloat16)  # (576,128)
    b1 = params["conv1_b"].reshape(1, O1)
    b2 = params["conv2_b"].reshape(1, O2)
    b3 = params["conv3_b"].reshape(1, O3)

    fw1 = params["fc1_w"].astype(jnp.bfloat16)                       # (128, 256)
    fb1 = params["fc1_b"].reshape(1, -1)
    # Lane-dense fc2: pad 675 -> 768.  Padded weight cols are 0; padded bias is
    # -inf, so padded logits are exp(-inf)=0 and never interact with the max.
    pad_n = _N_PAD - _N_CLASSES
    fw2 = jnp.pad(params["fc2_w"], ((0, 0), (0, pad_n))).astype(jnp.bfloat16)
    fb2 = jnp.pad(params["fc2_b"], (0, pad_n),
                  constant_values=-jnp.inf).reshape(1, _N_PAD)

    vmem_inputs = (im1, w1, b1, w2, b2, b3, fb1, fb2)
    hbm_inputs = (w3, fw1, fw2)          # manually DMA'd inside the kernel

    Hd1, Wd1 = H1 // 2 + 2, W1 // 2 + 2          # 6, 6
    Hd2, Wd2 = H2 // 2 + 2, W2 // 2 + 2          # 4, 4
    L2 = B * Hd1 * Wd1 - 2 * (Wd1 + 1)           # conv2 output rows (58)
    L3 = B * Hd2 * Wd2 - 2 * (Wd2 + 1)           # conv3 output rows (22)

    scratch = [
        pltpu.VMEM((B * H1 * W1, O1), jnp.float32),     # conv1 out   (128, 32)
        pltpu.VMEM((B * Hd1 * Wd1, O1), jnp.float32),   # pool1 out   (72, 32)
        pltpu.VMEM((L2, O2), jnp.float32),              # conv2 out   (58, 64)
        pltpu.VMEM((B * Hd2 * Wd2, O2), jnp.float32),   # pool2 out   (32, 64)
        pltpu.VMEM((L3, O3), jnp.float32),              # conv3 out   (22, 128)
        pltpu.VMEM((B, O3), jnp.float32),               # features    (B, 128)
        pltpu.VMEM(w3.shape, jnp.bfloat16),             # w3 landing buffer
        pltpu.VMEM(fw1.shape, jnp.bfloat16),            # fc1 weight landing
        pltpu.VMEM(fw2.shape, jnp.bfloat16),            # fc2 weight landing
        pltpu.SemaphoreType.DMA((3,)),
    ]

    # Gridless: at B=2 the whole net is one serial, latency-bound body.
    # TODO(synk): for batch >> 2, add grid=(B//Bt,) over batch with
    # dimension_semantics=("parallel",) so v7x's second TensorCore gets work.
    probs_padded = pl.pallas_call(
        _make_net_kernel(B),
        out_shape=jax.ShapeDtypeStruct((B, _N_PAD), jnp.float32),
        in_specs=[_full_spec(a.shape) for a in vmem_inputs]
                 + [pl.BlockSpec(memory_space=pl.ANY)] * len(hbm_inputs),
        out_specs=_full_spec((B, _N_PAD)),
        scratch_shapes=scratch,
    )(*vmem_inputs, *hbm_inputs)

    return probs_padded[:, :_N_CLASSES]


# ---------------------------------------------------------------------------
# Plain-XLA reference of the same forward pass (correctness cross-check)
# ---------------------------------------------------------------------------
def net_forward_reference(params, x_nchw):
    hp = jax.lax.Precision.HIGHEST
    x = jnp.transpose(x_nchw, (0, 2, 3, 1)).astype(jnp.float32)

    def block(x, w, b):
        y = jax.lax.conv_general_dilated(
            x, w, window_strides=(1, 1), padding="SAME",
            dimension_numbers=("NHWC", "HWIO", "NHWC"), precision=hp)
        y = jnp.maximum(y + b, 0.0)
        return jax.lax.reduce_window(y, -jnp.inf, jax.lax.max,
                                     (1, 2, 2, 1), (1, 2, 2, 1), "VALID")

    x = block(x, params["conv1_w"], params["conv1_b"])
    x = block(x, params["conv2_w"], params["conv2_b"])
    x = block(x, params["conv3_w"], params["conv3_b"])
    x = x.reshape(x.shape[0], -1)                                    # (B, 128)
    x = jnp.maximum(jnp.dot(x, params["fc1_w"], precision=hp)
                    + params["fc1_b"], 0.0)
    logits = jnp.dot(x, params["fc2_w"], precision=hp) + params["fc2_b"]
    return jax.nn.softmax(logits, axis=-1)


# ---------------------------------------------------------------------------
# Deterministic synthetic parameters (conv weights in HWIO; fc weights in
# (in, out) — a PyTorch checkpoint would need the usual transposes).
# ---------------------------------------------------------------------------
def init_params(key):
    keys = jax.random.split(key, 10)

    def conv_w(k, cin, cout):
        scale = 1.0 / jnp.sqrt(9.0 * cin)
        return jax.random.normal(k, (3, 3, cin, cout), jnp.float32) * scale

    def fc_w(k, fin, fout):
        scale = 1.0 / jnp.sqrt(float(fin))
        return jax.random.normal(k, (fin, fout), jnp.float32) * scale

    return {
        "conv1_w": conv_w(keys[0], 6, 32),
        "conv1_b": jax.random.normal(keys[1], (32,), jnp.float32) * 0.01,
        "conv2_w": conv_w(keys[2], 32, 64),
        "conv2_b": jax.random.normal(keys[3], (64,), jnp.float32) * 0.01,
        "conv3_w": conv_w(keys[4], 64, 128),
        "conv3_b": jax.random.normal(keys[5], (128,), jnp.float32) * 0.01,
        "fc1_w": fc_w(keys[6], 128, 256),
        "fc1_b": jax.random.normal(keys[7], (256,), jnp.float32) * 0.01,
        "fc2_w": fc_w(keys[8], 256, _N_CLASSES),
        "fc2_b": jax.random.normal(keys[9], (_N_CLASSES,), jnp.float32) * 0.01,
    }


if __name__ == "__main__":
    key = jax.random.PRNGKey(0)
    pkey, xkey = jax.random.split(key)
    params = init_params(pkey)

    # Input implied by the module: 6 channels, 8x8 spatial (3 pools -> 1x1).
    x = jax.random.normal(xkey, (2, 6, 8, 8), jnp.float32)   # NCHW like PyTorch

    probs = jax.block_until_ready(net_forward(params, x))

    assert probs.shape == (2, _N_CLASSES)
    assert bool(jnp.all(jnp.isfinite(probs)))
    assert bool(jnp.allclose(jnp.sum(probs, axis=1), 1.0, atol=1e-3))

    # Cross-check the fused kernel against the plain-XLA reference
    # (bf16 weights in the kernel => modest tolerance).
    probs_ref = jax.block_until_ready(jax.jit(net_forward_reference)(params, x))
    max_err = float(jnp.max(jnp.abs(probs - probs_ref)))
    assert bool(jnp.allclose(probs, probs_ref, rtol=6e-2, atol=3e-3)), max_err

    # TODO(synk): Net.sample (Categorical sampling / log_prob) is host-side
    # policy logic, not part of forward(), so it is not implemented as a kernel.
    print("KERNEL_OK")
</pallas_src>

<mosaic_0001>
module attributes {stable_mosaic.version = 11 : i64} {
  func.func @kernel(%arg0: memref<128x54xf32, #tpu.memory_space<vmem>>, %arg1: memref<54x32xf32, #tpu.memory_space<vmem>>, %arg2: memref<1x32xf32, #tpu.memory_space<vmem>>, %arg3: memref<288x64xf32, #tpu.memory_space<vmem>>, %arg4: memref<1x64xf32, #tpu.memory_space<vmem>>, %arg5: memref<1x128xf32, #tpu.memory_space<vmem>>, %arg6: memref<1x256xf32, #tpu.memory_space<vmem>>, %arg7: memref<1x768xf32, #tpu.memory_space<vmem>>, %arg8: memref<576x128xbf16, #tpu.memory_space<any>>, %arg9: memref<128x256xbf16, #tpu.memory_space<any>>, %arg10: memref<256x768xbf16, #tpu.memory_space<any>>, %arg11: memref<2x768xf32, #tpu.memory_space<vmem>>, %arg12: memref<128x32xf32, #tpu.memory_space<vmem>>, %arg13: memref<72x32xf32, #tpu.memory_space<vmem>>, %arg14: memref<58x64xf32, #tpu.memory_space<vmem>>, %arg15: memref<32x64xf32, #tpu.memory_space<vmem>>, %arg16: memref<22x128xf32, #tpu.memory_space<vmem>>, %arg17: memref<2x128xf32, #tpu.memory_space<vmem>>, %arg18: memref<576x128xbf16, #tpu.memory_space<vmem>>, %arg19: memref<128x256xbf16, #tpu.memory_space<vmem>>, %arg20: memref<256x768xbf16, #tpu.memory_space<vmem>>, %arg21: memref<3x!tpu.dma_semaphore, #tpu.memory_space<semaphore_mem>>) attributes {dimension_semantics = [], scalar_prefetch = 0 : i64, scratch_operands = 10 : i64, tpu.core_type = #tpu.core_type<tc>} {
    %c0_i32 = arith.constant 0 : i32
    %0 = tpu.memref_slice %arg21[%c0_i32] : memref<3x!tpu.dma_semaphore, #tpu.memory_space<semaphore_mem>> -> memref<1x!tpu.dma_semaphore, #tpu.memory_space<semaphore_mem>>
    %1 = tpu.memref_squeeze %0 : memref<1x!tpu.dma_semaphore, #tpu.memory_space<semaphore_mem>> -> memref<!tpu.dma_semaphore, #tpu.memory_space<semaphore_mem>>
    tpu.enqueue_dma source(%arg8 : memref<576x128xbf16, #tpu.memory_space<any>>) target(%arg18 : memref<576x128xbf16, #tpu.memory_space<vmem>>) target_semaphore(%1 : memref<!tpu.dma_semaphore, #tpu.memory_space<semaphore_mem>>)
    %c1_i32 = arith.constant 1 : i32
    %2 = tpu.memref_slice %arg21[%c1_i32] : memref<3x!tpu.dma_semaphore, #tpu.memory_space<semaphore_mem>> -> memref<1x!tpu.dma_semaphore, #tpu.memory_space<semaphore_mem>>
    %3 = tpu.memref_squeeze %2 : memref<1x!tpu.dma_semaphore, #tpu.memory_space<semaphore_mem>> -> memref<!tpu.dma_semaphore, #tpu.memory_space<semaphore_mem>>
    tpu.enqueue_dma source(%arg9 : memref<128x256xbf16, #tpu.memory_space<any>>) target(%arg19 : memref<128x256xbf16, #tpu.memory_space<vmem>>) target_semaphore(%3 : memref<!tpu.dma_semaphore, #tpu.memory_space<semaphore_mem>>)
    %c2_i32 = arith.constant 2 : i32
    %4 = tpu.memref_slice %arg21[%c2_i32] : memref<3x!tpu.dma_semaphore, #tpu.memory_space<semaphore_mem>> -> memref<1x!tpu.dma_semaphore, #tpu.memory_space<semaphore_mem>>
    %5 = tpu.memref_squeeze %4 : memref<1x!tpu.dma_semaphore, #tpu.memory_space<semaphore_mem>> -> memref<!tpu.dma_semaphore, #tpu.memory_space<semaphore_mem>>
    tpu.enqueue_dma source(%arg10 : memref<256x768xbf16, #tpu.memory_space<any>>) target(%arg20 : memref<256x768xbf16, #tpu.memory_space<vmem>>) target_semaphore(%5 : memref<!tpu.dma_semaphore, #tpu.memory_space<semaphore_mem>>)
    %c0 = arith.constant 0 : index
    %c0_0 = arith.constant 0 : index
    %6 = vector.load %arg0[%c0, %c0_0] : memref<128x54xf32, #tpu.memory_space<vmem>>, vector<128x54xf32>
    %c0_1 = arith.constant 0 : index
    %c0_2 = arith.constant 0 : index
    %7 = vector.load %arg1[%c0_1, %c0_2] : memref<54x32xf32, #tpu.memory_space<vmem>>, vector<54x32xf32>
    %cst = arith.constant dense<0.000000e+00> : vector<128x32xf32>
    %8 = tpu.matmul %6, %7, %cst {dimension_numbers = #tpu.dot_dimension_numbers<[1], [0], [0], [1], [0, 0, 1, 1], [], []>} : vector<128x54xf32>, vector<54x32xf32>, vector<128x32xf32> -> vector<128x32xf32>
    %c0_3 = arith.constant 0 : index
    %c0_4 = arith.constant 0 : index
    %9 = vector.load %arg2[%c0_3, %c0_4] : memref<1x32xf32, #tpu.memory_space<vmem>>, vector<1x32xf32>
    %10 = vector.broadcast %9 : vector<1x32xf32> to vector<128x32xf32>
    %11 = arith.addf %8, %10 : vector<128x32xf32>
    %cst_5 = arith.constant 0.000000e+00 : f32
    %12 = vector.broadcast %cst_5 : f32 to vector<128x32xf32>
    %13 = arith.maximumf %11, %12 : vector<128x32xf32>
    %c0_6 = arith.constant 0 : index
    %c0_7 = arith.constant 0 : index
    %14 = vector.load %arg12[%c0_6, %c0_7] : memref<128x32xf32, #tpu.memory_space<vmem>>, vector<128x32xf32>
    tpu.vector_store %arg12[%c0_6, %c0_7], %13 {strides = array<i32>} : memref<128x32xf32, #tpu.memory_space<vmem>>, vector<128x32xf32>,
    %cst_8 = arith.constant 0.000000e+00 : f32
    %15 = vector.broadcast %cst_8 : f32 to vector<72x32xf32>
    %c0_9 = arith.constant 0 : index
    %c0_10 = arith.constant 0 : index
    %16 = vector.load %arg13[%c0_9, %c0_10] : memref<72x32xf32, #tpu.memory_space<vmem>>, vector<72x32xf32>
    tpu.vector_store %arg13[%c0_9, %c0_10], %15 {strides = array<i32>} : memref<72x32xf32, #tpu.memory_space<vmem>>, vector<72x32xf32>,
    %c0_11 = arith.constant 0 : index
    %c0_12 = arith.constant 0 : index
    %17 = tpu.strided_load %arg12[%c0_11, %c0_12] {strides = array<i32: 2, 1>} : memref<128x32xf32, #tpu.memory_space<vmem>>, vector<4x32xf32>
    %c1 = arith.constant 1 : index
    %c0_13 = arith.constant 0 : index
    %18 = tpu.strided_load %arg12[%c1, %c0_13] {strides = array<i32: 2, 1>} : memref<128x32xf32, #tpu.memory_space<vmem>>, vector<4x32xf32>
    %c8 = arith.constant 8 : index
    %c0_14 = arith.constant 0 : index
    %19 = tpu.strided_load %arg12[%c8, %c0_14] {strides = array<i32: 2, 1>} : memref<128x32xf32, #tpu.memory_space<vmem>>, vector<4x32xf32>
    %c9 = arith.constant 9 : index
    %c0_15 = arith.constant 0 : index
    %20 = tpu.strided_load %arg12[%c9, %c0_15] {strides = array<i32: 2, 1>} : memref<128x32xf32, #tpu.memory_space<vmem>>, vector<4x32xf32>
    %21 = arith.maximumf %17, %18 : vector<4x32xf32>
    %22 = arith.maximumf %19, %20 : vector<4x32xf32>
    %23 = arith.maximumf %21, %22 : vector<4x32xf32>
    %c7 = arith.constant 7 : index
    %c0_16 = arith.constant 0 : index
    %24 = vector.load %arg13[%c7, %c0_16] : memref<72x32xf32, #tpu.memory_space<vmem>>, vector<4x32xf32>
    tpu.vector_store %arg13[%c7, %c0_16], %23 {strides = array<i32>} : memref<72x32xf32, #tpu.memory_space<vmem>>, vector<4x32xf32>,
    %c16 = arith.constant 16 : index
    %c0_17 = arith.constant 0 : index
    %25 = tpu.strided_load %arg12[%c16, %c0_17] {strides = array<i32: 2, 1>} : memref<128x32xf32, #tpu.memory_space<vmem>>, vector<4x32xf32>
    %c17 = arith.constant 17 : index
    %c0_18 = arith.constant 0 : index
    %26 = tpu.strided_load %arg12[%c17, %c0_18] {strides = array<i32: 2, 1>} : memref<128x32xf32, #tpu.memory_space<vmem>>, vector<4x32xf32>
    %c24 = arith.constant 24 : index
    %c0_19 = arith.constant 0 : index
    %27 = tpu.strided_load %arg12[%c24, %c0_19] {strides = array<i32: 2, 1>} : memref<128x32xf32, #tpu.memory_space<vmem>>, vector<4x32xf32>
    %c25 = arith.constant 25 : index
    %c0_20 = arith.constant 0 : index
    %28 = tpu.strided_load %arg12[%c25, %c0_20] {strides = array<i32: 2, 1>} : memref<128x32xf32, #tpu.memory_space<vmem>>, vector<4x32xf32>
    %29 = arith.maximumf %25, %26 : vector<4x32xf32>
    %30 = arith.maximumf %27, %28 : vector<4x32xf32>
    %31 = arith.maximumf %29, %30 : vector<4x32xf32>
    %c13 = arith.constant 13 : index
    %c0_21 = arith.constant 0 : index
    %32 = vector.load %arg13[%c13, %c0_21] : memref<72x32xf32, #tpu.memory_space<vmem>>, vector<4x32xf32>
    tpu.vector_store %arg13[%c13, %c0_21], %31 {strides = array<i32>} : memref<72x32xf32, #tpu.memory_space<vmem>>, vector<4x32xf32>,
    %c32 = arith.constant 32 : index
    %c0_22 = arith.constant 0 : index
    %33 = tpu.strided_load %arg12[%c32, %c0_22] {strides = array<i32: 2, 1>} : memref<128x32xf32, #tpu.memory_space<vmem>>, vector<4x32xf32>
    %c33 = arith.constant 33 : index
    %c0_23 = arith.constant 0 : index
    %34 = tpu.strided_load %arg12[%c33, %c0_23] {strides = array<i32: 2, 1>} : memref<128x32xf32, #tpu.memory_space<vmem>>, vector<4x32xf32>
    %c40 = arith.constant 40 : index
    %c0_24 = arith.constant 0 : index
    %35 = tpu.strided_load %arg12[%c40, %c0_24] {strides = array<i32: 2, 1>} : memref<128x32xf32, #tpu.memory_space<vmem>>, vector<4x32xf32>
    %c41 = arith.constant 41 : index
    %c0_25 = arith.constant 0 : index
    %36 = tpu.strided_load %arg12[%c41, %c0_25] {strides = array<i32: 2, 1>} : memref<128x32xf32, #tpu.memory_space<vmem>>, vector<4x32xf32>
    %37 = arith.maximumf %33, %34 : vector<4x32xf32>
    %38 = arith.maximumf %35, %36 : vector<4x32xf32>
    %39 = arith.maximumf %37, %38 : vector<4x32xf32>
    %c19 = arith.constant 19 : index
    %c0_26 = arith.constant 0 : index
    %40 = vector.load %arg13[%c19, %c0_26] : memref<72x32xf32, #tpu.memory_space<vmem>>, vector<4x32xf32>
    tpu.vector_store %arg13[%c19, %c0_26], %39 {strides = array<i32>} : memref<72x32xf32, #tpu.memory_space<vmem>>, vector<4x32xf32>,
    %c48 = arith.constant 48 : index
    %c0_27 = arith.constant 0 : index
    %41 = tpu.strided_load %arg12[%c48, %c0_27] {strides = array<i32: 2, 1>} : memref<128x32xf32, #tpu.memory_space<vmem>>, vector<4x32xf32>
    %c49 = arith.constant 49 : index
    %c0_28 = arith.constant 0 : index
    %42 = tpu.strided_load %arg12[%c49, %c0_28] {strides = array<i32: 2, 1>} : memref<128x32xf32, #tpu.memory_space<vmem>>, vector<4x32xf32>
    %c56 = arith.constant 56 : index
    %c0_29 = arith.constant 0 : index
    %43 = tpu.strided_load %arg12[%c56, %c0_29] {strides = array<i32: 2, 1>} : memref<128x32xf32, #tpu.memory_space<vmem>>, vector<4x32xf32>
    %c57 = arith.constant 57 : index
    %c0_30 = arith.constant 0 : index
    %44 = tpu.strided_load %arg12[%c57, %c0_30] {strides = array<i32: 2, 1>} : memref<128x32xf32, #tpu.memory_space<vmem>>, vector<4x32xf32>
    %45 = arith.maximumf %41, %42 : vector<4x32xf32>
    %46 = arith.maximumf %43, %44 : vector<4x32xf32>
    %47 = arith.maximumf %45, %46 : vector<4x32xf32>
    %c25_31 = arith.constant 25 : index
    %c0_32 = arith.constant 0 : index
    %48 = vector.load %arg13[%c25_31, %c0_32] : memref<72x32xf32, #tpu.memory_space<vmem>>, vector<4x32xf32>
    tpu.vector_store %arg13[%c25_31, %c0_32], %47 {strides = array<i32>} : memref<72x32xf32, #tpu.memory_space<vmem>>, vector<4x32xf32>,
    %c64 = arith.constant 64 : index
    %c0_33 = arith.constant 0 : index
    %49 = tpu.strided_load %arg12[%c64, %c0_33] {strides = array<i32: 2, 1>} : memref<128x32xf32, #tpu.memory_space<vmem>>, vector<4x32xf32>
    %c65 = arith.constant 65 : index
    %c0_34 = arith.constant 0 : index
    %50 = tpu.strided_load %arg12[%c65, %c0_34] {strides = array<i32: 2, 1>} : memref<128x32xf32, #tpu.memory_space<vmem>>, vector<4x32xf32>
    %c72 = arith.constant 72 : index
    %c0_35 = arith.constant 0 : index
    %51 = tpu.strided_load %arg12[%c72, %c0_35] {strides = array<i32: 2, 1>} : memref<128x32xf32, #tpu.memory_space<vmem>>, vector<4x32xf32>
    %c73 = arith.constant 73 : index
    %c0_36 = arith.constant 0 : index
    %52 = tpu.strided_load %arg12[%c73, %c0_36] {strides = array<i32: 2, 1>} : memref<128x32xf32, #tpu.memory_space<vmem>>, vector<4x32xf32>
    %53 = arith.maximumf %49, %50 : vector<4x32xf32>
    %54 = arith.maximumf %51, %52 : vector<4x32xf32>
    %55 = arith.maximumf %53, %54 : vector<4x32xf32>
    %c43 = arith.constant 43 : index
    %c0_37 = arith.constant 0 : index
    %56 = vector.load %arg13[%c43, %c0_37] : memref<72x32xf32, #tpu.memory_space<vmem>>, vector<4x32xf32>
    tpu.vector_store %arg13[%c43, %c0_37], %55 {strides = array<i32>} : memref<72x32xf32, #tpu.memory_space<vmem>>, vector<4x32xf32>,
    %c80 = arith.constant 80 : index
    %c0_38 = arith.constant 0 : index
    %57 = tpu.strided_load %arg12[%c80, %c0_38] {strides = array<i32: 2, 1>} : memref<128x32xf32, #tpu.memory_space<vmem>>, vector<4x32xf32>
    %c81 = arith.constant 81 : index
    %c0_39 = arith.constant 0 : index
    %58 = tpu.strided_load %arg12[%c81, %c0_39] {strides = array<i32: 2, 1>} : memref<128x32xf32, #tpu.memory_space<vmem>>, vector<4x32xf32>
    %c88 = arith.constant 88 : index
    %c0_40 = arith.constant 0 : index
    %59 = tpu.strided_load %arg12[%c88, %c0_40] {strides = array<i32: 2, 1>} : memref<128x32xf32, #tpu.memory_space<vmem>>, vector<4x32xf32>
    %c89 = arith.constant 89 : index
    %c0_41 = arith.constant 0 : index
    %60 = tpu.strided_load %arg12[%c89, %c0_41] {strides = array<i32: 2, 1>} : memref<128x32xf32, #tpu.memory_space<vmem>>, vector<4x32xf32>
    %61 = arith.maximumf %57, %58 : vector<4x32xf32>
    %62 = arith.maximumf %59, %60 : vector<4x32xf32>
    %63 = arith.maximumf %61, %62 : vector<4x32xf32>
    %c49_42 = arith.constant 49 : index
    %c0_43 = arith.constant 0 : index
    %64 = vector.load %arg13[%c49_42, %c0_43] : memref<72x32xf32, #tpu.memory_space<vmem>>, vector<4x32xf32>
    tpu.vector_store %arg13[%c49_42, %c0_43], %63 {strides = array<i32>} : memref<72x32xf32, #tpu.memory_space<vmem>>, vector<4x32xf32>,
    %c96 = arith.constant 96 : index
    %c0_44 = arith.constant 0 : index
    %65 = tpu.strided_load %arg12[%c96, %c0_44] {strides = array<i32: 2, 1>} : memref<128x32xf32, #tpu.memory_space<vmem>>, vector<4x32xf32>
    %c97 = arith.constant 97 : index
    %c0_45 = arith.constant 0 : index
    %66 = tpu.strided_load %arg12[%c97, %c0_45] {strides = array<i32: 2, 1>} : memref<128x32xf32, #tpu.memory_space<vmem>>, vector<4x32xf32>
    %c104 = arith.constant 104 : index
    %c0_46 = arith.constant 0 : index
    %67 = tpu.strided_load %arg12[%c104, %c0_46] {strides = array<i32: 2, 1>} : memref<128x32xf32, #tpu.memory_space<vmem>>, vector<4x32xf32>
    %c105 = arith.constant 105 : index
    %c0_47 = arith.constant 0 : index
    %68 = tpu.strided_load %arg12[%c105, %c0_47] {strides = array<i32: 2, 1>} : memref<128x32xf32, #tpu.memory_space<vmem>>, vector<4x32xf32>
    %69 = arith.maximumf %65, %66 : vector<4x32xf32>
    %70 = arith.maximumf %67, %68 : vector<4x32xf32>
    %71 = arith.maximumf %69, %70 : vector<4x32xf32>
    %c55 = arith.constant 55 : index
    %c0_48 = arith.constant 0 : index
    %72 = vector.load %arg13[%c55, %c0_48] : memref<72x32xf32, #tpu.memory_space<vmem>>, vector<4x32xf32>
    tpu.vector_store %arg13[%c55, %c0_48], %71 {strides = array<i32>} : memref<72x32xf32, #tpu.memory_space<vmem>>, vector<4x32xf32>,
    %c112 = arith.constant 112 : index
    %c0_49 = arith.constant 0 : index
    %73 = tpu.strided_load %arg12[%c112, %c0_49] {strides = array<i32: 2, 1>} : memref<128x32xf32, #tpu.memory_space<vmem>>, vector<4x32xf32>
    %c113 = arith.constant 113 : index
    %c0_50 = arith.constant 0 : index
    %74 = tpu.strided_load %arg12[%c113, %c0_50] {strides = array<i32: 2, 1>} : memref<128x32xf32, #tpu.memory_space<vmem>>, vector<4x32xf32>
    %c120 = arith.constant 120 : index
    %c0_51 = arith.constant 0 : index
    %75 = tpu.strided_load %arg12[%c120, %c0_51] {strides = array<i32: 2, 1>} : memref<128x32xf32, #tpu.memory_space<vmem>>, vector<4x32xf32>
    %c121 = arith.constant 121 : index
    %c0_52 = arith.constant 0 : index
    %76 = tpu.strided_load %arg12[%c121, %c0_52] {strides = array<i32: 2, 1>} : memref<128x32xf32, #tpu.memory_space<vmem>>, vector<4x32xf32>
    %77 = arith.maximumf %73, %74 : vector<4x32xf32>
    %78 = arith.maximumf %75, %76 : vector<4x32xf32>
    %79 = arith.maximumf %77, %78 : vector<4x32xf32>
    %c61 = arith.constant 61 : index
    %c0_53 = arith.constant 0 : index
    %80 = vector.load %arg13[%c61, %c0_53] : memref<72x32xf32, #tpu.memory_space<vmem>>, vector<4x32xf32>
    tpu.vector_store %arg13[%c61, %c0_53], %79 {strides = array<i32>} : memref<72x32xf32, #tpu.memory_space<vmem>>, vector<4x32xf32>,
    %c0_54 = arith.constant 0 : index
    %c0_55 = arith.constant 0 : index
    %81 = vector.load %arg13[%c0_54, %c0_55] : memref<72x32xf32, #tpu.memory_space<vmem>>, vector<58x32xf32>
    %c1_56 = arith.constant 1 : index
    %c0_57 = arith.constant 0 : index
    %82 = vector.load %arg13[%c1_56, %c0_57] : memref<72x32xf32, #tpu.memory_space<vmem>>, vector<58x32xf32>
    %c2 = arith.constant 2 : index
    %c0_58 = arith.constant 0 : index
    %83 = vector.load %arg13[%c2, %c0_58] : memref<72x32xf32, #tpu.memory_space<vmem>>, vector<58x32xf32>
    %c6 = arith.constant 6 : index
    %c0_59 = arith.constant 0 : index
    %84 = vector.load %arg13[%c6, %c0_59] : memref<72x32xf32, #tpu.memory_space<vmem>>, vector<58x32xf32>
    %c7_60 = arith.constant 7 : index
    %c0_61 = arith.constant 0 : index
    %85 = vector.load %arg13[%c7_60, %c0_61] : memref<72x32xf32, #tpu.memory_space<vmem>>, vector<58x32xf32>
    %c8_62 = arith.constant 8 : index
    %c0_63 = arith.constant 0 : index
    %86 = vector.load %arg13[%c8_62, %c0_63] : memref<72x32xf32, #tpu.memory_space<vmem>>, vector<58x32xf32>
    %c12 = arith.constant 12 : index
    %c0_64 = arith.constant 0 : index
    %87 = vector.load %arg13[%c12, %c0_64] : memref<72x32xf32, #tpu.memory_space<vmem>>, vector<58x32xf32>
    %c13_65 = arith.constant 13 : index
    %c0_66 = arith.constant 0 : index
    %88 = vector.load %arg13[%c13_65, %c0_66] : memref<72x32xf32, #tpu.memory_space<vmem>>, vector<58x32xf32>
    %c14 = arith.constant 14 : index
    %c0_67 = arith.constant 0 : index
    %89 = vector.load %arg13[%c14, %c0_67] : memref<72x32xf32, #tpu.memory_space<vmem>>, vector<58x32xf32>
    %90 = tpu.concatenate %81, %82, %83, %84, %85, %86, %87, %88, %89 in 1 : vector<58x32xf32>, vector<58x32xf32>, vector<58x32xf32>, vector<58x32xf32>, vector<58x32xf32>, vector<58x32xf32>, vector<58x32xf32>, vector<58x32xf32>, vector<58x32xf32> -> vector<58x288xf32>
    %c0_68 = arith.constant 0 : index
    %c0_69 = arith.constant 0 : index
    %91 = vector.load %arg3[%c0_68, %c0_69] : memref<288x64xf32, #tpu.memory_space<vmem>>, vector<288x64xf32>
    %cst_70 = arith.constant dense<0.000000e+00> : vector<58x64xf32>
    %92 = tpu.matmul %90, %91, %cst_70 {dimension_numbers = #tpu.dot_dimension_numbers<[1], [0], [0], [1], [0, 0, 1, 1], [], []>} : vector<58x288xf32>, vector<288x64xf32>, vector<58x64xf32> -> vector<58x64xf32>
    %c0_71 = arith.constant 0 : index
    %c0_72 = arith.constant 0 : index
    %93 = vector.load %arg4[%c0_71, %c0_72] : memref<1x64xf32, #tpu.memory_space<vmem>>, vector<1x64xf32>
    %94 = vector.broadcast %93 : vector<1x64xf32> to vector<58x64xf32>
    %95 = arith.addf %92, %94 : vector<58x64xf32>
    %cst_73 = arith.constant 0.000000e+00 : f32
    %96 = vector.broadcast %cst_73 : f32 to vector<58x64xf32>
    %97 = arith.maximumf %95, %96 : vector<58x64xf32>
    %c0_74 = arith.constant 0 : index
    %c0_75 = arith.constant 0 : index
    %98 = vector.load %arg14[%c0_74, %c0_75] : memref<58x64xf32, #tpu.memory_space<vmem>>, vector<58x64xf32>
    tpu.vector_store %arg14[%c0_74, %c0_75], %97 {strides = array<i32>} : memref<58x64xf32, #tpu.memory_space<vmem>>, vector<58x64xf32>,
    %cst_76 = arith.constant 0.000000e+00 : f32
    %99 = vector.broadcast %cst_76 : f32 to vector<32x64xf32>
    %c0_77 = arith.constant 0 : index
    %c0_78 = arith.constant 0 : index
    %100 = vector.load %arg15[%c0_77, %c0_78] : memref<32x64xf32, #tpu.memory_space<vmem>>, vector<32x64xf32>
    tpu.vector_store %arg15[%c0_77, %c0_78], %99 {strides = array<i32>} : memref<32x64xf32, #tpu.memory_space<vmem>>, vector<32x64xf32>,
    %c0_79 = arith.constant 0 : index
    %c0_80 = arith.constant 0 : index
    %101 = tpu.strided_load %arg14[%c0_79, %c0_80] {strides = array<i32: 2, 1>} : memref<58x64xf32, #tpu.memory_space<vmem>>, vector<2x64xf32>
    %c1_81 = arith.constant 1 : index
    %c0_82 = arith.constant 0 : index
    %102 = tpu.strided_load %arg14[%c1_81, %c0_82] {strides = array<i32: 2, 1>} : memref<58x64xf32, #tpu.memory_space<vmem>>, vector<2x64xf32>
    %c6_83 = arith.constant 6 : index
    %c0_84 = arith.constant 0 : index
    %103 = tpu.strided_load %arg14[%c6_83, %c0_84] {strides = array<i32: 2, 1>} : memref<58x64xf32, #tpu.memory_space<vmem>>, vector<2x64xf32>
    %c7_85 = arith.constant 7 : index
    %c0_86 = arith.constant 0 : index
    %104 = tpu.strided_load %arg14[%c7_85, %c0_86] {strides = array<i32: 2, 1>} : memref<58x64xf32, #tpu.memory_space<vmem>>, vector<2x64xf32>
    %105 = arith.maximumf %101, %102 : vector<2x64xf32>
    %106 = arith.maximumf %103, %104 : vector<2x64xf32>
    %107 = arith.maximumf %105, %106 : vector<2x64xf32>
    %c5 = arith.constant 5 : index
    %c0_87 = arith.constant 0 : index
    %108 = vector.load %arg15[%c5, %c0_87] : memref<32x64xf32, #tpu.memory_space<vmem>>, vector<2x64xf32>
    tpu.vector_store %arg15[%c5, %c0_87], %107 {strides = array<i32>} : memref<32x64xf32, #tpu.memory_space<vmem>>, vector<2x64xf32>,
    %c12_88 = arith.constant 12 : index
    %c0_89 = arith.constant 0 : index
    %109 = tpu.strided_load %arg14[%c12_88, %c0_89] {strides = array<i32: 2, 1>} : memref<58x64xf32, #tpu.memory_space<vmem>>, vector<2x64xf32>
    %c13_90 = arith.constant 13 : index
    %c0_91 = arith.constant 0 : index
    %110 = tpu.strided_load %arg14[%c13_90, %c0_91] {strides = array<i32: 2, 1>} : memref<58x64xf32, #tpu.memory_space<vmem>>, vector<2x64xf32>
    %c18 = arith.constant 18 : index
    %c0_92 = arith.constant 0 : index
    %111 = tpu.strided_load %arg14[%c18, %c0_92] {strides = array<i32: 2, 1>} : memref<58x64xf32, #tpu.memory_space<vmem>>, vector<2x64xf32>
    %c19_93 = arith.constant 19 : index
    %c0_94 = arith.constant 0 : index
    %112 = tpu.strided_load %arg14[%c19_93, %c0_94] {strides = array<i32: 2, 1>} : memref<58x64xf32, #tpu.memory_space<vmem>>, vector<2x64xf32>
    %113 = arith.maximumf %109, %110 : vector<2x64xf32>
    %114 = arith.maximumf %111, %112 : vector<2x64xf32>
    %115 = arith.maximumf %113, %114 : vector<2x64xf32>
    %c9_95 = arith.constant 9 : index
    %c0_96 = arith.constant 0 : index
    %116 = vector.load %arg15[%c9_95, %c0_96] : memref<32x64xf32, #tpu.memory_space<vmem>>, vector<2x64xf32>
    tpu.vector_store %arg15[%c9_95, %c0_96], %115 {strides = array<i32>} : memref<32x64xf32, #tpu.memory_space<vmem>>, vector<2x64xf32>,
    %c36 = arith.constant 36 : index
    %c0_97 = arith.constant 0 : index
    %117 = tpu.strided_load %arg14[%c36, %c0_97] {strides = array<i32: 2, 1>} : memref<58x64xf32, #tpu.memory_space<vmem>>, vector<2x64xf32>
    %c37 = arith.constant 37 : index
    %c0_98 = arith.constant 0 : index
    %118 = tpu.strided_load %arg14[%c37, %c0_98] {strides = array<i32: 2, 1>} : memref<58x64xf32, #tpu.memory_space<vmem>>, vector<2x64xf32>
    %c42 = arith.constant 42 : index
    %c0_99 = arith.constant 0 : index
    %119 = tpu.strided_load %arg14[%c42, %c0_99] {strides = array<i32: 2, 1>} : memref<58x64xf32, #tpu.memory_space<vmem>>, vector<2x64xf32>
    %c43_100 = arith.constant 43 : index
    %c0_101 = arith.constant 0 : index
    %120 = tpu.strided_load %arg14[%c43_100, %c0_101] {strides = array<i32: 2, 1>} : memref<58x64xf32, #tpu.memory_space<vmem>>, vector<2x64xf32>
    %121 = arith.maximumf %117, %118 : vector<2x64xf32>
    %122 = arith.maximumf %119, %120 : vector<2x64xf32>
    %123 = arith.maximumf %121, %122 : vector<2x64xf32>
    %c21 = arith.constant 21 : index
    %c0_102 = arith.constant 0 : index
    %124 = vector.load %arg15[%c21, %c0_102] : memref<32x64xf32, #tpu.memory_space<vmem>>, vector<2x64xf32>
    tpu.vector_store %arg15[%c21, %c0_102], %123 {strides = array<i32>} : memref<32x64xf32, #tpu.memory_space<vmem>>, vector<2x64xf32>,
    %c48_103 = arith.constant 48 : index
    %c0_104 = arith.constant 0 : index
    %125 = tpu.strided_load %arg14[%c48_103, %c0_104] {strides = array<i32: 2, 1>} : memref<58x64xf32, #tpu.memory_space<vmem>>, vector<2x64xf32>
    %c49_105 = arith.constant 49 : index
    %c0_106 = arith.constant 0 : index
    %126 = tpu.strided_load %arg14[%c49_105, %c0_106] {strides = array<i32: 2, 1>} : memref<58x64xf32, #tpu.memory_space<vmem>>, vector<2x64xf32>
    %c54 = arith.constant 54 : index
    %c0_107 = arith.constant 0 : index
    %127 = tpu.strided_load %arg14[%c54, %c0_107] {strides = array<i32: 2, 1>} : memref<58x64xf32, #tpu.memory_space<vmem>>, vector<2x64xf32>
    %c55_108 = arith.constant 55 : index
    %c0_109 = arith.constant 0 : index
    %128 = tpu.strided_load %arg14[%c55_108, %c0_109] {strides = array<i32: 2, 1>} : memref<58x64xf32, #tpu.memory_space<vmem>>, vector<2x64xf32>
    %129 = arith.maximumf %125, %126 : vector<2x64xf32>
    %130 = arith.maximumf %127, %128 : vector<2x64xf32>
    %131 = arith.maximumf %129, %130 : vector<2x64xf32>
    %c25_110 = arith.constant 25 : index
    %c0_111 = arith.constant 0 : index
    %132 = vector.load %arg15[%c25_110, %c0_111] : memref<32x64xf32, #tpu.memory_space<vmem>>, vector<2x64xf32>
    tpu.vector_store %arg15[%c25_110, %c0_111], %131 {strides = array<i32>} : memref<32x64xf32, #tpu.memory_space<vmem>>, vector<2x64xf32>,
    %c0_i32_112 = arith.constant 0 : i32
    %133 = tpu.memref_slice %arg21[%c0_i32_112] : memref<3x!tpu.dma_semaphore, #tpu.memory_space<semaphore_mem>> -> memref<1x!tpu.dma_semaphore, #tpu.memory_space<semaphore_mem>>
    %134 = tpu.memref_squeeze %133 : memref<1x!tpu.dma_semaphore, #tpu.memory_space<semaphore_mem>> -> memref<!tpu.dma_semaphore, #tpu.memory_space<semaphore_mem>>
    tpu.wait_dma2 semaphore(%134 : memref<!tpu.dma_semaphore, #tpu.memory_space<semaphore_mem>>) src(%arg8 : memref<576x128xbf16, #tpu.memory_space<any>>) dst(%arg18 : memref<576x128xbf16, #tpu.memory_space<vmem>>)
    %c0_113 = arith.constant 0 : index
    %c0_114 = arith.constant 0 : index
    %135 = vector.load %arg15[%c0_113, %c0_114] : memref<32x64xf32, #tpu.memory_space<vmem>>, vector<22x64xf32>
    %c1_115 = arith.constant 1 : index
    %c0_116 = arith.constant 0 : index
    %136 = vector.load %arg15[%c1_115, %c0_116] : memref<32x64xf32, #tpu.memory_space<vmem>>, vector<22x64xf32>
    %c2_117 = arith.constant 2 : index
    %c0_118 = arith.constant 0 : index
    %137 = vector.load %arg15[%c2_117, %c0_118] : memref<32x64xf32, #tpu.memory_space<vmem>>, vector<22x64xf32>
    %c4 = arith.constant 4 : index
    %c0_119 = arith.constant 0 : index
    %138 = vector.load %arg15[%c4, %c0_119] : memref<32x64xf32, #tpu.memory_space<vmem>>, vector<22x64xf32>
    %c5_120 = arith.constant 5 : index
    %c0_121 = arith.constant 0 : index
    %139 = vector.load %arg15[%c5_120, %c0_121] : memref<32x64xf32, #tpu.memory_space<vmem>>, vector<22x64xf32>
    %c6_122 = arith.constant 6 : index
    %c0_123 = arith.constant 0 : index
    %140 = vector.load %arg15[%c6_122, %c0_123] : memref<32x64xf32, #tpu.memory_space<vmem>>, vector<22x64xf32>
    %c8_124 = arith.constant 8 : index
    %c0_125 = arith.constant 0 : index
    %141 = vector.load %arg15[%c8_124, %c0_125] : memref<32x64xf32, #tpu.memory_space<vmem>>, vector<22x64xf32>
    %c9_126 = arith.constant 9 : index
    %c0_127 = arith.constant 0 : index
    %142 = vector.load %arg15[%c9_126, %c0_127] : memref<32x64xf32, #tpu.memory_space<vmem>>, vector<22x64xf32>
    %c10 = arith.constant 10 : index
    %c0_128 = arith.constant 0 : index
    %143 = vector.load %arg15[%c10, %c0_128] : memref<32x64xf32, #tpu.memory_space<vmem>>, vector<22x64xf32>
    %144 = tpu.concatenate %135, %136, %137, %138, %139, %140, %141, %142, %143 in 1 : vector<22x64xf32>, vector<22x64xf32>, vector<22x64xf32>, vector<22x64xf32>, vector<22x64xf32>, vector<22x64xf32>, vector<22x64xf32>, vector<22x64xf32>, vector<22x64xf32> -> vector<22x576xf32>
    %145 = arith.truncf %144 : vector<22x576xf32> to vector<22x576xbf16>
    %c0_129 = arith.constant 0 : index
    %c0_130 = arith.constant 0 : index
    %146 = vector.load %arg18[%c0_129, %c0_130] : memref<576x128xbf16, #tpu.memory_space<vmem>>, vector<576x128xbf16>
    %cst_131 = arith.constant dense<0.000000e+00> : vector<22x128xf32>
    %147 = tpu.matmul %145, %146, %cst_131 {dimension_numbers = #tpu.dot_dimension_numbers<[1], [0], [0], [1], [0, 0, 1, 1], [], []>} : vector<22x576xbf16>, vector<576x128xbf16>, vector<22x128xf32> -> vector<22x128xf32>
    %c0_132 = arith.constant 0 : index
    %c0_133 = arith.constant 0 : index
    %148 = vector.load %arg5[%c0_132, %c0_133] : memref<1x128xf32, #tpu.memory_space<vmem>>, vector<1x128xf32>
    %149 = vector.broadcast %148 : vector<1x128xf32> to vector<22x128xf32>
    %150 = arith.addf %147, %149 : vector<22x128xf32>
    %cst_134 = arith.constant 0.000000e+00 : f32
    %151 = vector.broadcast %cst_134 : f32 to vector<22x128xf32>
    %152 = arith.maximumf %150, %151 : vector<22x128xf32>
    %c0_135 = arith.constant 0 : index
    %c0_136 = arith.constant 0 : index
    %153 = vector.load %arg16[%c0_135, %c0_136] : memref<22x128xf32, #tpu.memory_space<vmem>>, vector<22x128xf32>
    tpu.vector_store %arg16[%c0_135, %c0_136], %152 {strides = array<i32>} : memref<22x128xf32, #tpu.memory_space<vmem>>, vector<22x128xf32>,
    %c0_137 = arith.constant 0 : index
    %c0_138 = arith.constant 0 : index
    %154 = vector.load %arg16[%c0_137, %c0_138] : memref<22x128xf32, #tpu.memory_space<vmem>>, vector<1x128xf32>
    %c1_139 = arith.constant 1 : index
    %c0_140 = arith.constant 0 : index
    %155 = vector.load %arg16[%c1_139, %c0_140] : memref<22x128xf32, #tpu.memory_space<vmem>>, vector<1x128xf32>
    %156 = arith.maximumf %154, %155 : vector<1x128xf32>
    %c4_141 = arith.constant 4 : index
    %c0_142 = arith.constant 0 : index
    %157 = vector.load %arg16[%c4_141, %c0_142] : memref<22x128xf32, #tpu.memory_space<vmem>>, vector<1x128xf32>
    %c5_143 = arith.constant 5 : index
    %c0_144 = arith.constant 0 : index
    %158 = vector.load %arg16[%c5_143, %c0_144] : memref<22x128xf32, #tpu.memory_space<vmem>>, vector<1x128xf32>
    %159 = arith.maximumf %157, %158 : vector<1x128xf32>
    %160 = arith.maximumf %156, %159 : vector<1x128xf32>
    %c0_145 = arith.constant 0 : index
    %c0_146 = arith.constant 0 : index
    %161 = vector.load %arg17[%c0_145, %c0_146] : memref<2x128xf32, #tpu.memory_space<vmem>>, vector<1x128xf32>
    tpu.vector_store %arg17[%c0_145, %c0_146], %160 {strides = array<i32>} : memref<2x128xf32, #tpu.memory_space<vmem>>, vector<1x128xf32>,
    %c16_147 = arith.constant 16 : index
    %c0_148 = arith.constant 0 : index
    %162 = vector.load %arg16[%c16_147, %c0_148] : memref<22x128xf32, #tpu.memory_space<vmem>>, vector<1x128xf32>
    %c17_149 = arith.constant 17 : index
    %c0_150 = arith.constant 0 : index
    %163 = vector.load %arg16[%c17_149, %c0_150] : memref<22x128xf32, #tpu.memory_space<vmem>>, vector<1x128xf32>
    %164 = arith.maximumf %162, %163 : vector<1x128xf32>
    %c20 = arith.constant 20 : index
    %c0_151 = arith.constant 0 : index
    %165 = vector.load %arg16[%c20, %c0_151] : memref<22x128xf32, #tpu.memory_space<vmem>>, vector<1x128xf32>
    %c21_152 = arith.constant 21 : index
    %c0_153 = arith.constant 0 : index
    %166 = vector.load %arg16[%c21_152, %c0_153] : memref<22x128xf32, #tpu.memory_space<vmem>>, vector<1x128xf32>
    %167 = arith.maximumf %165, %166 : vector<1x128xf32>
    %168 = arith.maximumf %164, %167 : vector<1x128xf32>
    %c1_154 = arith.constant 1 : index
    %c0_155 = arith.constant 0 : index
    %169 = vector.load %arg17[%c1_154, %c0_155] : memref<2x128xf32, #tpu.memory_space<vmem>>, vector<1x128xf32>
    tpu.vector_store %arg17[%c1_154, %c0_155], %168 {strides = array<i32>} : memref<2x128xf32, #tpu.memory_space<vmem>>, vector<1x128xf32>,
    %c1_i32_156 = arith.constant 1 : i32
    %170 = tpu.memref_slice %arg21[%c1_i32_156] : memref<3x!tpu.dma_semaphore, #tpu.memory_space<semaphore_mem>> -> memref<1x!tpu.dma_semaphore, #tpu.memory_space<semaphore_mem>>
    %171 = tpu.memref_squeeze %170 : memref<1x!tpu.dma_semaphore, #tpu.memory_space<semaphore_mem>> -> memref<!tpu.dma_semaphore, #tpu.memory_space<semaphore_mem>>
    tpu.wait_dma2 semaphore(%171 : memref<!tpu.dma_semaphore, #tpu.memory_space<semaphore_mem>>) src(%arg9 : memref<128x256xbf16, #tpu.memory_space<any>>) dst(%arg19 : memref<128x256xbf16, #tpu.memory_space<vmem>>)
    %c0_157 = arith.constant 0 : index
    %c0_158 = arith.constant 0 : index
    %172 = vector.load %arg17[%c0_157, %c0_158] : memref<2x128xf32, #tpu.memory_space<vmem>>, vector<2x128xf32>
    %173 = arith.truncf %172 : vector<2x128xf32> to vector<2x128xbf16>
    %c0_159 = arith.constant 0 : index
    %c0_160 = arith.constant 0 : index
    %174 = vector.load %arg19[%c0_159, %c0_160] : memref<128x256xbf16, #tpu.memory_space<vmem>>, vector<128x256xbf16>
    %cst_161 = arith.constant dense<0.000000e+00> : vector<2x256xf32>
    %175 = tpu.matmul %173, %174, %cst_161 {dimension_numbers = #tpu.dot_dimension_numbers<[1], [0], [0], [1], [0, 0, 1, 1], [], []>} : vector<2x128xbf16>, vector<128x256xbf16>, vector<2x256xf32> -> vector<2x256xf32>
    %c0_162 = arith.constant 0 : index
    %c0_163 = arith.constant 0 : index
    %176 = vector.load %arg6[%c0_162, %c0_163] : memref<1x256xf32, #tpu.memory_space<vmem>>, vector<1x256xf32>
    %177 = vector.broadcast %176 : vector<1x256xf32> to vector<2x256xf32>
    %178 = arith.addf %175, %177 : vector<2x256xf32>
    %cst_164 = arith.constant 0.000000e+00 : f32
    %179 = vector.broadcast %cst_164 : f32 to vector<2x256xf32>
    %180 = arith.maximumf %178, %179 : vector<2x256xf32>
    %c2_i32_165 = arith.constant 2 : i32
    %181 = tpu.memref_slice %arg21[%c2_i32_165] : memref<3x!tpu.dma_semaphore, #tpu.memory_space<semaphore_mem>> -> memref<1x!tpu.dma_semaphore, #tpu.memory_space<semaphore_mem>>
    %182 = tpu.memref_squeeze %181 : memref<1x!tpu.dma_semaphore, #tpu.memory_space<semaphore_mem>> -> memref<!tpu.dma_semaphore, #tpu.memory_space<semaphore_mem>>
    tpu.wait_dma2 semaphore(%182 : memref<!tpu.dma_semaphore, #tpu.memory_space<semaphore_mem>>) src(%arg10 : memref<256x768xbf16, #tpu.memory_space<any>>) dst(%arg20 : memref<256x768xbf16, #tpu.memory_space<vmem>>)
    %183 = arith.truncf %180 : vector<2x256xf32> to vector<2x256xbf16>
    %c0_166 = arith.constant 0 : index
    %c0_167 = arith.constant 0 : index
    %184 = vector.load %arg20[%c0_166, %c0_167] : memref<256x768xbf16, #tpu.memory_space<vmem>>, vector<256x768xbf16>
    %cst_168 = arith.constant dense<0.000000e+00> : vector<2x768xf32>
    %185 = tpu.matmul %183, %184, %cst_168 {dimension_numbers = #tpu.dot_dimension_numbers<[1], [0], [0], [1], [0, 0, 1, 1], [], []>} : vector<2x256xbf16>, vector<256x768xbf16>, vector<2x768xf32> -> vector<2x768xf32>
    %c0_169 = arith.constant 0 : index
    %c0_170 = arith.constant 0 : index
    %186 = vector.load %arg7[%c0_169, %c0_170] : memref<1x768xf32, #tpu.memory_space<vmem>>, vector<1x768xf32>
    %187 = vector.broadcast %186 : vector<1x768xf32> to vector<2x768xf32>
    %188 = arith.addf %185, %187 : vector<2x768xf32>
    %cst_171 = arith.constant dense<0xFF800000> : vector<2xf32>
    %189 = vector.multi_reduction <maximumf>, %188, %cst_171 [1] : vector<2x768xf32> to vector<2xf32>
    %190 = vector.shape_cast %189 : vector<2xf32> to vector<2x1xf32>
    %191 = vector.broadcast %190 : vector<2x1xf32> to vector<2x768xf32>
    %192 = arith.subf %188, %191 : vector<2x768xf32>
    %193 = math.exp %192 : vector<2x768xf32>
    %cst_172 = arith.constant dense<0.000000e+00> : vector<2xf32>
    %194 = vector.multi_reduction <add>, %193, %cst_172 [1] : vector<2x768xf32> to vector<2xf32>
    %195 = vector.shape_cast %194 : vector<2xf32> to vector<2x1xf32>
    %196 = tpu.reciprocal %195 : vector<2x1xf32> -> vector<2x1xf32>
    %197 = vector.broadcast %196 : vector<2x1xf32> to vector<2x768xf32>
    %198 = arith.mulf %193, %197 : vector<2x768xf32>
    %c0_173 = arith.constant 0 : index
    %c0_174 = arith.constant 0 : index
    %199 = vector.load %arg11[%c0_173, %c0_174] : memref<2x768xf32, #tpu.memory_space<vmem>>, vector<2x768xf32>
    tpu.vector_store %arg11[%c0_173, %c0_174], %198 {strides = array<i32>} : memref<2x768xf32, #tpu.memory_space<vmem>>, vector<2x768xf32>,
    return
  }
}

</mosaic_0001>

<bundles_post_ra>
// kernel: net_forward.1
= control target key start
LH: loop header
LB: loop body
LE: loop exit
PB: predicated region body
PF: predicated region fallthrough
CT: control target
= control target key end

     0   :  { %16 = vsyncpa [#allocation13], 0  ;;  %s4827_s0 = inlined_call_operand.vmem [shape: f32[128,54], index: 0, kind: input, shape index: {}]   ;;  %s4828_s1 = inlined_call_operand.vmem [shape: f32[54,32], index: 1, kind: input, shape index: {}]   ;;  %s4829_s2 = inlined_call_operand.vmem [shape: f32[1,32], index: 2, kind: input, shape index: {}]   ;;  %s4830_s3 = inlined_call_operand.vmem [shape: f32[288,64], index: 3, kind: input, shape index: {}]   ;;  %s4831_s4 = inlined_call_operand.vmem [shape: f32[1,64], index: 4, kind: input, shape index: {}]   ;;  %s4832_s5 = inlined_call_operand.vmem [shape: f32[1,128], index: 5, kind: input, shape index: {}]   ;;  %s4833_s6 = inlined_call_operand.vmem [shape: f32[1,256], index: 6, kind: input, shape index: {}]   ;;  %s4834_s7 = inlined_call_operand.vmem [shape: f32[1,768], index: 7, kind: input, shape index: {}]   ;;  %s4835_s8 = inlined_call_operand.vmem [shape: bf16[576,128], index: 8, kind: input, shape index: {}]   ;;  %s4836_s9 = inlined_call_operand.vmem [shape: bf16[128,256], index: 9, kind: input, shape index: {}]   ;;  %s4837_s10 = inlined_call_operand.vmem [shape: bf16[256,768], index: 10, kind: input, shape index: {}]   ;;  %s4838_s11 = inlined_call_operand.hbm [shape: f32[2,768], index: 11, kind: output, shape index: {}]  }
   0x1   :  { %v3521_v0 = vld [vmem:[%s4835_s8] sm:$0xff]  ;;  %v3526_v1 = vld [vmem:[%s4835_s8 + $0x8] sm:$0xff]  ;;  %v3531_v2 = vld [vmem:[%s4835_s8 + $0x10] sm:$0xff] }
   0x2   :  { %v3536_v3 = vld [vmem:[%s4835_s8 + $0x18] sm:$0xff]  ;;  %v3541_v4 = vld [vmem:[%s4835_s8 + $0x20] sm:$0xff]  ;;  %v3546_v5 = vld [vmem:[%s4835_s8 + $0x28] sm:$0xff] }
   0x3   :  { %v3551_v6 = vld [vmem:[%s4835_s8 + $0x30] sm:$0xff]  ;;  %v3556_v7 = vld [vmem:[%s4835_s8 + $0x38] sm:$0xff]  ;;  %v3561_v8 = vld [vmem:[%s4835_s8 + $0x40] sm:$0xff] }
   0x4   :  { %v3566_v9 = vld [vmem:[%s4835_s8 + $0x48] sm:$0xff]  ;;  %v3571_v10 = vld [vmem:[%s4835_s8 + $0x50] sm:$0xff]  ;;  %v3576_v11 = vld [vmem:[%s4835_s8 + $0x58] sm:$0xff] }
   0x5   :  { %v3581_v12 = vld [vmem:[%s4835_s8 + $0x60] sm:$0xff]  ;;  %v3586_v13 = vld [vmem:[%s4835_s8 + $0x68] sm:$0xff]  ;;  %v3591_v14 = vld [vmem:[%s4835_s8 + $0x70] sm:$0xff] }
   0x6   :  { %v3596_v15 = vld [vmem:[%s4835_s8 + $0x78] sm:$0xff]  ;;  %v3601_v16 = vld [vmem:[%s4835_s8 + $0x80] sm:$0xff]  ;;  %v3606_v17 = vld [vmem:[%s4835_s8 + $0x88] sm:$0xff] }
   0x7   :  { %v3611_v18 = vld [vmem:[%s4835_s8 + $0x90] sm:$0xff]  ;;  %v3616_v19 = vld [vmem:[%s4835_s8 + $0x98] sm:$0xff]  ;;  %v3621_v20 = vld [vmem:[%s4835_s8 + $0xa0] sm:$0xff] }
   0x8   :  { %v3626_v21 = vld [vmem:[%s4835_s8 + $0xa8] sm:$0xff]  ;;  %v3631_v22 = vld [vmem:[%s4835_s8 + $0xb0] sm:$0xff]  ;;  %v3636_v23 = vld [vmem:[%s4835_s8 + $0xb8] sm:$0xff] }
   0x9   :  { %v3641_v24 = vld [vmem:[%s4835_s8 + $0xc0] sm:$0xff]  ;;  %v3646_v25 = vld [vmem:[%s4835_s8 + $0xc8] sm:$0xff]  ;;  %v3651_v26 = vld [vmem:[%s4835_s8 + $0xd0] sm:$0xff] }
   0xa   :  { %v3656_v27 = vld [vmem:[%s4835_s8 + $0xd8] sm:$0xff]  ;;  %v3661_v28 = vld [vmem:[%s4835_s8 + $0xe0] sm:$0xff]  ;;  %v3666_v29 = vld [vmem:[%s4835_s8 + $0xe8] sm:$0xff] }
   0xb   :  { %v3671_v30 = vld [vmem:[%s4835_s8 + $0xf0] sm:$0xff]  ;;  %v3676_v31 = vld [vmem:[%s4835_s8 + $0xf8] sm:$0xff]  ;;  %v3681_v32 = vld [vmem:[%s4835_s8 + $0x100] sm:$0xff] }
   0xc   :  { %v3686_v33 = vld [vmem:[%s4835_s8 + $0x108] sm:$0xff]  ;;  %v3691_v34 = vld [vmem:[%s4835_s8 + $0x110] sm:$0xff]  ;;  %v3696_v35 = vld [vmem:[%s4835_s8 + $0x118] sm:$0xff] }
   0xd   :  { %145 = vsyncadd [#allocation11], 4608  ;;  %v164_v36 = vld [vmem:[%s4836_s9] sm:$0xf]  ;;  %v166_v37 = vld [vmem:[%s4836_s9 + $0x8] sm:$0xf] }
   0xe   :  { %165 = vst [vmem:[#allocation9] sm:$0xf] %v164_v36  ;;  %167 = vst [vmem:[#allocation9 + $0x4] sm:$0xf] %v166_v37  ;;  %v168_v38 = vld [vmem:[%s4836_s9 + $0x4] sm:$0xf] }
   0xf   :  { %v170_v39 = vld [vmem:[%s4836_s9 + $0xc] sm:$0xff]   ;;  %v174_v40 = vld [vmem:[%s4836_s9 + $0x18] sm:$0xf]  ;;  %169 = vst [vmem:[#allocation9 + $0x8] sm:$0xf] %v168_v38  ;;  %v178_v42 = vld [vmem:[%s4836_s9 + $0x1c] sm:$0xff]  }
  0x10   :  { %171 = vst [vmem:[#allocation9 + $0xc] sm:$0xff] %v170_v39   ;;  %175 = vst [vmem:[#allocation9 + $0x14] sm:$0xf] %v174_v40  ;;  %v176_v41 = vld [vmem:[%s4836_s9 + $0x14] sm:$0xf]  ;;  %v186_v45 = vld [vmem:[%s4836_s9 + $0x2c] sm:$0xff]  }
  0x11   :  { %v182_v43 = vld [vmem:[%s4836_s9 + $0x28] sm:$0xf]  ;;  %177 = vst [vmem:[#allocation9 + $0x18] sm:$0xf] %v176_v41  ;;  %179 = vst [vmem:[#allocation9 + $0x1c] sm:$0xff] %v178_v42   ;;  %v194_v48 = vld [vmem:[%s4836_s9 + $0x3c] sm:$0xff]  }
  0x12   :  { %183 = vst [vmem:[#allocation9 + $0x24] sm:$0xf] %v182_v43  ;;  %v184_v44 = vld [vmem:[%s4836_s9 + $0x24] sm:$0xf]  ;;  %v190_v46 = vld [vmem:[%s4836_s9 + $0x38] sm:$0xf] }
  0x13   :  { %185 = vst [vmem:[#allocation9 + $0x28] sm:$0xf] %v184_v44  ;;  %187 = vst [vmem:[#allocation9 + $0x2c] sm:$0xff] %v186_v45   ;;  %v192_v47 = vld [vmem:[%s4836_s9 + $0x34] sm:$0xf]  ;;  %v202_v51 = vld [vmem:[%s4836_s9 + $0x4c] sm:$0xff]  }
  0x14   :  { %191 = vst [vmem:[#allocation9 + $0x34] sm:$0xf] %v190_v46  ;;  %v198_v49 = vld [vmem:[%s4836_s9 + $0x48] sm:$0xf]  ;;  %193 = vst [vmem:[#allocation9 + $0x38] sm:$0xf] %v192_v47 }
  0x15   :  { %195 = vst [vmem:[#allocation9 + $0x3c] sm:$0xff] %v194_v48   ;;  %199 = vst [vmem:[#allocation9 + $0x44] sm:$0xf] %v198_v49  ;;  %v200_v50 = vld [vmem:[%s4836_s9 + $0x44] sm:$0xf]  ;;  %v210_v54 = vld [vmem:[%s4836_s9 + $0x5c] sm:$0xff]  }
  0x16   :  { %v206_v52 = vld [vmem:[%s4836_s9 + $0x58] sm:$0xf]  ;;  %201 = vst [vmem:[#allocation9 + $0x48] sm:$0xf] %v200_v50  ;;  %203 = vst [vmem:[#allocation9 + $0x4c] sm:$0xff] %v202_v51   ;;  %v218_v57 = vld [vmem:[%s4836_s9 + $0x6c] sm:$0xff]  }
  0x17   :  { %207 = vst [vmem:[#allocation9 + $0x54] sm:$0xf] %v206_v52  ;;  %v208_v53 = vld [vmem:[%s4836_s9 + $0x54] sm:$0xf]  ;;  %v214_v55 = vld [vmem:[%s4836_s9 + $0x68] sm:$0xf] }
  0x18   :  { %209 = vst [vmem:[#allocation9 + $0x58] sm:$0xf] %v208_v53  ;;  %211 = vst [vmem:[#allocation9 + $0x5c] sm:$0xff] %v210_v54   ;;  %v216_v56 = vld [vmem:[%s4836_s9 + $0x64] sm:$0xf] }
  0x19   :  { %215 = vst [vmem:[#allocation9 + $0x64] sm:$0xf] %v214_v55  ;;  %v222_v58 = vld [vmem:[%s4836_s9 + $0x78] sm:$0xf]  ;;  %217 = vst [vmem:[#allocation9 + $0x68] sm:$0xf] %v216_v56 }
  0x1a   :  { %219 = vst [vmem:[#allocation9 + $0x6c] sm:$0xff] %v218_v57   ;;  %223 = vst [vmem:[#allocation9 + $0x74] sm:$0xf] %v222_v58  ;;  %v224_v59 = vld [vmem:[%s4836_s9 + $0x74] sm:$0xf] }
  0x1b   :  { %v226_v60 = vld [vmem:[%s4836_s9 + $0x7c] sm:$0xf]  ;;  %225 = vst [vmem:[#allocation9 + $0x78] sm:$0xf] %v224_v59 }
  0x1c   :  { %227 = vst [vmem:[#allocation9 + $0x7c] sm:$0xf] %v226_v60 }
  0x1d   :  { %322 = vsyncadd [#allocation11 + $0x1], 2048  ;;  %v341_v61 = vld [vmem:[%s4837_s10] sm:$0xf]  ;;  %v343_v62 = vld [vmem:[%s4837_s10 + $0x18] sm:$0xf] }
  0x1e   :  { %342 = vst [vmem:[#allocation10] sm:$0xf] %v341_v61  ;;  %344 = vst [vmem:[#allocation10 + $0x4] sm:$0xf] %v343_v62  ;;  %v345_v63 = vld [vmem:[%s4837_s10 + $0x4] sm:$0xf] }
  0x1f   :  { %v347_v36 = vld [vmem:[%s4837_s10 + $0x1c] sm:$0xf]  ;;  %v349_v37 = vld [vmem:[%s4837_s10 + $0x8] sm:$0xf]  ;;  %346 = vst [vmem:[#allocation10 + $0x8] sm:$0xf] %v345_v63 }
  0x20   :  { %348 = vst [vmem:[#allocation10 + $0xc] sm:$0xf] %v347_v36  ;;  %350 = vst [vmem:[#allocation10 + $0x10] sm:$0xf] %v349_v37  ;;  %v351_v38 = vld [vmem:[%s4837_s10 + $0x20] sm:$0xf] }
  0x21   :  { %v353_v39 = vld [vmem:[%s4837_s10 + $0xc] sm:$0xf]  ;;  %v355_v40 = vld [vmem:[%s4837_s10 + $0x24] sm:$0xf]  ;;  %352 = vst [vmem:[#allocation10 + $0x14] sm:$0xf] %v351_v38 }
  0x22   :  { %354 = vst [vmem:[#allocation10 + $0x18] sm:$0xf] %v353_v39  ;;  %356 = vst [vmem:[#allocation10 + $0x1c] sm:$0xf] %v355_v40  ;;  %v357_v41 = vld [vmem:[%s4837_s10 + $0x10] sm:$0xf] }
  0x23   :  { %v359_v42 = vld [vmem:[%s4837_s10 + $0x28] sm:$0xf]  ;;  %v361_v43 = vld [vmem:[%s4837_s10 + $0x14] sm:$0xf]  ;;  %358 = vst [vmem:[#allocation10 + $0x20] sm:$0xf] %v357_v41 }
  0x24   :  { %360 = vst [vmem:[#allocation10 + $0x24] sm:$0xf] %v359_v42  ;;  %362 = vst [vmem:[#allocation10 + $0x28] sm:$0xf] %v361_v43  ;;  %v363_v44 = vld [vmem:[%s4837_s10 + $0x2c] sm:$0xff]   ;;  %v387_v55 = vld [vmem:[%s4837_s10 + $0x5c] sm:$0xff]  }
  0x25   :  { %v367_v45 = vld [vmem:[%s4837_s10 + $0x48] sm:$0xf]  ;;  %v369_v46 = vld [vmem:[%s4837_s10 + $0x34] sm:$0xf]  ;;  %364 = vst [vmem:[#allocation10 + $0x2c] sm:$0xff] %v363_v44   ;;  %388 = vst [vmem:[#allocation10 + $0x5c] sm:$0xff] %v387_v55  }
  0x26   :  { %368 = vst [vmem:[#allocation10 + $0x34] sm:$0xf] %v367_v45  ;;  %370 = vst [vmem:[#allocation10 + $0x38] sm:$0xf] %v369_v46  ;;  %v371_v47 = vld [vmem:[%s4837_s10 + $0x4c] sm:$0xf] }
  0x27   :  { %v373_v48 = vld [vmem:[%s4837_s10 + $0x38] sm:$0xf]  ;;  %v375_v49 = vld [vmem:[%s4837_s10 + $0x50] sm:$0xf]  ;;  %372 = vst [vmem:[#allocation10 + $0x3c] sm:$0xf] %v371_v47 }
  0x28   :  { %374 = vst [vmem:[#allocation10 + $0x40] sm:$0xf] %v373_v48  ;;  %376 = vst [vmem:[#allocation10 + $0x44] sm:$0xf] %v375_v49  ;;  %v377_v50 = vld [vmem:[%s4837_s10 + $0x3c] sm:$0xf] }
  0x29   :  { %v379_v51 = vld [vmem:[%s4837_s10 + $0x54] sm:$0xf]  ;;  %v381_v52 = vld [vmem:[%s4837_s10 + $0x40] sm:$0xf]  ;;  %378 = vst [vmem:[#allocation10 + $0x48] sm:$0xf] %v377_v50 }
  0x2a   :  { %380 = vst [vmem:[#allocation10 + $0x4c] sm:$0xf] %v379_v51  ;;  %382 = vst [vmem:[#allocation10 + $0x50] sm:$0xf] %v381_v52  ;;  %v383_v53 = vld [vmem:[%s4837_s10 + $0x58] sm:$0xf] }
  0x2b   :  { %v385_v54 = vld [vmem:[%s4837_s10 + $0x44] sm:$0xf]  ;;  %384 = vst [vmem:[#allocation10 + $0x54] sm:$0xf] %v383_v53  ;;  %v391_v56 = vld [vmem:[%s4837_s10 + $0x78] sm:$0xf] }
  0x2c   :  { %386 = vst [vmem:[#allocation10 + $0x58] sm:$0xf] %v385_v54  ;;  %v393_v57 = vld [vmem:[%s4837_s10 + $0x64] sm:$0xf]  ;;  %v395_v58 = vld [vmem:[%s4837_s10 + $0x7c] sm:$0xf] }
  0x2d   :  { %392 = vst [vmem:[#allocation10 + $0x64] sm:$0xf] %v391_v56  ;;  %394 = vst [vmem:[#allocation10 + $0x68] sm:$0xf] %v393_v57  ;;  %v397_v59 = vld [vmem:[%s4837_s10 + $0x68] sm:$0xf] }
  0x2e   :  { %396 = vst [vmem:[#allocation10 + $0x6c] sm:$0xf] %v395_v58  ;;  %v399_v60 = vld [vmem:[%s4837_s10 + $0x80] sm:$0xf]  ;;  %v401_v61 = vld [vmem:[%s4837_s10 + $0x6c] sm:$0xf] }
  0x2f   :  { %398 = vst [vmem:[#allocation10 + $0x70] sm:$0xf] %v397_v59  ;;  %400 = vst [vmem:[#allocation10 + $0x74] sm:$0xf] %v399_v60  ;;  %v403_v62 = vld [vmem:[%s4837_s10 + $0x84] sm:$0xf] }
  0x30   :  { %402 = vst [vmem:[#allocation10 + $0x78] sm:$0xf] %v401_v61  ;;  %v405_v63 = vld [vmem:[%s4837_s10 + $0x70] sm:$0xf]  ;;  %v407_v36 = vld [vmem:[%s4837_s10 + $0x88] sm:$0xf] }
  0x31   :  { %404 = vst [vmem:[#allocation10 + $0x7c] sm:$0xf] %v403_v62  ;;  %406 = vst [vmem:[#allocation10 + $0x80] sm:$0xf] %v405_v63  ;;  %v409_v37 = vld [vmem:[%s4837_s10 + $0x74] sm:$0xf] }
  0x32   :  { %408 = vst [vmem:[#allocation10 + $0x84] sm:$0xf] %v407_v36  ;;  %v411_v38 = vld [vmem:[%s4837_s10 + $0x8c] sm:$0xff]   ;;  %v415_v39 = vld [vmem:[%s4837_s10 + $0xa8] sm:$0xf]  ;;  %v435_v49 = vld [vmem:[%s4837_s10 + $0xbc] sm:$0xff]  }
  0x33   :  { %410 = vst [vmem:[#allocation10 + $0x88] sm:$0xf] %v409_v37  ;;  %412 = vst [vmem:[#allocation10 + $0x8c] sm:$0xff] %v411_v38   ;;  %v417_v40 = vld [vmem:[%s4837_s10 + $0x94] sm:$0xf]  ;;  %v459_v60 = vld [vmem:[%s4837_s10 + $0xec] sm:$0xff]  }
  0x34   :  { %416 = vst [vmem:[#allocation10 + $0x94] sm:$0xf] %v415_v39  ;;  %v419_v41 = vld [vmem:[%s4837_s10 + $0xac] sm:$0xf]  ;;  %v421_v42 = vld [vmem:[%s4837_s10 + $0x98] sm:$0xf] }
  0x35   :  { %418 = vst [vmem:[#allocation10 + $0x98] sm:$0xf] %v417_v40  ;;  %420 = vst [vmem:[#allocation10 + $0x9c] sm:$0xf] %v419_v41  ;;  %v423_v43 = vld [vmem:[%s4837_s10 + $0xb0] sm:$0xf] }
  0x36   :  { %422 = vst [vmem:[#allocation10 + $0xa0] sm:$0xf] %v421_v42  ;;  %v425_v44 = vld [vmem:[%s4837_s10 + $0x9c] sm:$0xf]  ;;  %v427_v45 = vld [vmem:[%s4837_s10 + $0xb4] sm:$0xf] }
  0x37   :  { %424 = vst [vmem:[#allocation10 + $0xa4] sm:$0xf] %v423_v43  ;;  %426 = vst [vmem:[#allocation10 + $0xa8] sm:$0xf] %v425_v44  ;;  %v429_v46 = vld [vmem:[%s4837_s10 + $0xa0] sm:$0xf] }
  0x38   :  { %428 = vst [vmem:[#allocation10 + $0xac] sm:$0xf] %v427_v45  ;;  %v431_v47 = vld [vmem:[%s4837_s10 + $0xb8] sm:$0xf]  ;;  %v433_v48 = vld [vmem:[%s4837_s10 + $0xa4] sm:$0xf] }
  0x39   :  { %430 = vst [vmem:[#allocation10 + $0xb0] sm:$0xf] %v429_v46  ;;  %432 = vst [vmem:[#allocation10 + $0xb4] sm:$0xf] %v431_v47  ;;  %v439_v50 = vld [vmem:[%s4837_s10 + $0xd8] sm:$0xf] }
  0x3a   :  { %434 = vst [vmem:[#allocation10 + $0xb8] sm:$0xf] %v433_v48  ;;  %v441_v51 = vld [vmem:[%s4837_s10 + $0xc4] sm:$0xf]  ;;  %436 = vst [vmem:[#allocation10 + $0xbc] sm:$0xff] %v435_v49   ;;  %v483_v43 = vld [vmem:[%s4837_s10 + $0x11c] sm:$0xff]  }
  0x3b   :  { %440 = vst [vmem:[#allocation10 + $0xc4] sm:$0xf] %v439_v50  ;;  %442 = vst [vmem:[#allocation10 + $0xc8] sm:$0xf] %v441_v51  ;;  %v443_v52 = vld [vmem:[%s4837_s10 + $0xdc] sm:$0xf] }
  0x3c   :  { %v445_v53 = vld [vmem:[%s4837_s10 + $0xc8] sm:$0xf]  ;;  %v447_v54 = vld [vmem:[%s4837_s10 + $0xe0] sm:$0xf]  ;;  %444 = vst [vmem:[#allocation10 + $0xcc] sm:$0xf] %v443_v52 }
  0x3d   :  { %446 = vst [vmem:[#allocation10 + $0xd0] sm:$0xf] %v445_v53  ;;  %448 = vst [vmem:[#allocation10 + $0xd4] sm:$0xf] %v447_v54  ;;  %v449_v55 = vld [vmem:[%s4837_s10 + $0xcc] sm:$0xf] }
  0x3e   :  { %v451_v56 = vld [vmem:[%s4837_s10 + $0xe4] sm:$0xf]  ;;  %v453_v57 = vld [vmem:[%s4837_s10 + $0xd0] sm:$0xf]  ;;  %450 = vst [vmem:[#allocation10 + $0xd8] sm:$0xf] %v449_v55 }
  0x3f   :  { %452 = vst [vmem:[#allocation10 + $0xdc] sm:$0xf] %v451_v56  ;;  %454 = vst [vmem:[#allocation10 + $0xe0] sm:$0xf] %v453_v57  ;;  %v455_v58 = vld [vmem:[%s4837_s10 + $0xe8] sm:$0xf] }
  0x40   :  { %v457_v59 = vld [vmem:[%s4837_s10 + $0xd4] sm:$0xf]  ;;  %456 = vst [vmem:[#allocation10 + $0xe4] sm:$0xf] %v455_v58  ;;  %460 = vst [vmem:[#allocation10 + $0xec] sm:$0xff] %v459_v60   ;;  %v507_v54 = vld [vmem:[%s4837_s10 + $0x14c] sm:$0xff]  }
  0x41   :  { %458 = vst [vmem:[#allocation10 + $0xe8] sm:$0xf] %v457_v59  ;;  %v463_v61 = vld [vmem:[%s4837_s10 + $0x108] sm:$0xf]  ;;  %v465_v62 = vld [vmem:[%s4837_s10 + $0xf4] sm:$0xf] }
  0x42   :  { %v467_v63 = vld [vmem:[%s4837_s10 + $0x10c] sm:$0xf]  ;;  %464 = vst [vmem:[#allocation10 + $0xf4] sm:$0xf] %v463_v61  ;;  %466 = vst [vmem:[#allocation10 + $0xf8] sm:$0xf] %v465_v62 }
  0x43   :  { %468 = vst [vmem:[#allocation10 + $0xfc] sm:$0xf] %v467_v63  ;;  %v469_v36 = vld [vmem:[%s4837_s10 + $0xf8] sm:$0xf]  ;;  %v471_v37 = vld [vmem:[%s4837_s10 + $0x110] sm:$0xf] }
  0x44   :  { %v473_v38 = vld [vmem:[%s4837_s10 + $0xfc] sm:$0xf]  ;;  %470 = vst [vmem:[#allocation10 + $0x100] sm:$0xf] %v469_v36  ;;  %472 = vst [vmem:[#allocation10 + $0x104] sm:$0xf] %v471_v37 }
  0x45   :  { %474 = vst [vmem:[#allocation10 + $0x108] sm:$0xf] %v473_v38  ;;  %v475_v39 = vld [vmem:[%s4837_s10 + $0x114] sm:$0xf]  ;;  %v477_v40 = vld [vmem:[%s4837_s10 + $0x100] sm:$0xf] }
  0x46   :  { %v479_v41 = vld [vmem:[%s4837_s10 + $0x118] sm:$0xf]  ;;  %476 = vst [vmem:[#allocation10 + $0x10c] sm:$0xf] %v475_v39  ;;  %478 = vst [vmem:[#allocation10 + $0x110] sm:$0xf] %v477_v40 }
  0x47   :  { %480 = vst [vmem:[#allocation10 + $0x114] sm:$0xf] %v479_v41  ;;  %v481_v42 = vld [vmem:[%s4837_s10 + $0x104] sm:$0xf]  ;;  %v487_v44 = vld [vmem:[%s4837_s10 + $0x138] sm:$0xf] }
  0x48   :  { %482 = vst [vmem:[#allocation10 + $0x118] sm:$0xf] %v481_v42  ;;  %484 = vst [vmem:[#allocation10 + $0x11c] sm:$0xff] %v483_v43   ;;  %v489_v45 = vld [vmem:[%s4837_s10 + $0x124] sm:$0xf]  ;;  %v531_v37 = vld [vmem:[%s4837_s10 + $0x17c] sm:$0xff]  }
  0x49   :  { %488 = vst [vmem:[#allocation10 + $0x124] sm:$0xf] %v487_v44  ;;  %v491_v46 = vld [vmem:[%s4837_s10 + $0x13c] sm:$0xf]  ;;  %v493_v47 = vld [vmem:[%s4837_s10 + $0x128] sm:$0xf] }
  0x4a   :  { %490 = vst [vmem:[#allocation10 + $0x128] sm:$0xf] %v489_v45  ;;  %492 = vst [vmem:[#allocation10 + $0x12c] sm:$0xf] %v491_v46  ;;  %v495_v48 = vld [vmem:[%s4837_s10 + $0x140] sm:$0xf] }
  0x4b   :  { %494 = vst [vmem:[#allocation10 + $0x130] sm:$0xf] %v493_v47  ;;  %v497_v49 = vld [vmem:[%s4837_s10 + $0x12c] sm:$0xf]  ;;  %v499_v50 = vld [vmem:[%s4837_s10 + $0x144] sm:$0xf] }
  0x4c   :  { %496 = vst [vmem:[#allocation10 + $0x134] sm:$0xf] %v495_v48  ;;  %498 = vst [vmem:[#allocation10 + $0x138] sm:$0xf] %v497_v49  ;;  %v501_v51 = vld [vmem:[%s4837_s10 + $0x130] sm:$0xf] }
  0x4d   :  { %500 = vst [vmem:[#allocation10 + $0x13c] sm:$0xf] %v499_v50  ;;  %v503_v52 = vld [vmem:[%s4837_s10 + $0x148] sm:$0xf]  ;;  %v505_v53 = vld [vmem:[%s4837_s10 + $0x134] sm:$0xf] }
  0x4e   :  { %502 = vst [vmem:[#allocation10 + $0x140] sm:$0xf] %v501_v51  ;;  %504 = vst [vmem:[#allocation10 + $0x144] sm:$0xf] %v503_v52  ;;  %v511_v55 = vld [vmem:[%s4837_s10 + $0x168] sm:$0xf] }
  0x4f   :  { %506 = vst [vmem:[#allocation10 + $0x148] sm:$0xf] %v505_v53  ;;  %v513_v56 = vld [vmem:[%s4837_s10 + $0x154] sm:$0xf]  ;;  %508 = vst [vmem:[#allocation10 + $0x14c] sm:$0xff] %v507_v54   ;;  %v555_v48 = vld [vmem:[%s4837_s10 + $0x1ac] sm:$0xff]  }
  0x50   :  { %512 = vst [vmem:[#allocation10 + $0x154] sm:$0xf] %v511_v55  ;;  %514 = vst [vmem:[#allocation10 + $0x158] sm:$0xf] %v513_v56  ;;  %v515_v57 = vld [vmem:[%s4837_s10 + $0x16c] sm:$0xf] }
  0x51   :  { %v517_v58 = vld [vmem:[%s4837_s10 + $0x158] sm:$0xf]  ;;  %v519_v59 = vld [vmem:[%s4837_s10 + $0x170] sm:$0xf]  ;;  %516 = vst [vmem:[#allocation10 + $0x15c] sm:$0xf] %v515_v57 }
  0x52   :  { %518 = vst [vmem:[#allocation10 + $0x160] sm:$0xf] %v517_v58  ;;  %520 = vst [vmem:[#allocation10 + $0x164] sm:$0xf] %v519_v59  ;;  %v521_v60 = vld [vmem:[%s4837_s10 + $0x15c] sm:$0xf] }
  0x53   :  { %v523_v61 = vld [vmem:[%s4837_s10 + $0x174] sm:$0xf]  ;;  %v525_v62 = vld [vmem:[%s4837_s10 + $0x160] sm:$0xf]  ;;  %522 = vst [vmem:[#allocation10 + $0x168] sm:$0xf] %v521_v60 }
  0x54   :  { %524 = vst [vmem:[#allocation10 + $0x16c] sm:$0xf] %v523_v61  ;;  %526 = vst [vmem:[#allocation10 + $0x170] sm:$0xf] %v525_v62  ;;  %v527_v63 = vld [vmem:[%s4837_s10 + $0x178] sm:$0xf] }
  0x55   :  { %v529_v36 = vld [vmem:[%s4837_s10 + $0x164] sm:$0xf]  ;;  %528 = vst [vmem:[#allocation10 + $0x174] sm:$0xf] %v527_v63  ;;  %532 = vst [vmem:[#allocation10 + $0x17c] sm:$0xff] %v531_v37   ;;  %v579_v59 = vld [vmem:[%s4837_s10 + $0x1dc] sm:$0xff]  }
  0x56   :  { %530 = vst [vmem:[#allocation10 + $0x178] sm:$0xf] %v529_v36  ;;  %v535_v38 = vld [vmem:[%s4837_s10 + $0x198] sm:$0xf]  ;;  %v537_v39 = vld [vmem:[%s4837_s10 + $0x184] sm:$0xf] }
  0x57   :  { %v539_v40 = vld [vmem:[%s4837_s10 + $0x19c] sm:$0xf]  ;;  %536 = vst [vmem:[#allocation10 + $0x184] sm:$0xf] %v535_v38  ;;  %538 = vst [vmem:[#allocation10 + $0x188] sm:$0xf] %v537_v39 }
  0x58   :  { %540 = vst [vmem:[#allocation10 + $0x18c] sm:$0xf] %v539_v40  ;;  %v541_v41 = vld [vmem:[%s4837_s10 + $0x188] sm:$0xf]  ;;  %v543_v42 = vld [vmem:[%s4837_s10 + $0x1a0] sm:$0xf] }
  0x59   :  { %v545_v43 = vld [vmem:[%s4837_s10 + $0x18c] sm:$0xf]  ;;  %542 = vst [vmem:[#allocation10 + $0x190] sm:$0xf] %v541_v41  ;;  %544 = vst [vmem:[#allocation10 + $0x194] sm:$0xf] %v543_v42 }
  0x5a   :  { %546 = vst [vmem:[#allocation10 + $0x198] sm:$0xf] %v545_v43  ;;  %v547_v44 = vld [vmem:[%s4837_s10 + $0x1a4] sm:$0xf]  ;;  %v549_v45 = vld [vmem:[%s4837_s10 + $0x190] sm:$0xf] }
  0x5b   :  { %v551_v46 = vld [vmem:[%s4837_s10 + $0x1a8] sm:$0xf]  ;;  %548 = vst [vmem:[#allocation10 + $0x19c] sm:$0xf] %v547_v44  ;;  %550 = vst [vmem:[#allocation10 + $0x1a0] sm:$0xf] %v549_v45 }
  0x5c   :  { %552 = vst [vmem:[#allocation10 + $0x1a4] sm:$0xf] %v551_v46  ;;  %v553_v47 = vld [vmem:[%s4837_s10 + $0x194] sm:$0xf]  ;;  %v559_v49 = vld [vmem:[%s4837_s10 + $0x1c8] sm:$0xf] }
  0x5d   :  { %554 = vst [vmem:[#allocation10 + $0x1a8] sm:$0xf] %v553_v47  ;;  %556 = vst [vmem:[#allocation10 + $0x1ac] sm:$0xff] %v555_v48   ;;  %v561_v50 = vld [vmem:[%s4837_s10 + $0x1b4] sm:$0xf]  ;;  %v603_v42 = vld [vmem:[%s4837_s10 + $0x20c] sm:$0xff]  }
  0x5e   :  { %560 = vst [vmem:[#allocation10 + $0x1b4] sm:$0xf] %v559_v49  ;;  %v563_v51 = vld [vmem:[%s4837_s10 + $0x1cc] sm:$0xf]  ;;  %v565_v52 = vld [vmem:[%s4837_s10 + $0x1b8] sm:$0xf] }
  0x5f   :  { %562 = vst [vmem:[#allocation10 + $0x1b8] sm:$0xf] %v561_v50  ;;  %564 = vst [vmem:[#allocation10 + $0x1bc] sm:$0xf] %v563_v51  ;;  %v567_v53 = vld [vmem:[%s4837_s10 + $0x1d0] sm:$0xf] }
  0x60   :  { %566 = vst [vmem:[#allocation10 + $0x1c0] sm:$0xf] %v565_v52  ;;  %v569_v54 = vld [vmem:[%s4837_s10 + $0x1bc] sm:$0xf]  ;;  %v571_v55 = vld [vmem:[%s4837_s10 + $0x1d4] sm:$0xf] }
  0x61   :  { %568 = vst [vmem:[#allocation10 + $0x1c4] sm:$0xf] %v567_v53  ;;  %570 = vst [vmem:[#allocation10 + $0x1c8] sm:$0xf] %v569_v54  ;;  %v573_v56 = vld [vmem:[%s4837_s10 + $0x1c0] sm:$0xf] }
  0x62   :  { %572 = vst [vmem:[#allocation10 + $0x1cc] sm:$0xf] %v571_v55  ;;  %v575_v57 = vld [vmem:[%s4837_s10 + $0x1d8] sm:$0xf]  ;;  %v577_v58 = vld [vmem:[%s4837_s10 + $0x1c4] sm:$0xf] }
  0x63   :  { %574 = vst [vmem:[#allocation10 + $0x1d0] sm:$0xf] %v573_v56  ;;  %576 = vst [vmem:[#allocation10 + $0x1d4] sm:$0xf] %v575_v57  ;;  %v583_v60 = vld [vmem:[%s4837_s10 + $0x1f8] sm:$0xf] }
  0x64   :  { %578 = vst [vmem:[#allocation10 + $0x1d8] sm:$0xf] %v577_v58  ;;  %v585_v61 = vld [vmem:[%s4837_s10 + $0x1e4] sm:$0xf]  ;;  %580 = vst [vmem:[#allocation10 + $0x1dc] sm:$0xff] %v579_v59   ;;  %v627_v53 = vld [vmem:[%s4837_s10 + $0x23c] sm:$0xff]  }
  0x65   :  { %584 = vst [vmem:[#allocation10 + $0x1e4] sm:$0xf] %v583_v60  ;;  %586 = vst [vmem:[#allocation10 + $0x1e8] sm:$0xf] %v585_v61  ;;  %v587_v62 = vld [vmem:[%s4837_s10 + $0x1fc] sm:$0xf] }
  0x66   :  { %v589_v63 = vld [vmem:[%s4837_s10 + $0x1e8] sm:$0xf]  ;;  %v591_v36 = vld [vmem:[%s4837_s10 + $0x200] sm:$0xf]  ;;  %588 = vst [vmem:[#allocation10 + $0x1ec] sm:$0xf] %v587_v62 }
  0x67   :  { %590 = vst [vmem:[#allocation10 + $0x1f0] sm:$0xf] %v589_v63  ;;  %592 = vst [vmem:[#allocation10 + $0x1f4] sm:$0xf] %v591_v36  ;;  %v593_v37 = vld [vmem:[%s4837_s10 + $0x1ec] sm:$0xf] }
  0x68   :  { %v595_v38 = vld [vmem:[%s4837_s10 + $0x204] sm:$0xf]  ;;  %v597_v39 = vld [vmem:[%s4837_s10 + $0x1f0] sm:$0xf]  ;;  %594 = vst [vmem:[#allocation10 + $0x1f8] sm:$0xf] %v593_v37 }
  0x69   :  { %596 = vst [vmem:[#allocation10 + $0x1fc] sm:$0xf] %v595_v38  ;;  %598 = vst [vmem:[#allocation10 + $0x200] sm:$0xf] %v597_v39  ;;  %v599_v40 = vld [vmem:[%s4837_s10 + $0x208] sm:$0xf] }
  0x6a   :  { %v601_v41 = vld [vmem:[%s4837_s10 + $0x1f4] sm:$0xf]  ;;  %600 = vst [vmem:[#allocation10 + $0x204] sm:$0xf] %v599_v40  ;;  %604 = vst [vmem:[#allocation10 + $0x20c] sm:$0xff] %v603_v42   ;;  %v651_v36 = vld [vmem:[%s4837_s10 + $0x26c] sm:$0xff]  }
  0x6b   :  { %602 = vst [vmem:[#allocation10 + $0x208] sm:$0xf] %v601_v41  ;;  %v607_v43 = vld [vmem:[%s4837_s10 + $0x228] sm:$0xf]  ;;  %v609_v44 = vld [vmem:[%s4837_s10 + $0x214] sm:$0xf] }
  0x6c   :  { %v611_v45 = vld [vmem:[%s4837_s10 + $0x22c] sm:$0xf]  ;;  %608 = vst [vmem:[#allocation10 + $0x214] sm:$0xf] %v607_v43  ;;  %610 = vst [vmem:[#allocation10 + $0x218] sm:$0xf] %v609_v44 }
  0x6d   :  { %612 = vst [vmem:[#allocation10 + $0x21c] sm:$0xf] %v611_v45  ;;  %v613_v46 = vld [vmem:[%s4837_s10 + $0x218] sm:$0xf]  ;;  %v615_v47 = vld [vmem:[%s4837_s10 + $0x230] sm:$0xf] }
  0x6e   :  { %v617_v48 = vld [vmem:[%s4837_s10 + $0x21c] sm:$0xf]  ;;  %614 = vst [vmem:[#allocation10 + $0x220] sm:$0xf] %v613_v46  ;;  %616 = vst [vmem:[#allocation10 + $0x224] sm:$0xf] %v615_v47 }
  0x6f   :  { %618 = vst [vmem:[#allocation10 + $0x228] sm:$0xf] %v617_v48  ;;  %v619_v49 = vld [vmem:[%s4837_s10 + $0x234] sm:$0xf]  ;;  %v621_v50 = vld [vmem:[%s4837_s10 + $0x220] sm:$0xf] }
  0x70   :  { %v623_v51 = vld [vmem:[%s4837_s10 + $0x238] sm:$0xf]  ;;  %620 = vst [vmem:[#allocation10 + $0x22c] sm:$0xf] %v619_v49  ;;  %622 = vst [vmem:[#allocation10 + $0x230] sm:$0xf] %v621_v50 }
  0x71   :  { %624 = vst [vmem:[#allocation10 + $0x234] sm:$0xf] %v623_v51  ;;  %v625_v52 = vld [vmem:[%s4837_s10 + $0x224] sm:$0xf]  ;;  %v631_v54 = vld [vmem:[%s4837_s10 + $0x258] sm:$0xf] }
  0x72   :  { %626 = vst [vmem:[#allocation10 + $0x238] sm:$0xf] %v625_v52  ;;  %628 = vst [vmem:[#allocation10 + $0x23c] sm:$0xff] %v627_v53   ;;  %v633_v55 = vld [vmem:[%s4837_s10 + $0x244] sm:$0xf]  ;;  %v675_v47 = vld [vmem:[%s4837_s10 + $0x29c] sm:$0xff]  }
  0x73   :  { %632 = vst [vmem:[#allocation10 + $0x244] sm:$0xf] %v631_v54  ;;  %v635_v56 = vld [vmem:[%s4837_s10 + $0x25c] sm:$0xf]  ;;  %v637_v57 = vld [vmem:[%s4837_s10 + $0x248] sm:$0xf] }
  0x74   :  { %634 = vst [vmem:[#allocation10 + $0x248] sm:$0xf] %v633_v55  ;;  %636 = vst [vmem:[#allocation10 + $0x24c] sm:$0xf] %v635_v56  ;;  %v639_v58 = vld [vmem:[%s4837_s10 + $0x260] sm:$0xf] }
  0x75   :  { %638 = vst [vmem:[#allocation10 + $0x250] sm:$0xf] %v637_v57  ;;  %v641_v59 = vld [vmem:[%s4837_s10 + $0x24c] sm:$0xf]  ;;  %v643_v60 = vld [vmem:[%s4837_s10 + $0x264] sm:$0xf] }
  0x76   :  { %640 = vst [vmem:[#allocation10 + $0x254] sm:$0xf] %v639_v58  ;;  %642 = vst [vmem:[#allocation10 + $0x258] sm:$0xf] %v641_v59  ;;  %v645_v61 = vld [vmem:[%s4837_s10 + $0x250] sm:$0xf] }
  0x77   :  { %644 = vst [vmem:[#allocation10 + $0x25c] sm:$0xf] %v643_v60  ;;  %v647_v62 = vld [vmem:[%s4837_s10 + $0x268] sm:$0xf]  ;;  %v649_v63 = vld [vmem:[%s4837_s10 + $0x254] sm:$0xf] }
  0x78   :  { %646 = vst [vmem:[#allocation10 + $0x260] sm:$0xf] %v645_v61  ;;  %648 = vst [vmem:[#allocation10 + $0x264] sm:$0xf] %v647_v62  ;;  %v655_v37 = vld [vmem:[%s4837_s10 + $0x288] sm:$0xf] }
  0x79   :  { %650 = vst [vmem:[#allocation10 + $0x268] sm:$0xf] %v649_v63  ;;  %v657_v38 = vld [vmem:[%s4837_s10 + $0x274] sm:$0xf]  ;;  %652 = vst [vmem:[#allocation10 + $0x26c] sm:$0xff] %v651_v36   ;;  %v699_v58 = vld [vmem:[%s4837_s10 + $0x2cc] sm:$0xff]  }
  0x7a   :  { %656 = vst [vmem:[#allocation10 + $0x274] sm:$0xf] %v655_v37  ;;  %658 = vst [vmem:[#allocation10 + $0x278] sm:$0xf] %v657_v38  ;;  %v659_v39 = vld [vmem:[%s4837_s10 + $0x28c] sm:$0xf] }
  0x7b   :  { %v661_v40 = vld [vmem:[%s4837_s10 + $0x278] sm:$0xf]  ;;  %v663_v41 = vld [vmem:[%s4837_s10 + $0x290] sm:$0xf]  ;;  %660 = vst [vmem:[#allocation10 + $0x27c] sm:$0xf] %v659_v39 }
  0x7c   :  { %662 = vst [vmem:[#allocation10 + $0x280] sm:$0xf] %v661_v40  ;;  %664 = vst [vmem:[#allocation10 + $0x284] sm:$0xf] %v663_v41  ;;  %v665_v42 = vld [vmem:[%s4837_s10 + $0x27c] sm:$0xf] }
  0x7d   :  { %v667_v43 = vld [vmem:[%s4837_s10 + $0x294] sm:$0xf]  ;;  %v669_v44 = vld [vmem:[%s4837_s10 + $0x280] sm:$0xf]  ;;  %666 = vst [vmem:[#allocation10 + $0x288] sm:$0xf] %v665_v42 }
  0x7e   :  { %668 = vst [vmem:[#allocation10 + $0x28c] sm:$0xf] %v667_v43  ;;  %670 = vst [vmem:[#allocation10 + $0x290] sm:$0xf] %v669_v44  ;;  %v671_v45 = vld [vmem:[%s4837_s10 + $0x298] sm:$0xf] }
  0x7f   :  { %v673_v46 = vld [vmem:[%s4837_s10 + $0x284] sm:$0xf]  ;;  %672 = vst [vmem:[#allocation10 + $0x294] sm:$0xf] %v671_v45  ;;  %676 = vst [vmem:[#allocation10 + $0x29c] sm:$0xff] %v675_v47  }
  0x80   :  { %674 = vst [vmem:[#allocation10 + $0x298] sm:$0xf] %v673_v46  ;;  %v679_v48 = vld [vmem:[%s4837_s10 + $0x2b8] sm:$0xf]  ;;  %v681_v49 = vld [vmem:[%s4837_s10 + $0x2a4] sm:$0xf] }
  0x81   :  { %v683_v50 = vld [vmem:[%s4837_s10 + $0x2bc] sm:$0xf]  ;;  %680 = vst [vmem:[#allocation10 + $0x2a4] sm:$0xf] %v679_v48  ;;  %682 = vst [vmem:[#allocation10 + $0x2a8] sm:$0xf] %v681_v49 }
  0x82   :  { %684 = vst [vmem:[#allocation10 + $0x2ac] sm:$0xf] %v683_v50  ;;  %v685_v51 = vld [vmem:[%s4837_s10 + $0x2a8] sm:$0xf]  ;;  %v687_v52 = vld [vmem:[%s4837_s10 + $0x2c0] sm:$0xf] }
  0x83   :  { %v689_v53 = vld [vmem:[%s4837_s10 + $0x2ac] sm:$0xf]  ;;  %686 = vst [vmem:[#allocation10 + $0x2b0] sm:$0xf] %v685_v51  ;;  %688 = vst [vmem:[#allocation10 + $0x2b4] sm:$0xf] %v687_v52 }
  0x84   :  { %690 = vst [vmem:[#allocation10 + $0x2b8] sm:$0xf] %v689_v53  ;;  %v691_v54 = vld [vmem:[%s4837_s10 + $0x2c4] sm:$0xf]  ;;  %v693_v55 = vld [vmem:[%s4837_s10 + $0x2b0] sm:$0xf] }
  0x85   :  { %v695_v56 = vld [vmem:[%s4837_s10 + $0x2c8] sm:$0xf]  ;;  %692 = vst [vmem:[#allocation10 + $0x2bc] sm:$0xf] %v691_v54  ;;  %694 = vst [vmem:[#allocation10 + $0x2c0] sm:$0xf] %v693_v55 }
  0x86   :  { %696 = vst [vmem:[#allocation10 + $0x2c4] sm:$0xf] %v695_v56  ;;  %v697_v57 = vld [vmem:[%s4837_s10 + $0x2b4] sm:$0xf]  ;;  %v703_v59 = vld [vmem:[%s4837_s10 + $0x2e8] sm:$0xf] }
  0x87   :  { %698 = vst [vmem:[#allocation10 + $0x2c8] sm:$0xf] %v697_v57  ;;  %700 = vst [vmem:[#allocation10 + $0x2cc] sm:$0xff] %v699_v58   ;;  %v705_v60 = vld [vmem:[%s4837_s10 + $0x2d4] sm:$0xf] }
  0x88   :  { %704 = vst [vmem:[#allocation10 + $0x2d4] sm:$0xf] %v703_v59  ;;  %v707_v61 = vld [vmem:[%s4837_s10 + $0x2ec] sm:$0xf]  ;;  %v709_v62 = vld [vmem:[%s4837_s10 + $0x2d8] sm:$0xf] }
  0x89   :  { %706 = vst [vmem:[#allocation10 + $0x2d8] sm:$0xf] %v705_v60  ;;  %708 = vst [vmem:[#allocation10 + $0x2dc] sm:$0xf] %v707_v61  ;;  %v711_v63 = vld [vmem:[%s4837_s10 + $0x2f0] sm:$0xf] }
  0x8a   :  { %710 = vst [vmem:[#allocation10 + $0x2e0] sm:$0xf] %v709_v62  ;;  %v713_v36 = vld [vmem:[%s4837_s10 + $0x2dc] sm:$0xf]  ;;  %v715_v37 = vld [vmem:[%s4837_s10 + $0x2f4] sm:$0xf] }
  0x8b   :  { %712 = vst [vmem:[#allocation10 + $0x2e4] sm:$0xf] %v711_v63  ;;  %714 = vst [vmem:[#allocation10 + $0x2e8] sm:$0xf] %v713_v36  ;;  %v717_v38 = vld [vmem:[%s4837_s10 + $0x2e0] sm:$0xf] }
  0x8c   :  { %716 = vst [vmem:[#allocation10 + $0x2ec] sm:$0xf] %v715_v37  ;;  %v719_v39 = vld [vmem:[%s4837_s10 + $0x2f8] sm:$0xf]  ;;  %v721_v40 = vld [vmem:[%s4837_s10 + $0x2e4] sm:$0xf] }
  0x8d   :  { %718 = vst [vmem:[#allocation10 + $0x2f0] sm:$0xf] %v717_v38  ;;  %720 = vst [vmem:[#allocation10 + $0x2f4] sm:$0xf] %v719_v39  ;;  %v723_v41 = vld [vmem:[%s4837_s10 + $0x2fc] sm:$0xf] }
  0x8e   :  { %722 = vst [vmem:[#allocation10 + $0x2f8] sm:$0xf] %v721_v40  ;;  %724 = vst [vmem:[#allocation10 + $0x2fc] sm:$0xf] %v723_v41 }
  0x8f   :  { %1139 = vsyncadd [#allocation11 + $0x2], 12288  ;;  %v1156_v42 = vld [vmem:[%s4828_s1] sm:$0xff]  ;;  %v1157_v43 = vld [vmem:[%s4828_s1 + $0x8] sm:$0xff]  ;;  %vm1170_vm0 = vcmask 441344   ;;  %vm1219_vm1 = vcmask 1045504  }
  0x90   :  { %v3203_v44 = vpack.c.bf16 %v1157_v43, %v1156_v42  ;;  %v1158_v45 = vld [vmem:[%s4828_s1 + $0x10] sm:$0xff]  ;;  %v1159_v46 = vld [vmem:[%s4828_s1 + $0x18] sm:$0xff]  ;;  %v1160_v48 = vld [vmem:[%s4828_s1 + $0x20] sm:$0xff]  ;;  %vm1384_vm2 = vcmask 261120   ;;  %v3451_v40 = vmov 0.0   ;;  %vm1420_vm3 = vcmask 257024  }
  0x91   :  { %v3207_v47 = vpack.c.bf16 %v1159_v46, %v1158_v45  ;;  %v1161_v49 = vld [vmem:[%s4828_s1 + $0x28] sm:$0xff]  ;;  %v1140_v50 = vld [vmem:[%s4827_s0] sm:$0xff]  ;;  %v1162_v52 = vld [vmem:[%s4828_s1 + $0x30] sm:$0x3f]  ;;  %1401 = vst.msk [vmem:[#allocation3] sm:$0xff] %vm1384_vm2, %v3451_v40  ;;  %vm1766_vm4 = vcmask 523264  }
  0x92   :  { %3204 = vmatprep.subr.bf16.mxu0 %v3203_v44  ;;  %3147 = vmatprep.mubr.msk.f32.mxu0 %vm1170_vm0, %v1140_v50  ;;  %v3211_v51 = vpack.c.bf16 %v1161_v49, %v1160_v48  ;;  %v1141_v53 = vld [vmem:[%s4827_s0 + $0x8] sm:$0xff]  ;;  %v1142_v54 = vld [vmem:[%s4827_s0 + $0x10] sm:$0xff]  ;;  %v1143_v55 = vld [vmem:[%s4827_s0 + $0x18] sm:$0xff]  ;;  %1402 = vst.msk [vmem:[#allocation3 + $0x8] sm:$0xff] %vm1384_vm2, %v3451_v40  ;;  %s3453_s20 = smov 96   ;;  %s3454_s8 = smov 64  }
  0x93   :  { %3206 = vmatpush3.bf16.msra.mxu0 %v3203_v44  ;;  %v1144_v56 = vld [vmem:[%s4827_s0 + $0x20] sm:$0xff]  ;;  %v1145_v57 = vld [vmem:[%s4827_s0 + $0x28] sm:$0xff]  ;;  %v1146_v58 = vld [vmem:[%s4827_s0 + $0x30] sm:$0xff]  ;;  %1403 = vst.msk [vmem:[#allocation3 + $0x10] sm:$0xff] %vm1384_vm2, %v3451_v40  ;;  %vm1775_vm5 = vcmask 785408   ;;  %vm2094_vm6 = vcmask 517120  }
  0x94   :  { %3208 = vmatprep.subr.bf16.mxu0 %v3207_v47  ;;  %v1147_v59 = vld [vmem:[%s4827_s0 + $0x38] sm:$0xff]  ;;  %v1148_v60 = vld [vmem:[%s4827_s0 + $0x40] sm:$0xff]  ;;  %v1149_v61 = vld [vmem:[%s4827_s0 + $0x48] sm:$0xff]  ;;  %1404 = vst.msk [vmem:[#allocation3 + $0x18] sm:$0xff] %vm1384_vm2, %v3451_v40 }
  0x95   :  { %v1150_v62 = vld [vmem:[%s4827_s0 + $0x50] sm:$0xff]  ;;  %v1151_v63 = vld [vmem:[%s4827_s0 + $0x58] sm:$0xff]  ;;  %v1152_v36 = vld [vmem:[%s4827_s0 + $0x60] sm:$0xff]  ;;  %1405 = vst.msk [vmem:[#allocation3 + $0x20] sm:$0xff] %vm1384_vm2, %v3451_v40 }
  0x96   :  { %v1153_v37 = vld [vmem:[%s4827_s0 + $0x68] sm:$0xff]  ;;  %v1154_v38 = vld [vmem:[%s4827_s0 + $0x70] sm:$0xff]  ;;  %v1155_v39 = vld [vmem:[%s4827_s0 + $0x78] sm:$0xff]  ;;  %1406 = vst.msk [vmem:[#allocation3 + $0x28] sm:$0xff] %vm1384_vm2, %v3451_v40 }
  0x97   :  { %3210 = vmatpush3.bf16.msra.mxu0 %v3207_v47  ;;  %1407 = vst.msk [vmem:[#allocation3 + $0x30] sm:$0xff] %vm1384_vm2, %v3451_v40  ;;  %1408 = vst.msk [vmem:[#allocation3 + $0x38] sm:$0xff] %vm1384_vm2, %v3451_v40  ;;  %v1840_v41 = vld [vmem:[%s4830_s3 + $0x100] sm:$0xff]  ;;  %v1841_v42 = vld [vmem:[%s4830_s3 + $0x108] sm:$0xff] }
  0x98   :  { %3212 = vmatprep.subr.bf16.mxu0 %v3211_v51  ;;  %1409 = vst.msk [vmem:[#allocation3 + $0x40] sm:$0xff] %vm1384_vm2, %v3451_v40  ;;  %v3247_v43 = vpack.c.bf16 %v1841_v42, %v1840_v41  ;;  %v1842_v44 = vld [vmem:[%s4830_s3 + $0x110] sm:$0xff]  ;;  %v1843_v45 = vld [vmem:[%s4830_s3 + $0x118] sm:$0xff]  ;;  %v1824_v47 = vld [vmem:[%s4830_s3 + $0x80] sm:$0xff] }
  0x99   :  { %v3251_v46 = vpack.c.bf16 %v1843_v45, %v1842_v44  ;;  %v1825_v48 = vld [vmem:[%s4830_s3 + $0x88] sm:$0xff]  ;;  %v1808_v49 = vld [vmem:[%s4830_s3] sm:$0xff]  ;;  %v1814_v41 = vld [vmem:[%s4830_s3 + $0x30] sm:$0xff]  ;;  %2096 = vst.msk [vmem:[#allocation5] sm:$0xff] %vm1766_vm4, %v3451_v40 }
  0x9a   :  { %v3215_v50 = vpack.c.bf16 %v1825_v48, %v1824_v47  ;;  %v1815_v42 = vld [vmem:[%s4830_s3 + $0x38] sm:$0xff]  ;;  %v1833_v44 = vld [vmem:[%s4830_s3 + $0xc8] sm:$0xff]  ;;  %v1816_v47 = vld [vmem:[%s4830_s3 + $0x40] sm:$0xff]  ;;  %2097 = vst.msk [vmem:[#allocation5 + $0x8] sm:$0xff] %vm1766_vm4, %v3451_v40 }
  0x9b   :  { %3214 = vmatpush3.bf16.msra.mxu0 %v3211_v51  ;;  %v1809_v51 = vld [vmem:[%s4830_s3 + $0x8] sm:$0xff]  ;;  %v3229_v45 = vpack.c.bf16 %v1815_v42, %v1814_v41  ;;  %2098 = vst.msk [vmem:[#allocation5 + $0x10] sm:$0xff] %vm1766_vm4, %v3451_v40  ;;  %2099 = vst.msk [vmem:[#allocation5 + $0x18] sm:$0xff] %vm1766_vm4, %v3451_v40 }
  0x9c   :  { %3145 = vmatprep.subr.msk.mxu0 %vm1219_vm1, %v1162_v52  ;;  %3216 = vmatprep.subr.bf16.mxu1 %v3215_v50  ;;  %v1817_v48 = vld [vmem:[%s4830_s3 + $0x48] sm:$0xff]  ;;  %v1835_v50 = vld [vmem:[%s4830_s3 + $0xd8] sm:$0xff] }
  0x9f   :  { %3146 = vmatpush3.msk.msra.mxu0 %vm1219_vm1, %v1162_v52  ;;  %v1826_v52 = vld [vmem:[%s4830_s3 + $0x90] sm:$0xff] }
  0xa0   :  { %3148 = vmatmul.mubr.msk.f32.vlgmr.msra.gmra.mrb[0].mxu0 %vm1170_vm0, %v1141_v53  ;;  %3248 = vmatprep.subr.bf16.mxu0 %v3247_v43  ;;  %v1827_v53 = vld [vmem:[%s4830_s3 + $0x98] sm:$0xff] }
  0xa1   :  { %3150 = vmatprep.mubr.msk.f32.mxu0 %vm1170_vm0, %v1142_v54  ;;  %3250 = vmatpush3.bf16.msra.mxu0 %v3247_v43  ;;  %v3217_v54 = vpack.c.bf16 %v1809_v51, %v1808_v49  ;;  %v1832_v43 = vld [vmem:[%s4830_s3 + $0xc0] sm:$0xff]  ;;  %v1834_v49 = vld [vmem:[%s4830_s3 + $0xd0] sm:$0xff]  ;;  %v3233_v51 = vpack.c.bf16 %v1817_v48, %v1816_v47 }
  0xa2   :  { %3252 = vmatprep.subr.bf16.mxu0 %v3251_v46 }
  0xa3   :  { %3218 = vmatpush3.bf16.msra.mxu1 %v3217_v54  ;;  %v1819_v54 = vld [vmem:[%s4830_s3 + $0x58] sm:$0xff] }
  0xa4   :  { %3151 = vmatmul.mubr.msk.f32.gmra.mrb[2].mxu0 %vm1170_vm0, %v1143_v55  ;;  %v3219_v55 = vpack.c.bf16 %v1827_v53, %v1826_v52  ;;  %v3235_v52 = vpack.c.bf16 %v1835_v50, %v1834_v49  ;;  %v1818_v53 = vld [vmem:[%s4830_s3 + $0x50] sm:$0xff] }
  0xa5   :  { %3153 = vmatprep.mubr.msk.f32.mxu0 %vm1170_vm0, %v1144_v56  ;;  %3254 = vmatpush3.bf16.msra.mxu0 %v3251_v46  ;;  %v1810_v56 = vld [vmem:[%s4830_s3 + $0x10] sm:$0xff]  ;;  %v3231_v46 = vpack.c.bf16 %v1833_v44, %v1832_v43 }
  0xa6   :  { %3220 = vmatprep.subr.bf16.mxu1 %v3219_v55  ;;  %v3237_v55 = vpack.c.bf16 %v1819_v54, %v1818_v53 }
  0xa8   :  { %3154 = vmatmul.mubr.msk.f32.gmra.mrb[4].mxu0 %vm1170_vm0, %v1145_v57  ;;  %v1811_v57 = vld [vmem:[%s4830_s3 + $0x18] sm:$0xff] }
  0xa9   :  { %3156 = vmatprep.mubr.msk.f32.mxu0 %vm1170_vm0, %v1146_v58  ;;  %v1828_v58 = vld [vmem:[%s4830_s3 + $0xa0] sm:$0xff] }
  0xac   :  { %3157 = vmatmul.mubr.msk.f32.gmra.mrb[6].mxu0 %vm1170_vm0, %v1147_v59  ;;  %v1829_v59 = vld [vmem:[%s4830_s3 + $0xa8] sm:$0xff] }
  0xad   :  { %3159 = vmatprep.mubr.msk.f32.mxu0 %vm1170_vm0, %v1148_v60  ;;  %v3221_v60 = vpack.c.bf16 %v1811_v57, %v1810_v56  ;;  %v4494_v56 = vld [vmem:[%s4829_s2] ss:$0 sm:$0xff] }
  0xaf   :  { %3222 = vmatpush3.bf16.msra.mxu1 %v3221_v60 }
  0xb0   :  { %3160 = vmatmul.mubr.msk.f32.gmra.mrb[8].mxu0 %vm1170_vm0, %v1149_v61  ;;  %v3223_v61 = vpack.c.bf16 %v1829_v59, %v1828_v58 }
  0xb1   :  { %3162 = vmatprep.mubr.msk.f32.mxu0 %vm1170_vm0, %v1150_v62  ;;  %v1812_v62 = vld [vmem:[%s4830_s3 + $0x20] sm:$0xff] }
  0xb2   :  { %3224 = vmatprep.subr.bf16.mxu1 %v3223_v61 }
  0xb4   :  { %3163 = vmatmul.mubr.msk.f32.gmra.mrb[10].mxu0 %vm1170_vm0, %v1151_v63  ;;  %v1813_v63 = vld [vmem:[%s4830_s3 + $0x28] sm:$0xff] }
  0xb5   :  { %3165 = vmatprep.mubr.msk.f32.mxu0 %vm1170_vm0, %v1152_v36  ;;  %v1830_v36 = vld [vmem:[%s4830_s3 + $0xb0] sm:$0xff] }
  0xb8   :  { %3166 = vmatmul.mubr.msk.f32.gmra.mrb[12].mxu0 %vm1170_vm0, %v1153_v37  ;;  %v1831_v37 = vld [vmem:[%s4830_s3 + $0xb8] sm:$0xff] }
  0xb9   :  { %3168 = vmatprep.mubr.msk.f32.mxu0 %vm1170_vm0, %v1154_v38  ;;  %v3225_v38 = vpack.c.bf16 %v1813_v63, %v1812_v62 }
  0xbb   :  { %3226 = vmatpush3.bf16.msra.mxu1 %v3225_v38 }
  0xbc   :  { %3169 = vmatmul.mubr.msk.f32.gmra.mrb[14].mxu0 %vm1170_vm0, %v1155_v39  ;;  %v3227_v39 = vpack.c.bf16 %v1831_v37, %v1830_v36 }
  0xbe   :  { %3228 = vmatprep.subr.bf16.mxu1 %v3227_v39 }
  0xbf   :  { %3230 = vmatpush3.bf16.msra.mxu1 %v3229_v45 }
  0xc0   :  { %3232 = vmatprep.subr.bf16.mxu1 %v3231_v46 }
  0xc3   :  { %3234 = vmatpush3.bf16.msra.mxu1 %v3233_v51 }
  0xc4   :  { %3236 = vmatprep.subr.bf16.mxu1 %v3235_v52 }
  0xc7   :  { %3238 = vmatpush3.bf16.msra.mxu1 %v3237_v55 }
 0x173   :  { %v3149_v57 = vpop.f32.mrb[0].mxu0 }
 0x174   :  { %v1295_v58 = vadd.f32 %v3149_v57, %v4494_v56  ;;  %v1289_v59 = vpop.f32.mrb[1].mxu0 }
 0x175   :  { %v1290_v60 = vadd.f32 %v4494_v56, %v1289_v59 }
 0x176   :  { %v1369_v61 = vmax.f32 %v1295_v58, 0.0 }
 0x177   :  { %v1368_v62 = vmax.f32 %v1290_v60, 0.0  ;;  %v3152_v63 = vpop.f32.mrb[2].mxu0 }
 0x178   :  { %1386 = vst.msk [vmem:[#allocation2 + $0x8] sm:$0xff] %vm1384_vm2, %v1369_v61  ;;  %v1305_v36 = vadd.f32 %v3152_v63, %v4494_v56  ;;  %v1299_v37 = vpop.f32.mrb[3].mxu0 }
 0x179   :  { %1385 = vst.msk [vmem:[#allocation2] sm:$0xff] %vm1384_vm2, %v1368_v62  ;;  %v1300_v38 = vadd.f32 %v4494_v56, %v1299_v37 }
 0x17a   :  { %v1371_v39 = vmax.f32 %v1305_v36, 0.0 }
 0x17b   :  { %v1370_v41 = vmax.f32 %v1300_v38, 0.0  ;;  %v3155_v42 = vpop.f32.mrb[4].mxu0 }
 0x17c   :  { %1388 = vst.msk [vmem:[#allocation2 + $0x18] sm:$0xff] %vm1384_vm2, %v1371_v39  ;;  %v1315_v43 = vadd.f32 %v3155_v42, %v4494_v56  ;;  %v1309_v44 = vpop.f32.mrb[5].mxu0 }
 0x17d   :  { %1387 = vst.msk [vmem:[#allocation2 + $0x10] sm:$0xff] %vm1384_vm2, %v1370_v41  ;;  %v1310_v45 = vadd.f32 %v4494_v56, %v1309_v44  ;;  %v1836_v44 = vld [vmem:[%s4830_s3 + $0xe0] sm:$0xff] }
 0x17e   :  { %v1373_v46 = vmax.f32 %v1315_v43, 0.0 }
 0x17f   :  { %v1414_v47 = vld [vmem:[#allocation2 + $0x8] ss:$2 sm:$0xf]  ;;  %v1416_v48 = vld [vmem:[#allocation2 + $0x9] ss:$2 sm:$0xf] }
 0x180   :  { %v1418_v49 = vmax.f32 %v1414_v47, %v1416_v48  ;;  %v1410_v50 = vld [vmem:[#allocation2] ss:$2 sm:$0xf]  ;;  %v1412_v51 = vld [vmem:[#allocation2 + $0x1] ss:$2 sm:$0xf] }
 0x181   :  { %1390 = vst.msk [vmem:[#allocation2 + $0x28] sm:$0xff] %vm1384_vm2, %v1373_v46  ;;  %v1417_v52 = vmax.f32 %v1410_v50, %v1412_v51  ;;  %v1372_v53 = vmax.f32 %v1310_v45, 0.0  ;;  %v3158_v54 = vpop.f32.mrb[6].mxu0  ;;  %v1837_v45 = vld [vmem:[%s4830_s3 + $0xe8] sm:$0xff]  ;;  %v1820_v46 = vld [vmem:[%s4830_s3 + $0x60] sm:$0xff] }
 0x182   :  { %v1325_v55 = vadd.f32 %v3158_v54, %v4494_v56  ;;  %v1319_v57 = vpop.f32.mrb[7].mxu0  ;;  %v3239_v51 = vpack.c.bf16 %v1837_v45, %v1836_v44  ;;  %v1821_v54 = vld [vmem:[%s4830_s3 + $0x68] sm:$0xff] }
 0x183   :  { %v1419_v58 = vmax.f32 %v1417_v52, %v1418_v49  ;;  %v1427_v59 = vld [vmem:[#allocation2 + $0x18] ss:$2 sm:$0xf]  ;;  %v1429_v60 = vld [vmem:[#allocation2 + $0x19] ss:$2 sm:$0xf]  ;;  %v1320_v61 = vadd.f32 %v4494_v56, %v1319_v57 }
 0x184   :  { %1389 = vst.msk [vmem:[#allocation2 + $0x20] sm:$0xff] %vm1384_vm2, %v1372_v53  ;;  %v1431_v62 = vmax.f32 %v1427_v59, %v1429_v60  ;;  %v1423_v63 = vld [vmem:[#allocation2 + $0x10] ss:$2 sm:$0xf]  ;;  %v1375_v38 = vmax.f32 %v1325_v55, 0.0  ;;  %v3161_v41 = vpop.f32.mrb[8].mxu0  ;;  %3240 = vmatprep.subr.bf16.mxu1 %v3239_v51  ;;  %v3241_v60 = vpack.c.bf16 %v1821_v54, %v1820_v46 }
 0x185   :  { %v1425_v36 = vld [vmem:[#allocation2 + $0x11] ss:$2 sm:$0xf]  ;;  %v1374_v39 = vmax.f32 %v1320_v61, 0.0  ;;  %1421 = vst.msk [vmem:[#allocation3 + $0x7] sm:$0xf] %vm1420_vm3, %v1419_v58  ;;  %v1335_v42 = vadd.f32 %v3161_v41, %v4494_v56 }
 0x186   :  { %v1430_v37 = vmax.f32 %v1423_v63, %v1425_v36  ;;  %v1329_v43 = vpop.f32.mrb[9].mxu0  ;;  %1392 = vst.msk [vmem:[#allocation2 + $0x38] sm:$0xff] %vm1384_vm2, %v1375_v38  ;;  %3242 = vmatpush3.bf16.msra.mxu1 %v3241_v60  ;;  %v1839_v46 = vld [vmem:[%s4830_s3 + $0xf8] sm:$0xff] }
 0x187   :  { %1391 = vst.msk [vmem:[#allocation2 + $0x30] sm:$0xff] %vm1384_vm2, %v1374_v39  ;;  %v1330_v50 = vadd.f32 %v4494_v56, %v1329_v43  ;;  %v1377_v52 = vmax.f32 %v1335_v42, 0.0  ;;  %v3164_v53 = vpop.f32.mrb[10].mxu0  ;;  %v1838_v43 = vld [vmem:[%s4830_s3 + $0xf0] sm:$0xff] }
 0x188   :  { %v1432_v47 = vmax.f32 %v1430_v37, %v1431_v62  ;;  %v1439_v48 = vld [vmem:[#allocation2 + $0x28] ss:$2 sm:$0xf]  ;;  %v1441_v49 = vld [vmem:[#allocation2 + $0x29] ss:$2 sm:$0xf]  ;;  %v1345_v58 = vadd.f32 %v3164_v53, %v4494_v56  ;;  %v3243_v51 = vpack.c.bf16 %v1839_v46, %v1838_v43 }
 0x189   :  { %v1443_v55 = vmax.f32 %v1439_v48, %v1441_v49  ;;  %v1376_v57 = vmax.f32 %v1330_v50, 0.0  ;;  %v1339_v59 = vpop.f32.mrb[11].mxu0  ;;  %1394 = vst.msk [vmem:[#allocation2 + $0x48] sm:$0xff] %vm1384_vm2, %v1377_v52  ;;  %v1823_v48 = vld [vmem:[%s4830_s3 + $0x78] sm:$0xff] }
 0x18a   :  { %1433 = vst.msk [vmem:[#allocation3 + $0xd] sm:$0xf] %vm1420_vm3, %v1432_v47  ;;  %v1340_v63 = vadd.f32 %v4494_v56, %v1339_v59  ;;  %v1379_v37 = vmax.f32 %v1345_v58, 0.0  ;;  %v1822_v47 = vld [vmem:[%s4830_s3 + $0x70] sm:$0xff]  ;;  %3244 = vmatprep.subr.bf16.mxu1 %v3243_v51  ;;  %s3452_s3 = smov 32  }
 0x18b   :  { %v1435_v61 = vld [vmem:[#allocation2 + $0x20] ss:$2 sm:$0xf]  ;;  %v1437_v62 = vld [vmem:[#allocation2 + $0x21] ss:$2 sm:$0xf]  ;;  %v3245_v52 = vpack.c.bf16 %v1823_v48, %v1822_v47 }
 0x18c   :  { %v1442_v36 = vmax.f32 %v1435_v61, %v1437_v62  ;;  %1393 = vst.msk [vmem:[#allocation2 + $0x40] sm:$0xff] %vm1384_vm2, %v1376_v57  ;;  %v3167_v38 = vpop.f32.mrb[12].mxu0  ;;  %v1378_v39 = vmax.f32 %v1340_v63, 0.0  ;;  %1396 = vst.msk [vmem:[#allocation2 + $0x58] sm:$0xff] %vm1384_vm2, %v1379_v37  ;;  %v1514_v62 = vld [vmem:[#allocation3 + $0x1] sm:$0xff] }
 0x18d   :  { %v1355_v41 = vadd.f32 %v3167_v38, %v4494_v56  ;;  %v1349_v42 = vpop.f32.mrb[13].mxu0  ;;  %v1451_v49 = vld [vmem:[#allocation2 + $0x38] ss:$2 sm:$0xf]  ;;  %3246 = vmatpush3.bf16.msra.mxu1 %v3245_v52  ;;  %v1522_v51 = vld [vmem:[#allocation3 + $0x2] sm:$0xff] }
 0x18e   :  { %v1444_v44 = vmax.f32 %v1442_v36, %v1443_v55  ;;  %v1350_v45 = vadd.f32 %v4494_v56, %v1349_v42  ;;  %v1453_v50 = vld [vmem:[#allocation2 + $0x39] ss:$2 sm:$0xf]  ;;  %1395 = vst.msk [vmem:[#allocation2 + $0x50] sm:$0xff] %vm1384_vm2, %v1378_v39 }
 0x18f   :  { %v1455_v53 = vmax.f32 %v1451_v49, %v1453_v50  ;;  %v1447_v54 = vld [vmem:[#allocation2 + $0x30] ss:$2 sm:$0xf]  ;;  %v1449_v55 = vld [vmem:[#allocation2 + $0x31] ss:$2 sm:$0xf] }
 0x190   :  { %1445 = vst.msk [vmem:[#allocation3 + $0x13] sm:$0xf] %vm1420_vm3, %v1444_v44  ;;  %v1454_v57 = vmax.f32 %v1447_v54, %v1449_v55  ;;  %v1381_v58 = vmax.f32 %v1355_v41, 0.0  ;;  %v1380_v59 = vmax.f32 %v1350_v45, 0.0  ;;  %v3170_v60 = vpop.f32.mrb[14].mxu0 }
 0x191   :  { %v4549_v61 = vld [vmem:[#allocation3 + $0x8] sm:$0xff]  ;;  %v1365_v37 = vadd.f32 %v3170_v60, %v4494_v56  ;;  %v1359_v45 = vpop.f32.mrb[15].mxu0 }
 0x192   :  { %v1463_v63 = vld [vmem:[#allocation2 + $0x48] ss:$2 sm:$0xf]  ;;  %v1465_v36 = vld [vmem:[#allocation2 + $0x49] ss:$2 sm:$0xf]  ;;  %v3262_v38 = vpack.i.bf16 %v1514_v62, %v4549_v61  ;;  %v1456_v39 = vmax.f32 %v1454_v57, %v1455_v53  ;;  %v1360_v49 = vadd.f32 %v4494_v56, %v1359_v45 }
 0x193   :  { %v1467_v42 = vmax.f32 %v1463_v63, %v1465_v36  ;;  %v1459_v43 = vld [vmem:[#allocation2 + $0x40] ss:$2 sm:$0xf]  ;;  %v1461_v46 = vld [vmem:[#allocation2 + $0x41] ss:$2 sm:$0xf] }
 0x194   :  { %1398 = vst.msk [vmem:[#allocation2 + $0x68] sm:$0xff] %vm1384_vm2, %v1381_v58  ;;  %1397 = vst.msk [vmem:[#allocation2 + $0x60] sm:$0xff] %vm1384_vm2, %v1380_v59  ;;  %v1466_v41 = vmax.f32 %v1459_v43, %v1461_v46  ;;  %v1383_v44 = vmax.f32 %v1365_v37, 0.0  ;;  %3263 = vrot.lane.b32.xlu0 %v3262_v38, %s3452_s3  ;;  %v1475_v47 = vld [vmem:[#allocation2 + $0x58] ss:$2 sm:$0xf] }
 0x195   :  { %v1477_v48 = vld [vmem:[#allocation2 + $0x59] ss:$2 sm:$0xf]  ;;  %1457 = vst.msk [vmem:[#allocation3 + $0x19] sm:$0xf] %vm1420_vm3, %v1456_v39  ;;  %v1530_v50 = vld [vmem:[#allocation3 + $0x6] sm:$0xff] }
 0x196   :  { %v1468_v52 = vmax.f32 %v1466_v41, %v1467_v42  ;;  %v1479_v53 = vmax.f32 %v1475_v47, %v1477_v48  ;;  %v1471_v54 = vld [vmem:[#allocation2 + $0x50] ss:$2 sm:$0xf]  ;;  %v1473_v56 = vld [vmem:[#allocation2 + $0x51] ss:$2 sm:$0xf] }
 0x197   :  { %1400 = vst.msk [vmem:[#allocation2 + $0x78] sm:$0xff] %vm1384_vm2, %v1383_v44  ;;  %v1478_v55 = vmax.f32 %v1471_v54, %v1473_v56  ;;  %v1382_v57 = vmax.f32 %v1360_v49, 0.0  ;;  %v1531_v58 = vld [vmem:[#allocation3 + $0xe] sm:$0xff]  ;;  %v4572_v38 = vld [vmem:[#allocation3 + $0x1e] sm:$0xff] }
 0x198   :  { %v1556_v59 = vld [vmem:[#allocation3 + $0xd] sm:$0xff]  ;;  %1469 = vst.msk [vmem:[#allocation3 + $0x2b] sm:$0xf] %vm1420_vm3, %v1468_v52  ;;  %3179 = vmatprep.mubr.msk.f32.mxu0 %vm1384_vm2, %v1531_v58 }
 0x199   :  { %v1548_v60 = vld [vmem:[#allocation3 + $0xc] sm:$0xff]  ;;  %v3272_v62 = vpack.i.bf16 %v1530_v50, %v1556_v59  ;;  %v1480_v36 = vmax.f32 %v1478_v55, %v1479_v53  ;;  %1399 = vst.msk [vmem:[#allocation2 + $0x70] sm:$0xff] %vm1384_vm2, %v1382_v57 }
 0x19a   :  { %v3267_v63 = vpack.i.bf16 %v1522_v51, %v1548_v60  ;;  %v4570_v40 = vld [vmem:[#allocation3 + $0x10] sm:$0xff] }
 0x19b   :  { %v1515_v37 = vld [vmem:[#allocation3 + $0x9] sm:$0xff]  ;;  %3273 = vrot.lane.b32.xlu1 %v3272_v62, %s3453_s20  ;;  %v1483_v41 = vld [vmem:[#allocation2 + $0x60] ss:$2 sm:$0xf]  ;;  %1481 = vst.msk [vmem:[#allocation3 + $0x31] sm:$0xf] %vm1420_vm3, %v1480_v36 }
 0x19c   :  { %v1487_v39 = vld [vmem:[#allocation2 + $0x68] ss:$2 sm:$0xf]  ;;  %v1489_v42 = vld [vmem:[#allocation2 + $0x69] ss:$2 sm:$0xf]  ;;  %3268 = vrot.lane.b32.xlu0 %v3267_v63, %s3454_s8  ;;  %v3277_v48 = vpack.i.bf16 %v1515_v37, %v4570_v40 }
 0x19d   :  { %v1523_v43 = vld [vmem:[#allocation3 + $0xa] sm:$0xff]  ;;  %v1491_v46 = vmax.f32 %v1487_v39, %v1489_v42  ;;  %v1485_v44 = vld [vmem:[#allocation2 + $0x61] ss:$2 sm:$0xf]  ;;  %v1532_v47 = vld [vmem:[#allocation3 + $0x16] sm:$0xff] }
 0x19e   :  { %v1490_v45 = vmax.f32 %v1483_v41, %v1485_v44  ;;  %v1549_v49 = vld [vmem:[#allocation3 + $0x14] sm:$0xff]  ;;  %3180 = vmatmul.mubr.msk.f32.vlgmr.msra.gmra.mrb[16].mxu0 %vm1384_vm2, %v1532_v47  ;;  %v1550_v42 = vld [vmem:[#allocation3 + $0x1c] sm:$0xff] }
 0x19f   :  { %v1557_v50 = vld [vmem:[#allocation3 + $0x15] sm:$0xff]  ;;  %v3282_v53 = vpack.i.bf16 %v1523_v43, %v1549_v49  ;;  %3278 = vrot.lane.b32.xlu1 %v3277_v48, %s3452_s3  ;;  %3182 = vmatprep.mubr.msk.f32.mxu0 %vm1384_vm2, %v4572_v38  ;;  %v1534_v59 = vld [vmem:[#allocation3 + $0x26] sm:$0xff]  ;;  %v1558_v43 = vld [vmem:[#allocation3 + $0x1d] sm:$0xff] }
 0x1a0   :  { %v1499_v51 = vld [vmem:[#allocation2 + $0x78] ss:$2 sm:$0xf]  ;;  %v1501_v52 = vld [vmem:[#allocation2 + $0x79] ss:$2 sm:$0xf]  ;;  %v1492_v54 = vmax.f32 %v1490_v45, %v1491_v46  ;;  %v3287_v63 = vpack.i.bf16 %v1531_v58, %v1557_v50  ;;  %v3302_v58 = vpack.i.bf16 %v1532_v47, %v1558_v43 }
 0x1a1   :  { %v4580_v56 = vld [vmem:[#allocation3 + $0x18] sm:$0xff]  ;;  %v1503_v55 = vmax.f32 %v1499_v51, %v1501_v52  ;;  %3283 = vrot.lane.b32.xlu0 %v3282_v53, %s3454_s8  ;;  %v1495_v60 = vld [vmem:[#allocation2 + $0x70] ss:$2 sm:$0xf]  ;;  %v4592_v45 = vld [vmem:[#allocation3 + $0x20] sm:$0xff] }
 0x1a2   :  { %v1516_v57 = vld [vmem:[#allocation3 + $0x11] sm:$0xff]  ;;  %1493 = vst.msk [vmem:[#allocation3 + $0x37] sm:$0xf] %vm1420_vm3, %v1492_v54  ;;  %3183 = vmatmul.mubr.msk.f32.gmra.mrb[18].mxu0 %vm1384_vm2, %v1534_v59  ;;  %v1517_v48 = vld [vmem:[#allocation3 + $0x19] sm:$0xff]  ;;  %v1551_v49 = vld [vmem:[#allocation3 + $0x24] sm:$0xff] }
 0x1a3   :  { %v1497_v62 = vld [vmem:[#allocation2 + $0x71] ss:$2 sm:$0xf]  ;;  %v3292_v37 = vpack.i.bf16 %v1516_v57, %v4580_v56  ;;  %3288 = vrot.lane.b32.xlu1 %v3287_v63, %s3453_s20  ;;  %v3307_v50 = vpack.i.bf16 %v1517_v48, %v4592_v45  ;;  %v1525_v51 = vld [vmem:[#allocation3 + $0x1a] sm:$0xff]  ;;  %v1559_v53 = vld [vmem:[#allocation3 + $0x25] sm:$0xff] }
 0x1a4   :  { %v1502_v36 = vmax.f32 %v1495_v60, %v1497_v62  ;;  %v1524_v39 = vld [vmem:[#allocation3 + $0x12] sm:$0xff]  ;;  %v3312_v52 = vpack.i.bf16 %v1525_v51, %v1551_v49  ;;  %v4598_v54 = vld [vmem:[#allocation3 + $0x28] sm:$0xff]  ;;  %v3317_v47 = vpack.i.bf16 %v4572_v38, %v1559_v53 }
 0x1a5   :  { %v1535_v46 = vld [vmem:[#allocation3 + $0x2e] sm:$0xff]  ;;  %3293 = vrot.lane.b32.xlu0 %v3292_v37, %s3452_s3  ;;  %v3297_v44 = vpack.i.bf16 %v1524_v39, %v1550_v42  ;;  %v1526_v63 = vld [vmem:[#allocation3 + $0x22] sm:$0xff] }
 0x1a6   :  { %v1504_v41 = vmax.f32 %v1502_v36, %v1503_v55  ;;  %3185 = vmatprep.mubr.msk.f32.mxu0 %vm1384_vm2, %v1535_v46  ;;  %v1518_v55 = vld [vmem:[#allocation3 + $0x21] sm:$0xff]  ;;  %v1552_v36 = vld [vmem:[#allocation3 + $0x2c] sm:$0xff] }
 0x1a7   :  { %3298 = vrot.lane.b32.xlu1 %v3297_v44, %s3454_s8  ;;  %v3322_v62 = vpack.i.bf16 %v1518_v55, %v4598_v54  ;;  %v1560_v37 = vld [vmem:[#allocation3 + $0x2d] sm:$0xff]  ;;  %v3327_v39 = vpack.i.bf16 %v1526_v63, %v1552_v36 }
 0x1a8   :  { %1505 = vst.msk [vmem:[#allocation3 + $0x3d] sm:$0xf] %vm1420_vm3, %v1504_v41  ;;  %v3332_v42 = vpack.i.bf16 %v1534_v59, %v1560_v37  ;;  %v1519_v38 = vld [vmem:[#allocation3 + $0x29] sm:$0xff] }
 0x1a9   :  { %3303 = vrot.lane.b32.xlu0 %v3302_v58, %s3453_s20  ;;  %v4607_v43 = vld [vmem:[#allocation3 + $0x30] sm:$0xff]  ;;  %v1521_v36 = vld [vmem:[#allocation3 + $0x39] sm:$0x3] }
 0x1aa   :  { %v1527_v41 = vld [vmem:[#allocation3 + $0x2a] sm:$0xff]  ;;  %v1553_v44 = vld [vmem:[#allocation3 + $0x34] sm:$0xff]  ;;  %v3337_v58 = vpack.i.bf16 %v1519_v38, %v4607_v43 }
 0x1ab   :  { %3308 = vrot.lane.b32.xlu1 %v3307_v50, %s3452_s3  ;;  %v3342_v48 = vpack.i.bf16 %v1527_v41, %v1553_v44  ;;  %v1561_v49 = vld [vmem:[#allocation3 + $0x35] sm:$0xff]  ;;  %v1563_v44 = vld [vmem:[#allocation3 + $0x45] sm:$0x3] }
 0x1ac   :  { %v1520_v50 = vld [vmem:[#allocation3 + $0x31] sm:$0xff]  ;;  %v3347_v59 = vpack.i.bf16 %v1535_v46, %v1561_v49 }
 0x1ad   :  { %3313 = vrot.lane.b32.xlu0 %v3312_v52, %s3454_s8  ;;  %v1528_v53 = vld [vmem:[#allocation3 + $0x32] sm:$0xff] }
 0x1af   :  { %v1536_v57 = vld [vmem:[#allocation3 + $0x36] sm:$0xff]  ;;  %v1564_v60 = vld [vmem:[#allocation3 + $0x3e] sm:$0xff]  ;;  %3318 = vrot.lane.b32.xlu1 %v3317_v47, %s3453_s20  ;;  %v1565_v47 = vld [vmem:[#allocation3 + $0x46] sm:$0x3] }
 0x1b0   :  { %3186 = vmatmul.mubr.msk.f32.gmra.mrb[20].mxu0 %vm1384_vm2, %v1536_v57  ;;  %v1546_v51 = vld [vmem:[#allocation3 + $0x38] sm:$0xff]  ;;  %v1547_v37 = vld [vmem:[#allocation3 + $0x40] sm:$0x3] }
 0x1b1   :  { %3188 = vmatprep.mubr.msk.f32.mxu0 %vm1384_vm2, %v1564_v60  ;;  %3323 = vrot.lane.b32.xlu0 %v3322_v62, %s3452_s3  ;;  %v3352_v52 = vpack.i.bf16 %v1520_v50, %v1546_v51  ;;  %v1554_v55 = vld [vmem:[#allocation3 + $0x3c] sm:$0xff]  ;;  %v3367_v46 = vpack.i.bf16 %v1521_v36, %v1547_v37 }
 0x1b2   :  { %v1562_v60 = vld [vmem:[#allocation3 + $0x3d] sm:$0xff]  ;;  %v3357_v62 = vpack.i.bf16 %v1528_v53, %v1554_v55 }
 0x1b3   :  { %3328 = vrot.lane.b32.xlu1 %v3327_v39, %s3454_s8  ;;  %v3362_v63 = vpack.i.bf16 %v1536_v57, %v1562_v60  ;;  %v1529_v39 = vld [vmem:[#allocation3 + $0x3a] sm:$0x3]  ;;  %v1537_v41 = vld [vmem:[#allocation3 + $0x3e] sm:$0x3]  ;;  %v1506_v60 = vld [vmem:[#allocation3] sm:$0xff] }
 0x1b4   :  { %3189 = vmatmul.mubr.msk.f32.gmra.mrb[22].mxu0 %vm1384_vm2, %v1565_v47  ;;  %v1538_v47 = vld [vmem:[#allocation3 + $0x7] sm:$0xff] }
 0x1b5   :  { %3333 = vrot.lane.b32.xlu0 %v3332_v42, %s3453_s20  ;;  %v1555_v42 = vld [vmem:[#allocation3 + $0x44] sm:$0x3] }
 0x1b6   :  { %v3372_v38 = vpack.i.bf16 %v1529_v39, %v1555_v42 }
 0x1b7   :  { %3338 = vrot.lane.b32.xlu1 %v3337_v58, %s3452_s3  ;;  %v3377_v58 = vpack.i.bf16 %v1537_v41, %v1563_v44 }
 0x1b9   :  { %3343 = vrot.lane.b32.xlu0 %v3342_v48, %s3454_s8 }
 0x1bb   :  { %3348 = vrot.lane.b32.xlu1 %v3347_v59, %s3453_s20 }
 0x1bd   :  { %3353 = vrot.lane.b32.xlu0 %v3352_v52, %s3452_s3 }
 0x1bf   :  { %3358 = vrot.lane.b32.xlu1 %v3357_v62, %s3454_s8 }
 0x1c1   :  { %3363 = vrot.lane.b32.xlu0 %v3362_v63, %s3453_s20 }
 0x1c3   :  { %3368 = vrot.lane.b32.xlu1 %v3367_v46, %s3452_s3 }
 0x1c5   :  { %3373 = vrot.lane.b32.xlu0 %v3372_v38, %s3454_s8 }
 0x1c7   :  { %3378 = vrot.lane.b32.xlu1 %v3377_v58, %s3453_s20 }
 0x206   :  { %v3264_v57 = vpop.permute.xlu0 %3263 }
 0x207   :  { %v3266_v48 = vunpack.i.h.bf16 %v3264_v57  ;;  %v3265_v49 = vunpack.i.l.bf16 %v3264_v57 }
 0x209   :  { %v1784_v62 = vsel %vm1384_vm2, %v1538_v47, %v3265_v49  ;;  %v1758_v63 = vsel %vm1384_vm2, %v1506_v60, %v3266_v48 }
 0x20d   :  { %v3274_v50 = vpop.permute.xlu1 %3273 }
 0x20e   :  { %v3269_v51 = vpop.permute.xlu0 %3268  ;;  %v3276_v59 = vunpack.i.h.bf16 %v3274_v50  ;;  %v3275_v52 = vunpack.i.l.bf16 %v3274_v50  ;;  %v1539_v50 = vld [vmem:[#allocation3 + $0xf] sm:$0xff] }
 0x20f   :  { %v3271_v53 = vunpack.i.h.bf16 %v3269_v51  ;;  %v3270_v55 = vunpack.i.l.bf16 %v3269_v51 }
 0x211   :  { %v1792_v36 = vsel %vm1766_vm4, %v1784_v62, %v3270_v55  ;;  %v1767_v37 = vsel %vm1766_vm4, %v1758_v63, %v3271_v53  ;;  %v3279_v39 = vpop.permute.xlu1 %3278 }
 0x212   :  { %v1800_v42 = vsel %vm1775_vm5, %v1792_v36, %v3275_v52  ;;  %v1776_v46 = vsel %vm1775_vm5, %v1767_v37, %v3276_v59  ;;  %v3281_v38 = vunpack.i.h.bf16 %v3279_v39  ;;  %v3280_v41 = vunpack.i.l.bf16 %v3279_v39 }
 0x213   :  { %v3284_v44 = vpop.permute.xlu0 %3283  ;;  %1933 = vmatprep.mubr.f32.mxu1 %v1800_v42 }
 0x214   :  { %v3286_v58 = vunpack.i.h.bf16 %v3284_v44  ;;  %v3285_v57 = vunpack.i.l.bf16 %v3284_v44  ;;  %1934 = vmatmul.mubr.f32.vlgmr.msra.gmra.mrb[0].mxu1 %v1776_v46  ;;  %v1785_v49 = vsel %vm1384_vm2, %v1539_v50, %v3280_v41  ;;  %v1759_v48 = vsel %vm1384_vm2, %v4549_v61, %v3281_v38  ;;  %v1540_v61 = vld [vmem:[#allocation3 + $0x17] sm:$0xff] }
 0x215   :  { %v3289_v51 = vpop.permute.xlu1 %3288 }
 0x216   :  { %v3291_v53 = vunpack.i.h.bf16 %v3289_v51  ;;  %v3290_v55 = vunpack.i.l.bf16 %v3289_v51  ;;  %v1793_v59 = vsel %vm1766_vm4, %v1785_v49, %v3285_v57  ;;  %v1768_v62 = vsel %vm1766_vm4, %v1759_v48, %v3286_v58 }
 0x217   :  { %v3294_v47 = vpop.permute.xlu0 %3293 }
 0x218   :  { %v3296_v52 = vunpack.i.h.bf16 %v3294_v47  ;;  %v3295_v60 = vunpack.i.l.bf16 %v3294_v47  ;;  %v1801_v63 = vsel %vm1775_vm5, %v1793_v59, %v3290_v55  ;;  %v1777_v36 = vsel %vm1775_vm5, %v1768_v62, %v3291_v53  ;;  %v1541_v53 = vld [vmem:[#allocation3 + $0x1f] sm:$0xff] }
 0x219   :  { %v3299_v37 = vpop.permute.xlu1 %3298  ;;  %1938 = vmatprep.mubr.f32.mxu1 %v1801_v63 }
 0x21a   :  { %v3301_v39 = vunpack.i.h.bf16 %v3299_v37  ;;  %v3300_v42 = vunpack.i.l.bf16 %v3299_v37  ;;  %1939 = vmatmul.mubr.f32.gmra.mrb[2].mxu1 %v1777_v36  ;;  %v1786_v44 = vsel %vm1384_vm2, %v1540_v61, %v3295_v60  ;;  %v1760_v57 = vsel %vm1384_vm2, %v4570_v40, %v3296_v52 }
 0x21b   :  { %v3304_v46 = vpop.permute.xlu0 %3303 }
 0x21c   :  { %v3306_v38 = vunpack.i.h.bf16 %v3304_v46  ;;  %v3305_v41 = vunpack.i.l.bf16 %v3304_v46  ;;  %v1794_v58 = vsel %vm1766_vm4, %v1786_v44, %v3300_v42  ;;  %v1769_v50 = vsel %vm1766_vm4, %v1760_v57, %v3301_v39 }
 0x21d   :  { %v3309_v49 = vpop.permute.xlu1 %3308 }
 0x21e   :  { %v1802_v48 = vsel %vm1775_vm5, %v1794_v58, %v3305_v41  ;;  %v1778_v51 = vsel %vm1775_vm5, %v1769_v50, %v3306_v38  ;;  %v3311_v55 = vunpack.i.h.bf16 %v3309_v49  ;;  %v3310_v47 = vunpack.i.l.bf16 %v3309_v49 }
 0x21f   :  { %v3314_v59 = vpop.permute.xlu0 %3313  ;;  %1943 = vmatprep.mubr.f32.mxu1 %v1802_v48 }
 0x220   :  { %v3316_v62 = vunpack.i.h.bf16 %v3314_v59  ;;  %v3315_v63 = vunpack.i.l.bf16 %v3314_v59  ;;  %1944 = vmatmul.mubr.f32.gmra.mrb[4].mxu1 %v1778_v51  ;;  %v1787_v60 = vsel %vm1384_vm2, %v1541_v53, %v3310_v47  ;;  %v1761_v40 = vsel %vm1384_vm2, %v4580_v56, %v3311_v55  ;;  %v1542_v56 = vld [vmem:[#allocation3 + $0x27] sm:$0xff] }
 0x221   :  { %v3319_v52 = vpop.permute.xlu1 %3318 }
 0x222   :  { %v3321_v36 = vunpack.i.h.bf16 %v3319_v52  ;;  %v3320_v37 = vunpack.i.l.bf16 %v3319_v52  ;;  %v1795_v61 = vsel %vm1766_vm4, %v1787_v60, %v3315_v63  ;;  %v1770_v38 = vsel %vm1766_vm4, %v1761_v40, %v3316_v62 }
 0x223   :  { %v3324_v39 = vpop.permute.xlu0 %3323 }
 0x224   :  { %v3326_v42 = vunpack.i.h.bf16 %v3324_v39  ;;  %v3325_v46 = vunpack.i.l.bf16 %v3324_v39  ;;  %v1803_v41 = vsel %vm1775_vm5, %v1795_v61, %v3320_v37  ;;  %v1779_v44 = vsel %vm1775_vm5, %v1770_v38, %v3321_v36 }
 0x225   :  { %v3329_v57 = vpop.permute.xlu1 %3328  ;;  %1948 = vmatprep.mubr.f32.mxu1 %v1803_v41 }
 0x226   :  { %v3331_v58 = vunpack.i.h.bf16 %v3329_v57  ;;  %v3330_v50 = vunpack.i.l.bf16 %v3329_v57  ;;  %1949 = vmatmul.mubr.f32.gmra.mrb[6].mxu1 %v1779_v44  ;;  %v1788_v53 = vsel %vm1384_vm2, %v1542_v56, %v3325_v46  ;;  %v1762_v55 = vsel %vm1384_vm2, %v4592_v45, %v3326_v42  ;;  %v1543_v46 = vld [vmem:[#allocation3 + $0x2f] sm:$0xff] }
 0x227   :  { %v3334_v49 = vpop.permute.xlu0 %3333 }
 0x228   :  { %v3336_v48 = vunpack.i.h.bf16 %v3334_v49  ;;  %v3335_v51 = vunpack.i.l.bf16 %v3334_v49  ;;  %v1796_v47 = vsel %vm1766_vm4, %v1788_v53, %v3330_v50  ;;  %v1771_v59 = vsel %vm1766_vm4, %v1762_v55, %v3331_v58 }
 0x229   :  { %v3339_v62 = vpop.permute.xlu1 %3338 }
 0x22a   :  { %v1804_v63 = vsel %vm1775_vm5, %v1796_v47, %v3335_v51  ;;  %v1780_v60 = vsel %vm1775_vm5, %v1771_v59, %v3336_v48  ;;  %v3341_v40 = vunpack.i.h.bf16 %v3339_v62  ;;  %v3340_v52 = vunpack.i.l.bf16 %v3339_v62 }
 0x22b   :  { %v3344_v36 = vpop.permute.xlu0 %3343  ;;  %1953 = vmatprep.mubr.f32.mxu1 %v1804_v63 }
 0x22c   :  { %v3346_v37 = vunpack.i.h.bf16 %v3344_v36  ;;  %v3345_v39 = vunpack.i.l.bf16 %v3344_v36  ;;  %1954 = vmatmul.mubr.f32.gmra.mrb[8].mxu1 %v1780_v60  ;;  %v1789_v61 = vsel %vm1384_vm2, %v1543_v46, %v3340_v52  ;;  %v1763_v45 = vsel %vm1384_vm2, %v4598_v54, %v3341_v40  ;;  %v1544_v54 = vld [vmem:[#allocation3 + $0x37] sm:$0xff] }
 0x22d   :  { %v3349_v42 = vpop.permute.xlu1 %3348 }
 0x22e   :  { %v3351_v38 = vunpack.i.h.bf16 %v3349_v42  ;;  %v3350_v41 = vunpack.i.l.bf16 %v3349_v42  ;;  %v1797_v50 = vsel %vm1766_vm4, %v1789_v61, %v3345_v39  ;;  %v1772_v49 = vsel %vm1766_vm4, %v1763_v45, %v3346_v37 }
 0x22f   :  { %v3354_v44 = vpop.permute.xlu0 %3353 }
 0x230   :  { %v3356_v57 = vunpack.i.h.bf16 %v3354_v44  ;;  %v3355_v58 = vunpack.i.l.bf16 %v3354_v44  ;;  %v1805_v56 = vsel %vm1775_vm5, %v1797_v50, %v3350_v41  ;;  %v1781_v48 = vsel %vm1775_vm5, %v1772_v49, %v3351_v38  ;;  %v1545_v41 = vld [vmem:[#allocation3 + $0x3f] sm:$0x3]  ;;  %v1513_v44 = vld [vmem:[#allocation3 + $0x38] sm:$0x3] }
 0x231   :  { %v3359_v51 = vpop.permute.xlu1 %3358  ;;  %1958 = vmatprep.mubr.f32.mxu1 %v1805_v56 }
 0x232   :  { %v3361_v53 = vunpack.i.h.bf16 %v3359_v51  ;;  %v3360_v55 = vunpack.i.l.bf16 %v3359_v51  ;;  %1959 = vmatmul.mubr.f32.gmra.mrb[10].mxu1 %v1781_v48  ;;  %v1790_v63 = vsel %vm1384_vm2, %v1544_v54, %v3355_v58  ;;  %v1764_v60 = vsel %vm1384_vm2, %v4607_v43, %v3356_v57 }
 0x233   :  { %v3364_v47 = vpop.permute.xlu0 %3363 }
 0x234   :  { %v3366_v59 = vunpack.i.h.bf16 %v3364_v47  ;;  %v3365_v62 = vunpack.i.l.bf16 %v3364_v47  ;;  %v1798_v40 = vsel %vm1766_vm4, %v1790_v63, %v3360_v55  ;;  %v1773_v52 = vsel %vm1766_vm4, %v1764_v60, %v3361_v53 }
 0x235   :  { %v3369_v36 = vpop.permute.xlu1 %3368 }
 0x236   :  { %v1806_v37 = vsel %vm1775_vm5, %v1798_v40, %v3365_v62  ;;  %v1782_v39 = vsel %vm1775_vm5, %v1773_v52, %v3366_v59  ;;  %v3371_v46 = vunpack.i.h.bf16 %v3369_v36  ;;  %v3370_v61 = vunpack.i.l.bf16 %v3369_v36  ;;  %v4681_v36 = vld [vmem:[%s4831_s4] ss:$0 sm:$0xff] }
 0x237   :  { %v3374_v45 = vpop.permute.xlu0 %3373  ;;  %1963 = vmatprep.mubr.f32.mxu1 %v1806_v37 }
 0x238   :  { %v3376_v42 = vunpack.i.h.bf16 %v3374_v45  ;;  %v3375_v38 = vunpack.i.l.bf16 %v3374_v45  ;;  %1964 = vmatmul.mubr.f32.gmra.mrb[12].mxu1 %v1782_v39  ;;  %v1791_v43 = vsel %vm1384_vm2, %v1545_v41, %v3370_v61  ;;  %v1765_v57 = vsel %vm1384_vm2, %v1513_v44, %v3371_v46 }
 0x239   :  { %v3379_v58 = vpop.permute.xlu1 %3378 }
 0x23a   :  { %v3381_v50 = vunpack.i.h.bf16 %v3379_v58  ;;  %v3380_v49 = vunpack.i.l.bf16 %v3379_v58  ;;  %v1799_v56 = vsel %vm1766_vm4, %v1791_v43, %v3375_v38  ;;  %v1774_v48 = vsel %vm1766_vm4, %v1765_v57, %v3376_v42 }
 0x23c   :  { %v1807_v51 = vsel %vm1775_vm5, %v1799_v56, %v3380_v49  ;;  %v1783_v53 = vsel %vm1775_vm5, %v1774_v48, %v3381_v50 }
 0x23d   :  { %1968 = vmatprep.mubr.f32.mxu1 %v1807_v51 }
 0x23e   :  { %1969 = vmatmul.mubr.f32.gmra.mrb[14].mxu1 %v1783_v53 }
 0x271   :  { %v3181_v55 = vpop.f32.mrb[16].mxu0 }
 0x272   :  { %v2040_v47 = vpop.f32.mrb[17].mxu0 }
 0x275   :  { %v3184_v54 = vpop.f32.mrb[18].mxu0 }
 0x276   :  { %v2050_v59 = vpop.f32.mrb[19].mxu0 }
 0x283   :  { %v3187_v62 = vpop.f32.mrb[20].mxu0 }
 0x284   :  { %v2060_v63 = vpop.f32.mrb[21].mxu0 }
 0x287   :  { %v4676_v60 = vpop.f32.mrb[22].mxu0 }
 0x288   :  { %v2070_v40 = vpop.f32.mrb[23].mxu0 }
 0x2e7   :  { %v3035_v52 = vpop.f32.mrb[0].mxu1 }
 0x2e8   :  { %v3036_v37 = vpop.f32.mrb[1].mxu1 }
 0x2e9   :  { %v3037_v39 = vadd.f32 %v3036_v37, %v3035_v52 }
 0x2eb   :  { %v1936_v46 = vadd.f32 %v3037_v39, %v4681_v36 }
 0x2ed   :  { %v2041_v61 = vadd.f32 %v2040_v47, %v1936_v46  ;;  %v3038_v45 = vpop.f32.mrb[2].mxu1 }
 0x2ee   :  { %v3039_v38 = vpop.f32.mrb[3].mxu1 }
 0x2ef   :  { %v2079_v42 = vmax.f32 %v2041_v61, 0.0  ;;  %v3040_v41 = vadd.f32 %v3039_v38, %v3038_v45 }
 0x2f1   :  { %2087 = vst.msk [vmem:[#allocation4] sm:$0xff] %vm1766_vm4, %v2079_v42  ;;  %v1941_v44 = vadd.f32 %v3040_v41, %v4681_v36 }
 0x2f3   :  { %v3041_v43 = vpop.f32.mrb[4].mxu1  ;;  %v2046_v57 = vadd.f32 %v3181_v55, %v1941_v44 }
 0x2f4   :  { %v3042_v58 = vpop.f32.mrb[5].mxu1 }
 0x2f5   :  { %v3043_v50 = vadd.f32 %v3042_v58, %v3041_v43  ;;  %v2080_v49 = vmax.f32 %v2046_v57, 0.0 }
 0x2f7   :  { %v1946_v56 = vadd.f32 %v3043_v50, %v4681_v36  ;;  %2088 = vst.msk [vmem:[#allocation4 + $0x8] sm:$0xff] %vm1766_vm4, %v2080_v49 }
 0x2f8   :  { %v2100_v54 = vld [vmem:[#allocation4] ss:$2 sm:$0x3]  ;;  %v2102_v52 = vld [vmem:[#allocation4 + $0x1] ss:$2 sm:$0x3] }
 0x2f9   :  { %v2051_v48 = vadd.f32 %v2050_v59, %v1946_v56  ;;  %v3044_v51 = vpop.f32.mrb[6].mxu1  ;;  %v2107_v45 = vmax.f32 %v2100_v54, %v2102_v52 }
 0x2fa   :  { %v3045_v47 = vpop.f32.mrb[7].mxu1 }
 0x2fb   :  { %v2081_v53 = vmax.f32 %v2051_v48, 0.0 }
 0x2fd   :  { %2089 = vst.msk [vmem:[#allocation4 + $0x10] sm:$0xff] %vm1766_vm4, %v2081_v53 }
 0x2fe   :  { %v2104_v39 = vld [vmem:[#allocation4 + $0x6] ss:$2 sm:$0x3]  ;;  %v2106_v61 = vld [vmem:[#allocation4 + $0x7] ss:$2 sm:$0x3] }
 0x2ff   :  { %v3047_v37 = vpop.f32.mrb[8].mxu1  ;;  %v2108_v42 = vmax.f32 %v2104_v39, %v2106_v61  ;;  %v2112_v38 = vld [vmem:[#allocation4 + $0xc] ss:$2 sm:$0x3] }
 0x300   :  { %v3048_v46 = vpop.f32.mrb[9].mxu1  ;;  %v2114_v41 = vld [vmem:[#allocation4 + $0xd] ss:$2 sm:$0x3] }
 0x301   :  { %v3049_v55 = vadd.f32 %v3048_v46, %v3047_v37  ;;  %v2109_v59 = vmax.f32 %v2107_v45, %v2108_v42  ;;  %v2119_v50 = vmax.f32 %v2112_v38, %v2114_v41 }
 0x303   :  { %v1956_v44 = vadd.f32 %v3049_v55, %v4681_v36  ;;  %2110 = vst.msk [vmem:[#allocation5 + $0x5] sm:$0x3] %vm2094_vm6, %v2109_v59 }
 0x304   :  { %v2116_v43 = vld [vmem:[#allocation4 + $0x12] ss:$2 sm:$0x3]  ;;  %v2118_v57 = vld [vmem:[#allocation4 + $0x13] ss:$2 sm:$0x3] }
 0x305   :  { %v2061_v58 = vadd.f32 %v2060_v63, %v1956_v44  ;;  %v2120_v49 = vmax.f32 %v2116_v43, %v2118_v57  ;;  %v3050_v56 = vpop.f32.mrb[10].mxu1 }
 0x306   :  { %v3051_v51 = vpop.f32.mrb[11].mxu1 }
 0x307   :  { %v2083_v48 = vmax.f32 %v2061_v58, 0.0  ;;  %v2121_v53 = vmax.f32 %v2119_v50, %v2120_v49  ;;  %v3052_v47 = vadd.f32 %v3051_v51, %v3050_v56 }
 0x309   :  { %2091 = vst.msk [vmem:[#allocation4 + $0x20] sm:$0xff] %vm1766_vm4, %v2083_v48  ;;  %v1961_v54 = vadd.f32 %v3052_v47, %v4681_v36 }
 0x30a   :  { %2122 = vst.msk [vmem:[#allocation5 + $0x9] sm:$0x3] %vm2094_vm6, %v2121_v53 }
 0x30b   :  { %v3053_v52 = vpop.f32.mrb[12].mxu1  ;;  %v2066_v37 = vadd.f32 %v3187_v62, %v1961_v54 }
 0x30c   :  { %v3054_v39 = vpop.f32.mrb[13].mxu1 }
 0x30d   :  { %v3055_v46 = vadd.f32 %v3054_v39, %v3053_v52  ;;  %v2084_v63 = vmax.f32 %v2066_v37, 0.0 }
 0x30f   :  { %v1966_v61 = vadd.f32 %v3055_v46, %v4681_v36  ;;  %2092 = vst.msk [vmem:[#allocation4 + $0x28] sm:$0xff] %vm1766_vm4, %v2084_v63 }
 0x310   :  { %v2124_v44 = vld [vmem:[#allocation4 + $0x24] ss:$2 sm:$0x3]  ;;  %v2126_v59 = vld [vmem:[#allocation4 + $0x25] ss:$2 sm:$0x3] }
 0x311   :  { %v2071_v55 = vadd.f32 %v2070_v40, %v1966_v61  ;;  %v3056_v45 = vpop.f32.mrb[14].mxu1  ;;  %v2131_v50 = vmax.f32 %v2124_v44, %v2126_v59 }
 0x312   :  { %v3057_v38 = vpop.f32.mrb[15].mxu1 }
 0x313   :  { %v2085_v42 = vmax.f32 %v2071_v55, 0.0  ;;  %v3058_v41 = vadd.f32 %v3057_v38, %v3056_v45 }
 0x315   :  { %2093 = vst.msk [vmem:[#allocation4 + $0x30] sm:$0xff] %vm1766_vm4, %v2085_v42  ;;  %v1971_v43 = vadd.f32 %v3058_v41, %v4681_v36 }
 0x316   :  { %v2128_v57 = vld [vmem:[#allocation4 + $0x2a] ss:$2 sm:$0x3]  ;;  %v2130_v62 = vld [vmem:[#allocation4 + $0x2b] ss:$2 sm:$0x3] }
 0x317   :  { %v2076_v58 = vadd.f32 %v4676_v60, %v1971_v43  ;;  %v2132_v49 = vmax.f32 %v2128_v57, %v2130_v62 }
 0x319   :  { %v2086_v56 = vmax.f32 %v2076_v58, 0.0  ;;  %v2133_v48 = vmax.f32 %v2131_v50, %v2132_v49 }
 0x31b   :  { %2095 = vst.msk [vmem:[#allocation4 + $0x38] sm:$0x3] %vm2094_vm6, %v2086_v56  ;;  %2134 = vst.msk [vmem:[#allocation5 + $0x15] sm:$0x3] %vm2094_vm6, %v2133_v48 }
 0x31c   :  { %v2136_v40 = vld [vmem:[#allocation4 + $0x30] ss:$2 sm:$0x3]  ;;  %v2138_v51 = vld [vmem:[#allocation4 + $0x31] ss:$2 sm:$0x3] }
 0x31d   :  { %v2143_v54 = vmax.f32 %v2136_v40, %v2138_v51 }
 0x322   :  { %v2140_v53 = vld [vmem:[#allocation4 + $0x36] ss:$2 sm:$0x3]  ;;  %v2142_v47 = vld [vmem:[#allocation4 + $0x37] ss:$2 sm:$0x3] }
 0x323   :  { %v2144_v52 = vmax.f32 %v2140_v53, %v2142_v47 }
 0x325   :  { %v2145_v37 = vmax.f32 %v2143_v54, %v2144_v52 }
 0x327   :  { %2146 = vst.msk [vmem:[#allocation5 + $0x19] sm:$0x3] %vm2094_vm6, %v2145_v37 }
 0x328   :  { %3443 = dma.done.wait [#allocation11], 4608 }
 0x329   :  { %3444 = vsyncadd [#allocation11], 4294962688  ;;  %3071 = vmatprep.subr.bf16.mxu1 %v3561_v8  ;;  %3099 = vmatprep.subr.bf16.mxu0 %v3641_v24  ;;  %v2160_v60 = vld [vmem:[#allocation5 + $0x4] sm:$0xff]  ;;  %v2161_v8 = vld [vmem:[#allocation5 + $0xc] sm:$0xff] }
 0x32a   :  { %3072 = vmatpush3.bf16.msra.mxu1 %v3521_v0  ;;  %3100 = vmatpush3.bf16.msra.mxu0 %v3601_v16  ;;  %v2155_v36 = vld [vmem:[#allocation5 + $0x9] sm:$0xff]  ;;  %v3392_v24 = vpack.i.bf16 %v2161_v8, %v2160_v60  ;;  %v2171_v39 = vld [vmem:[#allocation5 + $0x11] sm:$0xff] }
 0x32b   :  { %3073 = vmatprep.subr.bf16.mxu1 %v3566_v9  ;;  %3101 = vmatprep.subr.bf16.mxu0 %v3646_v25  ;;  %v2166_v0 = vld [vmem:[#allocation5 + $0x6] sm:$0xff]  ;;  %v2167_v46 = vld [vmem:[#allocation5 + $0xe] sm:$0xff]  ;;  %v3382_v16 = vpack.i.bf16 %v2171_v39, %v2155_v36 }
 0x32c   :  { %3393 = vrot.lane.b32.xlu1 %v3392_v24, %s3454_s8  ;;  %v2154_v9 = vld [vmem:[#allocation5 + $0x1] sm:$0xff]  ;;  %v2159_v44 = vld [vmem:[#allocation5 + $0x12] sm:$0x3f] }
 0x32d   :  { %3383 = vrot.lane.b32.xlu0 %v3382_v16, %s3454_s8  ;;  %v2153_v43 = vld [vmem:[#allocation5 + $0x10] sm:$0x3f] }
 0x32e   :  { %3074 = vmatpush3.bf16.msra.mxu1 %v3526_v1  ;;  %3102 = vmatpush3.bf16.msra.mxu0 %v3606_v17  ;;  %v3387_v1 = vpack.i.bf16 %v2167_v46, %v2166_v0  ;;  %v2162_v17 = vld [vmem:[#allocation5 + $0x14] sm:$0x3f] }
 0x32f   :  { %3075 = vmatprep.subr.bf16.mxu1 %v3571_v10  ;;  %3103 = vmatprep.subr.bf16.mxu0 %v3651_v26  ;;  %v2156_v10 = vld [vmem:[#allocation5 + $0x11] sm:$0x3f]  ;;  %v2172_v26 = vld [vmem:[#allocation5 + $0x19] sm:$0x3f] }
 0x330   :  { %v2168_v25 = vld [vmem:[#allocation5 + $0x16] sm:$0x3f]  ;;  %2178 = vrot.lane.b32.xlu1 %v2154_v9, %s3454_s8 }
 0x331   :  { %3388 = vrot.lane.b32.xlu0 %v3387_v1, %s3454_s8  ;;  %v2165_v50 = vld [vmem:[#allocation5 + $0x15] sm:$0x3f] }
 0x332   :  { %3076 = vmatpush3.bf16.msra.mxu1 %v3531_v2  ;;  %3104 = vmatpush3.bf16.msra.mxu0 %v3611_v18  ;;  %v3402_v2 = vpack.i.bf16 %v2156_v10, %v2162_v17  ;;  %v2152_v18 = vld [vmem:[#allocation5 + $0x8] sm:$0xff]  ;;  %v2170_v49 = vld [vmem:[#allocation5 + $0x18] sm:$0x3f] }
 0x333   :  { %3077 = vmatprep.subr.bf16.mxu1 %v3576_v11  ;;  %3105 = vmatprep.subr.bf16.mxu0 %v3656_v27  ;;  %v3397_v11 = vpack.i.bf16 %v2168_v25, %v2172_v26  ;;  %v2173_v60 = vld [vmem:[#allocation5 + $0x12] sm:$0xff] }
 0x334   :  { %3403 = vrot.lane.b32.xlu1 %v3402_v2, %s3454_s8 }
 0x335   :  { %3398 = vrot.lane.b32.xlu0 %v3397_v11, %s3454_s8 }
 0x336   :  { %3078 = vmatpush3.bf16.msra.mxu1 %v3536_v3  ;;  %3106 = vmatpush3.bf16.msra.mxu0 %v3616_v19 }
 0x337   :  { %3079 = vmatprep.subr.bf16.mxu1 %v3581_v12  ;;  %3107 = vmatprep.subr.bf16.mxu0 %v3661_v28 }
 0x33a   :  { %3080 = vmatpush3.bf16.msra.mxu1 %v3541_v4  ;;  %3108 = vmatpush3.bf16.msra.mxu0 %v3621_v20  ;;  %v2157_v4 = vld [vmem:[#allocation5 + $0x2] sm:$0xff] }
 0x33b   :  { %3081 = vmatprep.subr.bf16.mxu1 %v3586_v13  ;;  %3109 = vmatprep.subr.bf16.mxu0 %v3666_v29  ;;  %v2163_v29 = vld [vmem:[#allocation5 + $0x5] sm:$0xff] }
 0x33e   :  { %3082 = vmatpush3.bf16.msra.mxu1 %v3546_v5  ;;  %3110 = vmatpush3.bf16.msra.mxu0 %v3626_v21  ;;  %v2158_v5 = vld [vmem:[#allocation5 + $0xa] sm:$0xff]  ;;  %v2151_v21 = vld [vmem:[#allocation5] sm:$0xff] }
 0x33f   :  { %3083 = vmatprep.subr.bf16.mxu1 %v3591_v14  ;;  %3111 = vmatprep.subr.bf16.mxu0 %v3671_v30  ;;  %v2164_v30 = vld [vmem:[#allocation5 + $0xd] sm:$0xff]  ;;  %v2234_v24 = vpack.c.bf16 %v2173_v60, %v2158_v5 }
 0x342   :  { %3084 = vmatpush3.bf16.msra.mxu1 %v3551_v6  ;;  %3112 = vmatpush3.bf16.msra.mxu0 %v3631_v22  ;;  %v2169_v6 = vld [vmem:[#allocation5 + $0x10] sm:$0xff] }
 0x343   :  { %3085 = vmatprep.subr.bf16.mxu1 %v3596_v15  ;;  %3113 = vmatprep.subr.bf16.mxu0 %v3676_v31 }
 0x346   :  { %3086 = vmatpush3.bf16.msra.mxu1 %v3556_v7  ;;  %3114 = vmatpush3.bf16.msra.mxu0 %v3636_v23 }
 0x347   :  { %3191 = vmatprep.subr.bf16.mxu0 %v3681_v32 }
 0x39e   :  { %v3394_v3 = vpop.permute.xlu1 %3393 }
 0x39f   :  { %v3396_v12 = vunpack.i.h.bf16 %v3394_v3  ;;  %v3395_v13 = vunpack.i.l.bf16 %v3394_v3  ;;  %v3384_v14 = vpop.permute.xlu0 %3383 }
 0x3a0   :  { %v3386_v19 = vunpack.i.h.bf16 %v3384_v14  ;;  %v3385_v20 = vunpack.i.l.bf16 %v3384_v14 }
 0x3a1   :  { %v2222_v15 = vsel %vm1766_vm4, %v2157_v4, %v3395_v13  ;;  %v2223_v22 = vsel %vm1766_vm4, %v2158_v5, %v3396_v12 }
 0x3a2   :  { %v2179_v7 = vpop.permute.xlu1 %2178  ;;  %v2220_v23 = vsel %vm1766_vm4, %v2152_v18, %v3385_v20  ;;  %v2228_v27 = vsel %vm1766_vm4, %v2169_v6, %v3386_v19  ;;  %v2231_v28 = vpack.c.bf16 %v2223_v22, %v2222_v15 }
 0x3a3   :  { %v3389_v31 = vpop.permute.xlu0 %3388  ;;  %v2219_v63 = vsel %vm1766_vm4, %v2151_v21, %v2179_v7  ;;  %v2233_v61 = vpack.c.bf16 %v2228_v27, %v2220_v23 }
 0x3a4   :  { %v3391_v55 = vunpack.i.h.bf16 %v3389_v31  ;;  %v3390_v45 = vunpack.i.l.bf16 %v3389_v31  ;;  %v2230_v42 = vpack.c.bf16 %v2220_v23, %v2219_v63  ;;  %2321 = vmatprep.mubr.bf16.mxu1 %v2231_v28 }
 0x3a5   :  { %2369 = vmatprep.mubr.bf16.mxu0 %v2233_v61 }
 0x3a6   :  { %v2226_v38 = vsel %vm1766_vm4, %v2164_v30, %v3391_v55  ;;  %v2225_v41 = vsel %vm1766_vm4, %v2163_v29, %v3390_v45  ;;  %2322 = vmatmul.mubr.bf16.vlgmr.msra.gmra.mrb[16].mxu1 %v2230_v42  ;;  %v3404_v59 = vpop.permute.xlu1 %3403 }
 0x3a7   :  { %v3406_v57 = vunpack.i.h.bf16 %v3404_v59  ;;  %v3405_v62 = vunpack.i.l.bf16 %v3404_v59  ;;  %v2232_v58 = vpack.c.bf16 %v2226_v38, %v2225_v41  ;;  %v3399_v56 = vpop.permute.xlu0 %3398 }
 0x3a8   :  { %v3401_v48 = vunpack.i.h.bf16 %v3399_v56  ;;  %v3400_v40 = vunpack.i.l.bf16 %v3399_v56 }
 0x3a9   :  { %v2221_v51 = vsel %vm1766_vm4, %v2153_v43, %v3406_v57  ;;  %v2224_v53 = vsel %vm1766_vm4, %v2159_v44, %v3405_v62  ;;  %2370 = vmatmul.mubr.bf16.vlgmr.msra.gmra.mrb[24].mxu0 %v2232_v58 }
 0x3aa   :  { %v2235_v47 = vpack.c.bf16 %v2221_v51, %v2221_v51  ;;  %v2236_v54 = vpack.c.bf16 %v2224_v53, %v2224_v53  ;;  %3192 = vmatpush3.bf16.msra.mxu0 %v3681_v32  ;;  %v2227_v52 = vsel %vm1766_vm4, %v2165_v50, %v3401_v48  ;;  %v2229_v37 = vsel %vm1766_vm4, %v2170_v49, %v3400_v40  ;;  %v2174_v32 = vld [vmem:[#allocation5 + $0x1a] sm:$0x3f] }
 0x3ab   :  { %v2238_v8 = vpack.c.bf16 %v2229_v37, %v2229_v37  ;;  %3193 = vmatprep.subr.bf16.mxu0 %v3686_v33  ;;  %v2237_v36 = vpack.c.bf16 %v2227_v52, %v2227_v52  ;;  %v2239_v39 = vpack.c.bf16 %v2174_v32, %v2174_v32 }
 0x3ac   :  { %2329 = vmatprep.mubr.bf16.mxu1 %v2236_v54 }
 0x3ad   :  { %2377 = vmatprep.mubr.bf16.mxu0 %v2238_v8 }
 0x3ae   :  { %3194 = vmatpush3.bf16.msra.mxu0 %v3686_v33  ;;  %2330 = vmatmul.mubr.bf16.gmra.mrb[20].mxu1 %v2235_v47  ;;  %v2973_v33 = vld [vmem:[%s4832_s5] ss:$0 sm:$0xff] }
 0x3af   :  { %3195 = vmatprep.subr.bf16.mxu0 %v3691_v34 }
 0x3b1   :  { %2378 = vmatmul.mubr.bf16.gmra.mrb[28].mxu0 %v2237_v36 }
 0x3b2   :  { %3196 = vmatpush3.bf16.msra.mxu0 %v3691_v34  ;;  %3199 = vmatprep.mubr.msk.bf16.mxu0 %vm1766_vm4, %v2234_v24 }
 0x3b3   :  { %3197 = vmatprep.subr.bf16.mxu0 %v3696_v35 }
 0x3b6   :  { %3198 = vmatpush3.bf16.msra.mxu0 %v3696_v35 }
 0x3b9   :  { %3200 = vmatmul.mubr.msk.bf16.vlgmr.msra.gmra.mrb[32].mxu0 %vm1766_vm4, %v2239_v39 }
 0x479   :  { %v3087_v0 = vpop.f32.mrb[16].mxu1 }
 0x47a   :  { %v3088_v46 = vpop.f32.mrb[17].mxu1 }
 0x47b   :  { %v3089_v16 = vadd.f32 %v3088_v46, %v3087_v0  ;;  %v3090_v1 = vpop.f32.mrb[18].mxu1 }
 0x47c   :  { %v3115_v9 = vpop.f32.mrb[24].mxu0  ;;  %v3091_v34 = vpop.f32.mrb[19].mxu1 }
 0x47d   :  { %v2324_v10 = vadd.f32 %v3089_v16, %v2973_v33  ;;  %v3116_v17 = vpop.f32.mrb[25].mxu0 }
 0x47e   :  { %v3117_v25 = vadd.f32 %v3116_v17, %v3115_v9  ;;  %v3118_v26 = vpop.f32.mrb[26].mxu0 }
 0x47f   :  { %v3119_v2 = vpop.f32.mrb[27].mxu0 }
 0x480   :  { %v2372_v11 = vadd.f32 %v3117_v25, %v2324_v10 }
 0x481   :  { %v3093_v3 = vpop.f32.mrb[20].mxu1 }
 0x482   :  { %v3094_v35 = vpop.f32.mrb[21].mxu1 }
 0x483   :  { %v3095_v4 = vadd.f32 %v3094_v35, %v3093_v3  ;;  %v3096_v5 = vpop.f32.mrb[22].mxu1 }
 0x484   :  { %v3121_v12 = vpop.f32.mrb[28].mxu0  ;;  %v3097_v13 = vpop.f32.mrb[23].mxu1 }
 0x485   :  { %v2332_v14 = vadd.f32 %v3095_v4, %v2973_v33  ;;  %v3122_v18 = vpop.f32.mrb[29].mxu0 }
 0x486   :  { %v3123_v6 = vadd.f32 %v3122_v18, %v3121_v12  ;;  %v3124_v19 = vpop.f32.mrb[30].mxu0 }
 0x487   :  { %v3125_v20 = vpop.f32.mrb[31].mxu0 }
 0x488   :  { %v2380_v21 = vadd.f32 %v3123_v6, %v2332_v14 }
 0x48c   :  { %v3201_v15 = vpop.f32.mrb[32].mxu0 }
 0x48d   :  { %v2428_v22 = vadd.f32 %v3201_v15, %v2380_v21  ;;  %v2419_v7 = vpop.f32.mrb[33].mxu0 }
 0x48e   :  { %v2420_v23 = vadd.f32 %v2419_v7, %v2372_v11  ;;  %v3202_v27 = vpop.f32.mrb[34].mxu0 }
 0x48f   :  { %v2435_v28 = vmax.f32 %v2428_v22, 0.0  ;;  %v2422_v29 = vpop.f32.mrb[35].mxu0 }
 0x490   :  { %v2433_v30 = vmax.f32 %v2420_v23, 0.0 }
 0x491   :  { %2438 = vst [vmem:[#allocation6 + $0x10] sm:$0x3f] %v2435_v28 }
 0x492   :  { %2436 = vst [vmem:[#allocation6] sm:$0xff] %v2433_v30 }
 0x498   :  { %v2447_v31 = vld [vmem:[#allocation6 + $0x10] sm:$0x1]  ;;  %v2448_v63 = vld [vmem:[#allocation6 + $0x11] sm:$0x1]  ;;  %v2450_v61 = vld [vmem:[#allocation6 + $0x14] sm:$0x1] }
 0x499   :  { %v2449_v55 = vmax.f32 %v2447_v31, %v2448_v63  ;;  %v2451_v45 = vld [vmem:[#allocation6 + $0x15] sm:$0x1]  ;;  %v2439_v42 = vld [vmem:[#allocation6] sm:$0x1]  ;;  %v2440_v38 = vld [vmem:[#allocation6 + $0x1] sm:$0x1] }
 0x49a   :  { %v2452_v41 = vmax.f32 %v2450_v61, %v2451_v45  ;;  %v2441_v44 = vmax.f32 %v2439_v42, %v2440_v38  ;;  %v2442_v59 = vld [vmem:[#allocation6 + $0x4] sm:$0x1]  ;;  %v2443_v43 = vld [vmem:[#allocation6 + $0x5] sm:$0x1] }
 0x49b   :  { %v2444_v57 = vmax.f32 %v2442_v59, %v2443_v43 }
 0x49c   :  { %v2453_v62 = vmax.f32 %v2449_v55, %v2452_v41 }
 0x49d   :  { %v2445_v58 = vmax.f32 %v2441_v44, %v2444_v57 }
 0x49e   :  { %2454 = vst [vmem:[#allocation7 + $0x1] sm:$0x1] %v2453_v62 }
 0x49f   :  { %2446 = vst [vmem:[#allocation7] sm:$0x1] %v2445_v58 }
 0x4a0   :  { %3445 = dma.done.wait [#allocation11 + $0x1], 2048 }
 0x4a1   :  { %3446 = vsyncadd [#allocation11 + $0x1], 4294965248  ;;  %v3455_v50 = vmov 0   ;;  %v2462_v49 = vld [vmem:[#allocation9 + $0x8] sm:$0xff]  ;;  %v2461_v56 = vld [vmem:[#allocation9] sm:$0xff]  ;;  %v2479_v46 = vlaneseq }
 0x4a2   :  { %2521 = vmatprep.mubr.bf16.mxu0 %v3455_v50  ;;  %v2464_v48 = vld [vmem:[#allocation9 + $0x18] sm:$0xff]  ;;  %2489 = vmatprep.subr.bf16.mxu0 %v2462_v49  ;;  %v2463_v40 = vld [vmem:[#allocation9 + $0x10] sm:$0xff]  ;;  %v2466_v51 = vld [vmem:[#allocation9 + $0x28] sm:$0xff] }
 0x4a3   :  { %2490 = vmatpush1.bf16.msra.mxu0 %v2461_v56  ;;  %v2465_v53 = vld [vmem:[#allocation9 + $0x20] sm:$0xff]  ;;  %v2468_v47 = vld [vmem:[#allocation9 + $0x38] sm:$0xff]  ;;  %v2467_v54 = vld [vmem:[#allocation9 + $0x30] sm:$0xff]  ;;  %v4764_v16 = vshrl.u32 %v2479_v46, 7 }
 0x4a4   :  { %2491 = vmatprep.subr.bf16.mxu0 %v2464_v48  ;;  %v2470_v52 = vld [vmem:[#allocation9 + $0x48] sm:$0xff]  ;;  %v2469_v37 = vld [vmem:[#allocation9 + $0x40] sm:$0xff]  ;;  %v2472_v60 = vld [vmem:[#allocation9 + $0x58] sm:$0xff] }
 0x4a5   :  { %v2471_v8 = vld [vmem:[#allocation9 + $0x50] sm:$0xff]  ;;  %v2474_v36 = vld [vmem:[#allocation9 + $0x68] sm:$0xff]  ;;  %v2473_v24 = vld [vmem:[#allocation9 + $0x60] sm:$0xff]  ;;  %v2481_v1 = vsub.s32 0, %v4764_v16  ;;  %v2485_v34 = vsub.s32 1, %v4764_v16 }
 0x4a6   :  { %v2476_v32 = vld [vmem:[#allocation9 + $0x78] sm:$0xff]  ;;  %v2475_v0 = vld [vmem:[#allocation9 + $0x70] sm:$0xff] }
 0x4a7   :  { %2492 = vmatpush1.bf16.msra.mxu0 %v2463_v40  ;;  %v2459_v39 = vld [vmem:[#allocation7] sm:$0x3] }
 0x4a8   :  { %2493 = vmatprep.subr.bf16.mxu0 %v2466_v51  ;;  %v2460_v33 = vpack.c.bf16 %v2459_v39, %v2459_v39  ;;  %v2477_v9 = vld [vmem:[%s4833_s6] sm:$0x3] }
 0x4a9   :  { %v2482_v10 = vrot.slane %v2477_v9, %v2481_v1  ;;  %v2486_v17 = vrot.slane %v2477_v9, %v2485_v34 }
 0x4ab   :  { %2494 = vmatpush1.bf16.msra.mxu0 %v2465_v53 }
 0x4ac   :  { %2495 = vmatprep.subr.bf16.mxu0 %v2468_v47 }
 0x4af   :  { %2496 = vmatpush1.bf16.msra.mxu0 %v2467_v54 }
 0x4b0   :  { %2497 = vmatprep.subr.bf16.mxu0 %v2470_v52 }
 0x4b3   :  { %2498 = vmatpush1.bf16.msra.mxu0 %v2469_v37 }
 0x4b4   :  { %2499 = vmatprep.subr.bf16.mxu0 %v2472_v60 }
 0x4b7   :  { %2500 = vmatpush1.bf16.msra.mxu0 %v2471_v8 }
 0x4b8   :  { %2501 = vmatprep.subr.bf16.mxu0 %v2474_v36 }
 0x4bb   :  { %2502 = vmatpush1.bf16.msra.mxu0 %v2473_v24 }
 0x4bc   :  { %2503 = vmatprep.subr.bf16.mxu0 %v2476_v32 }
 0x4bf   :  { %2504 = vmatpush1.bf16.msra.mxu0 %v2475_v0 }
 0x4c2   :  { %2522 = vmatmul.mubr.bf16.vlgmr.msra.gmra.mrb[36].mxu0 %v2460_v33 }
 0x595   :  { %v2523_v25 = vpop.f32.mrb[36].mxu0 }
 0x596   :  { %v4775_v26 = vadd.f32 %v2523_v25, %v2482_v10  ;;  %v2525_v2 = vpop.f32.mrb[37].mxu0 }
 0x597   :  { %v2526_v11 = vadd.f32 %v2525_v2, %v2486_v17  ;;  %v2527_v3 = vpop.f32.mrb[38].mxu0 }
 0x598   :  { %v2530_v35 = vmax.f32 %v4775_v26, 0.0  ;;  %v2528_v4 = vpop.f32.mrb[39].mxu0 }
 0x599   :  { %v2531_v5 = vmax.f32 %v2526_v11, 0.0 }
 0x59a   :  { %3447 = dma.done.wait [#allocation11 + $0x2], 12288 }
 0x59b   :  { %3448 = vsyncadd [#allocation11 + $0x2], 4294955008  ;;  %v4778_v12 = vpack.c.bf16 %v2531_v5, %v2531_v5  ;;  %v2539_v13 = vld [vmem:[#allocation10 + $0x8] sm:$0xff]  ;;  %v2538_v14 = vld [vmem:[#allocation10] sm:$0xff]  ;;  %vm2789_vm7 = vcmask 1041408  }
 0x59c   :  { %v2545_v18 = vld [vmem:[#allocation10 + $0x38] sm:$0xff]  ;;  %2666 = vmatprep.subr.bf16.mxu1 %v2539_v13  ;;  %v2544_v6 = vld [vmem:[#allocation10 + $0x30] sm:$0xff]  ;;  %v2551_v19 = vld [vmem:[#allocation10 + $0x68] sm:$0xff] }
 0x59d   :  { %2698 = vmatprep.mubr.bf16.mxu1 %v4778_v12  ;;  %2739 = vmatprep.mubr.bf16.mxu0 %v4778_v12  ;;  %v2550_v20 = vld [vmem:[#allocation10 + $0x60] sm:$0xff]  ;;  %v2557_v21 = vld [vmem:[#allocation10 + $0x98] sm:$0xff]  ;;  %v2556_v22 = vld [vmem:[#allocation10 + $0x90] sm:$0xff] }
 0x59e   :  { %2667 = vmatpush1.bf16.msra.mxu1 %v2538_v14  ;;  %v2541_v15 = vld [vmem:[#allocation10 + $0x18] sm:$0xff]  ;;  %v2540_v7 = vld [vmem:[#allocation10 + $0x10] sm:$0xff]  ;;  %v2563_v23 = vld [vmem:[#allocation10 + $0xc8] sm:$0xff] }
 0x59f   :  { %2668 = vmatprep.subr.bf16.mxu1 %v2545_v18  ;;  %2707 = vmatprep.subr.bf16.mxu0 %v2541_v15  ;;  %v2547_v27 = vld [vmem:[#allocation10 + $0x48] sm:$0xff]  ;;  %v2546_v28 = vld [vmem:[#allocation10 + $0x40] sm:$0xff]  ;;  %v2553_v29 = vld [vmem:[#allocation10 + $0x78] sm:$0xff]  ;;  %v4785_v18 = vpack.c.bf16 %v2530_v35, %v2530_v35 }
 0x5a0   :  { %2708 = vmatpush1.bf16.msra.mxu0 %v2540_v7  ;;  %v2562_v30 = vld [vmem:[#allocation10 + $0xc0] sm:$0xff]  ;;  %v2569_v31 = vld [vmem:[#allocation10 + $0xf8] sm:$0xff]  ;;  %v2552_v63 = vld [vmem:[#allocation10 + $0x70] sm:$0xff] }
 0x5a1   :  { %2709 = vmatprep.subr.bf16.mxu0 %v2547_v27  ;;  %v2559_v61 = vld [vmem:[#allocation10 + $0xa8] sm:$0xff]  ;;  %v2568_v55 = vld [vmem:[#allocation10 + $0xf0] sm:$0xff]  ;;  %v2558_v42 = vld [vmem:[#allocation10 + $0xa0] sm:$0xff] }
 0x5a2   :  { %2669 = vmatpush1.bf16.msra.mxu1 %v2544_v6  ;;  %v2575_v45 = vld [vmem:[#allocation10 + $0x128] sm:$0xff]  ;;  %v2565_v38 = vld [vmem:[#allocation10 + $0xd8] sm:$0xff]  ;;  %v2574_v41 = vld [vmem:[#allocation10 + $0x120] sm:$0xff] }
 0x5a3   :  { %2670 = vmatprep.subr.bf16.mxu1 %v2551_v19  ;;  %v2581_v44 = vld [vmem:[#allocation10 + $0x158] sm:$0xff]  ;;  %v2564_v59 = vld [vmem:[#allocation10 + $0xd0] sm:$0xff]  ;;  %v2571_v43 = vld [vmem:[#allocation10 + $0x108] sm:$0xff] }
 0x5a4   :  { %2710 = vmatpush1.bf16.msra.mxu0 %v2546_v28  ;;  %v2580_v57 = vld [vmem:[#allocation10 + $0x150] sm:$0xff]  ;;  %v2587_v62 = vld [vmem:[#allocation10 + $0x188] sm:$0xff]  ;;  %v2570_v58 = vld [vmem:[#allocation10 + $0x100] sm:$0xff] }
 0x5a5   :  { %2711 = vmatprep.subr.bf16.mxu0 %v2553_v29  ;;  %v2577_v50 = vld [vmem:[#allocation10 + $0x138] sm:$0xff]  ;;  %v2586_v49 = vld [vmem:[#allocation10 + $0x180] sm:$0xff]  ;;  %v2576_v48 = vld [vmem:[#allocation10 + $0x130] sm:$0xff] }
 0x5a6   :  { %2671 = vmatpush1.bf16.msra.mxu1 %v2550_v20  ;;  %v2593_v56 = vld [vmem:[#allocation10 + $0x1b8] sm:$0xff]  ;;  %v2583_v40 = vld [vmem:[#allocation10 + $0x168] sm:$0xff]  ;;  %v2592_v51 = vld [vmem:[#allocation10 + $0x1b0] sm:$0xff] }
 0x5a7   :  { %2672 = vmatprep.subr.bf16.mxu1 %v2557_v21  ;;  %v2599_v53 = vld [vmem:[#allocation10 + $0x1e8] sm:$0xff]  ;;  %v2582_v47 = vld [vmem:[#allocation10 + $0x160] sm:$0xff]  ;;  %v2589_v54 = vld [vmem:[#allocation10 + $0x198] sm:$0xff] }
 0x5a8   :  { %2712 = vmatpush1.bf16.msra.mxu0 %v2552_v63  ;;  %v2598_v52 = vld [vmem:[#allocation10 + $0x1e0] sm:$0xff]  ;;  %v2605_v37 = vld [vmem:[#allocation10 + $0x218] sm:$0xff]  ;;  %v2588_v60 = vld [vmem:[#allocation10 + $0x190] sm:$0xff] }
 0x5a9   :  { %2713 = vmatprep.subr.bf16.mxu0 %v2559_v61  ;;  %v2595_v8 = vld [vmem:[#allocation10 + $0x1c8] sm:$0xff]  ;;  %v2604_v36 = vld [vmem:[#allocation10 + $0x210] sm:$0xff]  ;;  %v2594_v32 = vld [vmem:[#allocation10 + $0x1c0] sm:$0xff] }
 0x5aa   :  { %2673 = vmatpush1.bf16.msra.mxu1 %v2556_v22  ;;  %v2611_v24 = vld [vmem:[#allocation10 + $0x248] sm:$0xff]  ;;  %v2601_v39 = vld [vmem:[#allocation10 + $0x1f8] sm:$0xff]  ;;  %v2610_v0 = vld [vmem:[#allocation10 + $0x240] sm:$0xff] }
 0x5ab   :  { %2674 = vmatprep.subr.bf16.mxu1 %v2563_v23  ;;  %v2617_v33 = vld [vmem:[#allocation10 + $0x278] sm:$0xff]  ;;  %v2600_v46 = vld [vmem:[#allocation10 + $0x1f0] sm:$0xff]  ;;  %v2607_v9 = vld [vmem:[#allocation10 + $0x228] sm:$0xff] }
 0x5ac   :  { %2714 = vmatpush1.bf16.msra.mxu0 %v2558_v42  ;;  %v2616_v10 = vld [vmem:[#allocation10 + $0x270] sm:$0xff]  ;;  %v2623_v17 = vld [vmem:[#allocation10 + $0x2a8] sm:$0xff]  ;;  %v2606_v25 = vld [vmem:[#allocation10 + $0x220] sm:$0xff] }
 0x5ad   :  { %2715 = vmatprep.subr.bf16.mxu0 %v2565_v38  ;;  %v2613_v2 = vld [vmem:[#allocation10 + $0x258] sm:$0xff]  ;;  %v2622_v11 = vld [vmem:[#allocation10 + $0x2a0] sm:$0xff]  ;;  %v2612_v4 = vld [vmem:[#allocation10 + $0x250] sm:$0xff] }
 0x5ae   :  { %2675 = vmatpush1.bf16.msra.mxu1 %v2562_v30  ;;  %v2629_v3 = vld [vmem:[#allocation10 + $0x2d8] sm:$0xff]  ;;  %v2619_v5 = vld [vmem:[#allocation10 + $0x288] sm:$0xff]  ;;  %v2628_v13 = vld [vmem:[#allocation10 + $0x2d0] sm:$0xff] }
 0x5af   :  { %2676 = vmatprep.subr.bf16.mxu1 %v2569_v31  ;;  %v2543_v14 = vld [vmem:[#allocation10 + $0x28] sm:$0xff]  ;;  %v2618_v6 = vld [vmem:[#allocation10 + $0x280] sm:$0xff]  ;;  %v2625_v19 = vld [vmem:[#allocation10 + $0x2b8] sm:$0xff] }
 0x5b0   :  { %2716 = vmatpush1.bf16.msra.mxu0 %v2564_v59  ;;  %v2542_v20 = vld [vmem:[#allocation10 + $0x20] sm:$0xff]  ;;  %v2549_v21 = vld [vmem:[#allocation10 + $0x58] sm:$0xff]  ;;  %v2624_v15 = vld [vmem:[#allocation10 + $0x2b0] sm:$0xff] }
 0x5b1   :  { %2717 = vmatprep.subr.bf16.mxu0 %v2571_v43  ;;  %v2631_v22 = vld [vmem:[#allocation10 + $0x2e8] sm:$0xff]  ;;  %v2548_v26 = vld [vmem:[#allocation10 + $0x50] sm:$0xff]  ;;  %v2630_v7 = vld [vmem:[#allocation10 + $0x2e0] sm:$0xff] }
 0x5b2   :  { %2677 = vmatpush1.bf16.msra.mxu1 %v2568_v55  ;;  %v2555_v35 = vld [vmem:[#allocation10 + $0x88] sm:$0xff]  ;;  %v2554_v23 = vld [vmem:[#allocation10 + $0x80] sm:$0xff]  ;;  %v2561_v27 = vld [vmem:[#allocation10 + $0xb8] sm:$0xff] }
 0x5b3   :  { %2678 = vmatprep.subr.bf16.mxu1 %v2575_v45  ;;  %v2560_v28 = vld [vmem:[#allocation10 + $0xb0] sm:$0xff]  ;;  %v2567_v29 = vld [vmem:[#allocation10 + $0xe8] sm:$0xff]  ;;  %v2573_v30 = vld [vmem:[#allocation10 + $0x118] sm:$0xff] }
 0x5b4   :  { %2718 = vmatpush1.bf16.msra.mxu0 %v2570_v58  ;;  %v2572_v31 = vld [vmem:[#allocation10 + $0x110] sm:$0xff]  ;;  %v2579_v63 = vld [vmem:[#allocation10 + $0x148] sm:$0xff]  ;;  %v2578_v61 = vld [vmem:[#allocation10 + $0x140] sm:$0xff] }
 0x5b5   :  { %2719 = vmatprep.subr.bf16.mxu0 %v2577_v50  ;;  %v2585_v55 = vld [vmem:[#allocation10 + $0x178] sm:$0xff]  ;;  %v2584_v45 = vld [vmem:[#allocation10 + $0x170] sm:$0xff]  ;;  %v2591_v42 = vld [vmem:[#allocation10 + $0x1a8] sm:$0xff] }
 0x5b6   :  { %2679 = vmatpush1.bf16.msra.mxu1 %v2574_v41  ;;  %v2590_v38 = vld [vmem:[#allocation10 + $0x1a0] sm:$0xff]  ;;  %v2597_v41 = vld [vmem:[#allocation10 + $0x1d8] sm:$0xff]  ;;  %v2603_v59 = vld [vmem:[#allocation10 + $0x208] sm:$0xff] }
 0x5b7   :  { %2680 = vmatprep.subr.bf16.mxu1 %v2581_v44  ;;  %v2596_v44 = vld [vmem:[#allocation10 + $0x1d0] sm:$0xff]  ;;  %v2602_v43 = vld [vmem:[#allocation10 + $0x200] sm:$0xff]  ;;  %v2615_v58 = vld [vmem:[#allocation10 + $0x268] sm:$0xff] }
 0x5b8   :  { %2720 = vmatpush1.bf16.msra.mxu0 %v2576_v48  ;;  %v2614_v50 = vld [vmem:[#allocation10 + $0x260] sm:$0xff]  ;;  %v2627_v48 = vld [vmem:[#allocation10 + $0x2c8] sm:$0xff] }
 0x5b9   :  { %2721 = vmatprep.subr.bf16.mxu0 %v2583_v40  ;;  %v2626_v40 = vld [vmem:[#allocation10 + $0x2c0] sm:$0xff] }
 0x5ba   :  { %2681 = vmatpush1.bf16.msra.mxu1 %v2580_v57  ;;  %v2609_v57 = vld [vmem:[#allocation10 + $0x238] sm:$0xff] }
 0x5bb   :  { %2682 = vmatprep.subr.bf16.mxu1 %v2587_v62  ;;  %v2608_v62 = vld [vmem:[#allocation10 + $0x230] sm:$0xff] }
 0x5bc   :  { %2722 = vmatpush1.bf16.msra.mxu0 %v2582_v47 }
 0x5bd   :  { %2723 = vmatprep.subr.bf16.mxu0 %v2589_v54 }
 0x5be   :  { %2683 = vmatpush1.bf16.msra.mxu1 %v2586_v49  ;;  %v2621_v49 = vld [vmem:[#allocation10 + $0x298] sm:$0xff] }
 0x5bf   :  { %2684 = vmatprep.subr.bf16.mxu1 %v2593_v56  ;;  %v2620_v56 = vld [vmem:[#allocation10 + $0x290] sm:$0xff] }
 0x5c0   :  { %2724 = vmatpush1.bf16.msra.mxu0 %v2588_v60 }
 0x5c1   :  { %2725 = vmatprep.subr.bf16.mxu0 %v2595_v8 }
 0x5c2   :  { %2685 = vmatpush1.bf16.msra.mxu1 %v2592_v51  ;;  %v2633_v51 = vld [vmem:[#allocation10 + $0x2f8] sm:$0xff] }
 0x5c3   :  { %2686 = vmatprep.subr.bf16.mxu1 %v2599_v53  ;;  %v2632_v53 = vld [vmem:[#allocation10 + $0x2f0] sm:$0xff] }
 0x5c4   :  { %2726 = vmatpush1.bf16.msra.mxu0 %v2594_v32  ;;  %v2646_v32 = vsub.s32 2, %v4764_v16 }
 0x5c5   :  { %2727 = vmatprep.subr.bf16.mxu0 %v2601_v39  ;;  %v2650_v39 = vsub.s32 3, %v4764_v16 }
 0x5c6   :  { %2687 = vmatpush1.bf16.msra.mxu1 %v2598_v52 }
 0x5c7   :  { %2688 = vmatprep.subr.bf16.mxu1 %v2605_v37 }
 0x5c8   :  { %2728 = vmatpush1.bf16.msra.mxu0 %v2600_v46 }
 0x5c9   :  { %2729 = vmatprep.subr.bf16.mxu0 %v2607_v9 }
 0x5ca   :  { %2689 = vmatpush1.bf16.msra.mxu1 %v2604_v36 }
 0x5cb   :  { %2690 = vmatprep.subr.bf16.mxu1 %v2611_v24 }
 0x5cc   :  { %2730 = vmatpush1.bf16.msra.mxu0 %v2606_v25 }
 0x5cd   :  { %2731 = vmatprep.subr.bf16.mxu0 %v2613_v2 }
 0x5ce   :  { %2691 = vmatpush1.bf16.msra.mxu1 %v2610_v0  ;;  %v2634_v0 = vld [vmem:[%s4834_s7] sm:$0x3f]  ;;  %s3457_s7 = smov [#allocation12]  }
 0x5cf   :  { %2692 = vmatprep.subr.bf16.mxu1 %v2617_v33  ;;  %v2654_v33 = vsub.s32 4, %v4764_v16  ;;  %v2647_v46 = vrot.slane %v2634_v0, %v2646_v32  ;;  %v2651_v9 = vrot.slane %v2634_v0, %v2650_v39  ;;  %v2643_v25 = vrot.slane %v2634_v0, %v2485_v34  ;;  %s2882_s26 = sshll.u32 %s3457_s7, 4  ;;  %s2883_s26 = int_to_ptr.vmem [resolvable:$true] %s2882_s26 }
 0x5d0   :  { %2732 = vmatpush1.bf16.msra.mxu0 %v2612_v4  ;;  %v3456_v32 = vmov 1983009808   ;;  %s3421_s10 = scalar_lea.vmem %s2883_s26, 192  ;;  %p3426_p1 = scmp.lt.s32.totalorder %s2883_s26, %s2883_s26 }
 0x5d1   :  { %2733 = vmatprep.subr.bf16.mxu0 %v2619_v5  ;;  %v2655_v2 = vrot.slane %v2634_v0, %v2654_v33  ;;  %v2850_v39 = vunpack.c.l.s4 %v3456_v32  ;;  %p3422_p0 = scmp.ne.s32.totalorder %s2883_s26, %s3421_s10  ;;  %p3427_p2 = scmp.lt.s32.totalorder %s3421_s10, %s3421_s10 }
 0x5d2   :  { %2693 = vmatpush1.bf16.msra.mxu1 %v2616_v10  ;;  %v2658_v10 = vsub.s32 5, %v4764_v16 }
 0x5d3   :  { %2694 = vmatprep.subr.bf16.mxu1 %v2623_v17  ;;  %v2639_v17 = vrot.slane %v2634_v0, %v2481_v1  ;;  %p3428_p3 = por %p3427_p2, %p3426_p1 }
 0x5d4   :  { %2734 = vmatpush1.bf16.msra.mxu0 %v2618_v6  ;;  %v2659_v4 = vrot.slane %v2634_v0, %v2658_v10  ;;  %v2851_v0 = vunpack.c.0.s8 %v2850_v39 }
 0x5d5   :  { %2735 = vmatprep.subr.bf16.mxu0 %v2625_v19  ;;  %p3429_p4 = pnand %p3428_p3, %p3422_p0 }
 0x5d6   :  { %2695 = vmatpush1.bf16.msra.mxu1 %v2622_v11 }
 0x5d7   :  { %2696 = vmatprep.subr.bf16.mxu1 %v2629_v3 }
 0x5d8   :  { %2736 = vmatpush1.bf16.msra.mxu0 %v2624_v15 }
 0x5d9   :  { %2737 = vmatprep.subr.bf16.mxu0 %v2631_v22 }
 0x5da   :  { %2697 = vmatpush1.bf16.msra.mxu1 %v2628_v13 }
 0x5db   :  { %2748 = vmatprep.subr.bf16.mxu1 %v2543_v14 }
 0x5dc   :  { %2738 = vmatpush1.bf16.msra.mxu0 %v2630_v7 }
 0x5dd   :  { %2699 = vmatmul.mubr.bf16.vlgmr.msra.gmra.mrb[24].mxu1 %v4785_v18 }
 0x5de   :  { %2749 = vmatpush1.bf16.msra.mxu1 %v2542_v20  ;;  %2780 = vmatprep.mubr.bf16.mxu1 %v4778_v12  ;;  %v2566_v12 = vld [vmem:[#allocation10 + $0xe0] sm:$0xff] }
 0x5df   :  { %2750 = vmatprep.subr.bf16.mxu1 %v2549_v21  ;;  %2740 = vmatmul.mubr.bf16.vlgmr.msra.gmra.mrb[40].mxu0 %v4785_v18 }
 0x5e2   :  { %2751 = vmatpush1.bf16.msra.mxu1 %v2548_v26 }
 0x5e3   :  { %2752 = vmatprep.subr.bf16.mxu1 %v2555_v35 }
 0x5e6   :  { %2753 = vmatpush1.bf16.msra.mxu1 %v2554_v23 }
 0x5e7   :  { %2754 = vmatprep.subr.bf16.mxu1 %v2561_v27 }
 0x5ea   :  { %2755 = vmatpush1.bf16.msra.mxu1 %v2560_v28 }
 0x5eb   :  { %2756 = vmatprep.subr.bf16.mxu1 %v2567_v29 }
 0x5ee   :  { %2757 = vmatpush1.bf16.msra.mxu1 %v2566_v12 }
 0x5ef   :  { %2758 = vmatprep.subr.bf16.mxu1 %v2573_v30 }
 0x5f2   :  { %2759 = vmatpush1.bf16.msra.mxu1 %v2572_v31 }
 0x5f3   :  { %2760 = vmatprep.subr.bf16.mxu1 %v2579_v63 }
 0x5f6   :  { %2761 = vmatpush1.bf16.msra.mxu1 %v2578_v61 }
 0x5f7   :  { %2762 = vmatprep.subr.bf16.mxu1 %v2585_v55 }
 0x5fa   :  { %2763 = vmatpush1.bf16.msra.mxu1 %v2584_v45 }
 0x5fb   :  { %2764 = vmatprep.subr.bf16.mxu1 %v2591_v42 }
 0x5fe   :  { %2765 = vmatpush1.bf16.msra.mxu1 %v2590_v38 }
 0x5ff   :  { %2766 = vmatprep.subr.bf16.mxu1 %v2597_v41 }
 0x602   :  { %2767 = vmatpush1.bf16.msra.mxu1 %v2596_v44 }
 0x603   :  { %2768 = vmatprep.subr.bf16.mxu1 %v2603_v59 }
 0x606   :  { %2769 = vmatpush1.bf16.msra.mxu1 %v2602_v43 }
 0x607   :  { %2770 = vmatprep.subr.bf16.mxu1 %v2609_v57 }
 0x60a   :  { %2771 = vmatpush1.bf16.msra.mxu1 %v2608_v62 }
 0x60b   :  { %2772 = vmatprep.subr.bf16.mxu1 %v2615_v58 }
 0x60e   :  { %2773 = vmatpush1.bf16.msra.mxu1 %v2614_v50 }
 0x60f   :  { %2774 = vmatprep.subr.bf16.mxu1 %v2621_v49 }
 0x612   :  { %2775 = vmatpush1.bf16.msra.mxu1 %v2620_v56 }
 0x613   :  { %2776 = vmatprep.subr.bf16.mxu1 %v2627_v48 }
 0x616   :  { %2777 = vmatpush1.bf16.msra.mxu1 %v2626_v40 }
 0x617   :  { %2778 = vmatprep.subr.bf16.mxu1 %v2633_v51 }
 0x61a   :  { %2779 = vmatpush1.bf16.msra.mxu1 %v2632_v53 }
 0x61d   :  { %2781 = vmatmul.mubr.bf16.vlgmr.msra.gmra.mrb[28].mxu1 %v4785_v18 }
 0x6b0   :  { %v2700_v47 = vpop.f32.mrb[24].mxu1 }
 0x6b1   :  { %v2702_v54 = vpop.f32.mrb[25].mxu1  ;;  %v2701_v5 = vadd.f32 %v2700_v47, %v2639_v17 }
 0x6b2   :  { %v2704_v52 = vpop.f32.mrb[26].mxu1  ;;  %v2741_v60 = vpop.f32.mrb[40].mxu0  ;;  %v2703_v13 = vadd.f32 %v2702_v54, %v2643_v25 }
 0x6b3   :  { %v2705_v37 = vpop.f32.mrb[27].mxu1  ;;  %v2743_v8 = vpop.f32.mrb[41].mxu0  ;;  %v2742_v11 = vadd.f32 %v2741_v60, %v2647_v46  ;;  %v2790_v1 = vsel %vm2789_vm7, %v2701_v5, -inf  ;;  %v2854_v46 = vsub.s32 %v2851_v0, %v4764_v16 }
 0x6b4   :  { %v2745_v36 = vpop.f32.mrb[42].mxu0  ;;  %v2744_v3 = vadd.f32 %v2743_v8, %v2651_v9  ;;  %v2791_v26 = vsel %vm2789_vm7, %v2703_v13, -inf }
 0x6b5   :  { %v2746_v24 = vpop.f32.mrb[43].mxu0  ;;  %v2792_v19 = vsel %vm2789_vm7, %v2742_v11, -inf }
 0x6b6   :  { %v2793_v20 = vsel %vm2789_vm7, %v2744_v3, -inf }
 0x6b7   :  { %v2799_v27 = vmax.f32 %v2792_v19, %v2793_v20 }
 0x6f0   :  { %v2782_v14 = vpop.f32.mrb[28].mxu1 }
 0x6f1   :  { %v2783_v18 = vadd.f32 %v2782_v14, %v2655_v2  ;;  %v2784_v6 = vpop.f32.mrb[29].mxu1 }
 0x6f2   :  { %v2785_v21 = vadd.f32 %v2784_v6, %v2659_v4  ;;  %v2786_v15 = vpop.f32.mrb[30].mxu1 }
 0x6f3   :  { %v2794_v34 = vsel %vm2789_vm7, %v2783_v18, -inf  ;;  %v2787_v22 = vpop.f32.mrb[31].mxu1 }
 0x6f4   :  { %v2795_v35 = vmax.f32 %v2790_v1, %v2794_v34  ;;  %v2796_v7 = vsel %vm2789_vm7, %v2785_v21, -inf }
 0x6f5   :  { %v2797_v23 = vmax.f32 %v2791_v26, %v2796_v7 }
 0x6f7   :  { %v2798_v28 = vmax.f32 %v2795_v35, %v2797_v23 }
 0x6f9   :  { %v2800_v29 = vmax.f32 %v2798_v28, %v2799_v27 }
 0x6fb   :  { %2801 = vmax.xlane.f32.xlu0 %v2800_v29 }
 0x788   :  { %v2802_v12 = vpop.xlane.xlu0 %2801 }
 0x789   :  { %v2803_v30 = vsub.f32 %v2701_v5, %v2802_v12  ;;  %v2804_v31 = vsub.f32 %v2703_v13, %v2802_v12  ;;  %v2805_v63 = vsub.f32 %v2742_v11, %v2802_v12  ;;  %v2806_v61 = vsub.f32 %v2744_v3, %v2802_v12 }
 0x78a   :  { %v2807_v55 = vsub.f32 %v2783_v18, %v2802_v12  ;;  %v2808_v41 = vsub.f32 %v2785_v21, %v2802_v12 }
 0x78b   :  { %v2809_v45 = vmul.f32 1.442695, %v2803_v30  ;;  %v2811_v42 = vmul.f32 1.442695, %v2804_v31  ;;  %v2813_v38 = vmul.f32 1.442695, %v2805_v63 }
 0x78c   :  { %v2815_v44 = vmul.f32 1.442695, %v2806_v61  ;;  %v2817_v59 = vmul.f32 1.442695, %v2807_v55  ;;  %v2819_v43 = vmul.f32 1.442695, %v2808_v41 }
 0x78d   :  { %3407 = vpow2.f32 %v2809_v45 }
 0x78e   :  { %3409 = vpow2.f32 %v2811_v42 }
 0x78f   :  { %3411 = vpow2.f32 %v2813_v38 }
 0x790   :  { %3413 = vpow2.f32 %v2815_v44 }
 0x791   :  { %3415 = vpow2.f32 %v2817_v59 }
 0x792   :  { %3417 = vpow2.f32 %v2819_v43 }
 0x797   :  { %v3408_v57 = vpop.eup %3407 }
 0x798   :  { %v3410_v62 = vpop.eup %3409  ;;  %v2821_v58 = vsel %vm2789_vm7, %v3408_v57, 0.0 }
 0x799   :  { %v3412_v50 = vpop.eup %3411  ;;  %v2822_v49 = vsel %vm2789_vm7, %v3410_v62, 0.0 }
 0x79a   :  { %v3414_v56 = vpop.eup %3413  ;;  %v2823_v48 = vadd.f32 %v2822_v49, %v2821_v58  ;;  %v2824_v40 = vsel %vm2789_vm7, %v3412_v50, 0.0 }
 0x79b   :  { %v3416_v51 = vpop.eup %3415  ;;  %v2826_v47 = vsel %vm2789_vm7, %v3414_v56, 0.0 }
 0x79c   :  { %v2825_v53 = vadd.f32 %v2824_v40, %v2823_v48  ;;  %v3418_v54 = vpop.eup %3417  ;;  %v2828_v37 = vsel %vm2789_vm7, %v3416_v51, 0.0 }
 0x79d   :  { %v2830_v8 = vsel %vm2789_vm7, %v3418_v54, 0.0 }
 0x79e   :  { %v2827_v52 = vadd.f32 %v2826_v47, %v2825_v53 }
 0x7a0   :  { %v2829_v60 = vadd.f32 %v2828_v37, %v2827_v52 }
 0x7a2   :  { %v2831_v36 = vadd.f32 %v2830_v8, %v2829_v60 }
 0x7a4   :  { %2832 = vadd.xlane.f32.xlu0 %v2831_v36 }
 0x831   :  { %v2833_v24 = vpop.xlane.xlu0 %2832 }
 0x832   :  { %3419 = vrcp.f32 %v2833_v24 }
 0x83c   :  { %v3420_v33 = vpop.eup %3419 }
 0x83d   :  { %v2835_v9 = vmul.f32 %v3420_v33, %v3408_v57  ;;  %v2836_v10 = vmul.f32 %v3420_v33, %v3410_v62  ;;  %v2837_v17 = vmul.f32 %v3420_v33, %v3412_v50  ;;  %v2838_v25 = vmul.f32 %v3420_v33, %v3414_v56 }
 0x83e   :  { %v2839_v2 = vmul.f32 %v3420_v33, %v3416_v51  ;;  %v2840_v11 = vmul.f32 %v3420_v33, %v3418_v54 }
 0x83f   :  { %v2847_v3 = vcombine.low %v2835_v9, %v2836_v10  ;;  %v2848_v4 = vcombine.low %v2837_v17, %v2838_v25 }
 0x840   :  { %v2864_v5 = vcombine.low %v2839_v2, %v2840_v11 }
 0x841   :  { %v2855_v13 = vrot.slane %v2847_v3, %v2854_v46  ;;  %v2862_v14 = vrot.slane %v2848_v4, %v2854_v46 }
 0x842   :  { %2976 = vst.sshfl [vmem:[#allocation12 + $0x8] sm:$0x33 pattern:$0x76325410] %v2864_v5 }
 0x843   :  { %v2863_v18 = vcombine.low %v2855_v13, %v2862_v14 }
 0x845   :  { %2874 = vst [vmem:[#allocation12] sm:$0xff] %v2863_v18 }
 0x846   :  { %3432 = shalt.err (!%p3429_p4)
}
 0x847   :  { %s3433_s28 = scalar_lea.hbm %s4838_s11, 192 }
 0x848   :  { %p3434_p5 = scmp.ne.s32.totalorder %s4838_s11, %s3433_s28  ;;  %p3437_p6 = scmp.lt.u32.totalorder %s3433_s28, %s4838_s11 }
 0x84a   :  { %p3439_p7 = pnand %p3437_p6, %p3434_p5 }
 0x84c   :  { %3442 = shalt.err (!%p3439_p7)
}
 0x84d   :  { %2885 = dma.vmem_to_hbm [thread:$0]  %s2883_s26, 192, %s4838_s11, [#allocation13]  }
 0x84e   :  { %3449 = dma.done.wait [#allocation13], 192  }
 0x84f   :  { %3450 = vsyncadd [#allocation13], 4294967104 }
 0x850   :  { %2889 = vsyncpa [#allocation13], 1 }
 0x851   :  { %2890 = vsyncmov [#allocation11] }
 0x854   :  { %s2891_s15 = vpop.sfrf %2890 }
 0x855   :  { %p2977_p8 = scmp.ne.s32.totalorder %s2891_s15, 0 }
 0x857   :  { %2895 = shalt.err (%p2977_p8)  }
 0x858   :  { %2897 = vsyncmov [#allocation11 + $0x1] }
 0x85b   :  { %s2898_s16 = vpop.sfrf %2897 }
 0x85c   :  { %p2978_p9 = scmp.ne.s32.totalorder %s2898_s16, 0 }
 0x85e   :  { %2902 = shalt.err (%p2978_p9)  }
 0x85f   :  { %2904 = vsyncmov [#allocation11 + $0x2] }
 0x862   :  { %s2905_s17 = vpop.sfrf %2904 }
 0x863   :  { %p2979_p10 = scmp.ne.s32.totalorder %s2905_s17, 0 }
 0x865   :  { %2909 = shalt.err (%p2979_p10)  }

</bundles_post_ra>
